<compile_context>
chip_gen: v6e
topology: v6e:2x2x1
jax: 0.10.0
libtpu: 0.0.40
codegen_flags: <defaults>
</compile_context>

<pallas_src>
import functools

import jax
import jax.numpy as jnp
from jax import lax
from jax.experimental import pallas as pl
from jax.experimental.pallas import tpu as pltpu

F32 = jnp.float32


def _vmem():
    return pl.BlockSpec(memory_space=pltpu.MemorySpace.VMEM)


# ------------------------------------------------------------------
# Single fused kernel: position MLP + bi-LSTM encoder + bridge +
# decoder LSTM + Luong attention + output head (log_softmax).
# ------------------------------------------------------------------
def planner_fused_kernel(
        # data
        pos_ref,          # [B, 3]      (direction, agent pos, target pos)
        emb_ref,          # [S, B, E]   embedded commands (time-major)
        enc_mask_ref,     # [S, B, 1]   1.0 while t < input_length
        key_mask_ref,     # [B, S]      1.0 for valid attention keys
        dec_emb_ref,      # [T, B, H]   embedded target tokens (time-major)
        # input_to_position + encode_position MLP
        w_pos_ref, b_pos_ref, w_mlp1_ref, b_mlp1_ref, w_mlp2_ref, b_mlp2_ref,
        # encoder bi-LSTM: fused fwd|bwd input projection + per-direction W_hh
        enc_wi8_ref,      # [E, 8H]  (fwd 4H | bwd 4H)
        enc_b8_ref,       # [1, 8H]
        enc_whf_ref,      # [H, 4H]
        enc_whb_ref,      # [H, 4H]
        # enc_hidden_to_dec_hidden
        w_bridge_ref, b_bridge_ref,
        # Luong attention key projection
        attn_wk_ref,
        # decoder LSTM
        dec_wi_ref, dec_wh_ref, dec_b_ref,
        # hidden_to_output (h-half / context-half, lane-padded to Vp columns)
        wout_h_ref, wout_c_ref, bout_ref,
        # outputs
        scores_ref,       # [T, B, Vp]  log-softmax scores (time-major, lane-dense)
        attn_ref,         # [T, B, S]   attention weights (time-major)
        # scratch (VMEM-resident intermediates)
        enc_f_ref,        # [S, B, H]   forward-direction encoder outputs
        enc_b_ref,        # [S, B, H]   backward-direction encoder outputs
        gx_ref,           # [S, B, 8H]  hoisted fused encoder input-gate projections
        hs_ref,           # [T, B, H]   decoder hidden states
        gxd_ref,          # [T, B, 4H]  hoisted decoder input-gate projections
        *, hidden_size):
    H = hidden_size
    S, B, E = emb_ref.shape
    T = dec_emb_ref.shape[0]
    Vp = bout_ref.shape[1]

    # ---------------- position MLP ----------------
    # input_to_position: Linear(3, H); encode_position: MLP.
    # TODO(synk): exact MLP definition is not in the provided snippet; assumed
    #             Linear-ReLU-Dropout(eval)-Linear.
    x = jnp.dot(pos_ref[...], w_pos_ref[...], preferred_element_type=F32) + b_pos_ref[...]
    h1 = jnp.maximum(jnp.dot(x, w_mlp1_ref[...], preferred_element_type=F32) + b_mlp1_ref[...], 0.0)
    encoded_positions = (jnp.dot(h1, w_mlp2_ref[...], preferred_element_type=F32)
                         + b_mlp2_ref[...])                                     # [B, H]

    # ---------------- encoder: masked bidirectional LSTM (merged fwd/bwd loop) ------------
    emb_flat = emb_ref[...].reshape(S * B, E)
    zeros = jnp.zeros((B, H), F32)

    def cell(gates, c):
        # Two full-4H-vreg activations, then lane-slice i/f/g/o (PyTorch gate order).
        sg = jax.nn.sigmoid(gates)
        tg = jnp.tanh(gates)
        i_g = sg[:, 0 * H:1 * H]
        f_g = sg[:, 1 * H:2 * H]
        g_g = tg[:, 2 * H:3 * H]
        o_g = sg[:, 3 * H:4 * H]
        c_new = f_g * c + i_g * g_g
        h_new = o_g * jnp.tanh(c_new)
        return h_new, c_new

    # One bulk MXU pass for BOTH directions' input-gate projections: [S*B, E] @ [E, 8H].
    gx_ref[...] = (jnp.dot(emb_flat, enc_wi8_ref[...], preferred_element_type=F32)
                   + enc_b8_ref[...]).reshape(S, B, 8 * H)
    whf = enc_whf_ref[...]
    whb = enc_whb_ref[...]

    def enc_body(i, carry):
        h_f, c_f, h_b, c_b = carry
        tb = S - 1 - i
        m_f = enc_mask_ref[i]                                                   # [B, 1]
        m_b = enc_mask_ref[tb]
        g8_f = gx_ref[i]                                                        # [B, 8H]
        g8_b = gx_ref[tb]
        # Two independent dependency chains per step (fwd / bwd) hide each other's latency.
        gates_f = g8_f[:, :4 * H] + jnp.dot(h_f, whf, preferred_element_type=F32)
        gates_b = g8_b[:, 4 * H:] + jnp.dot(h_b, whb, preferred_element_type=F32)
        hf_new, cf_new = cell(gates_f, c_f)
        hb_new, cb_new = cell(gates_b, c_b)
        enc_f_ref[i] = m_f * hf_new                                             # padded -> zeros
        enc_b_ref[tb] = m_b * hb_new
        h_f = m_f * hf_new + (1.0 - m_f) * h_f                                  # freeze past seq end
        c_f = m_f * cf_new + (1.0 - m_f) * c_f
        h_b = m_b * hb_new + (1.0 - m_b) * h_b
        c_b = m_b * cb_new + (1.0 - m_b) * c_b
        return h_f, c_f, h_b, c_b

    h_fwd, _, h_bwd, _ = lax.fori_loop(0, S, enc_body, (zeros, zeros, zeros, zeros),
                                       unroll=True)

    # gSCAN EncoderRNN sums the two directions (outputs and final hidden).
    enc_out = enc_f_ref[...] + enc_b_ref[...]                                   # [S, B, H]
    enc_hidden = h_fwd + h_bwd                                                  # [B, H]

    # ---------------- bridge: initial decoder state ----------------
    initial_hidden = jnp.concatenate([enc_hidden, encoded_positions], axis=1)   # [B, 2H]
    h0 = jnp.tanh(jnp.dot(initial_hidden, w_bridge_ref[...], preferred_element_type=F32)
                  + b_bridge_ref[...])                                          # h0 = c0

    # ---------------- decoder LSTM recurrence (attention/output hoisted below) -------------
    gxd_ref[...] = (jnp.dot(dec_emb_ref[...].reshape(T * B, H), dec_wi_ref[...],
                            preferred_element_type=F32)
                    + dec_b_ref[...]).reshape(T, B, 4 * H)
    whd = dec_wh_ref[...]

    def dec_body(t, carry):
        h, c = carry
        gates = gxd_ref[t] + jnp.dot(h, whd, preferred_element_type=F32)
        h, c = cell(gates, c)
        hs_ref[t] = h
        return h, c

    lax.fori_loop(0, T, dec_body, (h0, h0), unroll=True)

    # ---------------- Luong attention + output head (bulk, off the serial path) ------------
    # TODO(synk): exact LuongAttention variant is not in the snippet; assumed "general":
    #             score = h . (W_k k), values = unprojected encoder outputs.
    hs = hs_ref[...]                                                            # [T, B, H]
    keys_p = jnp.dot(enc_out.reshape(S * B, H), attn_wk_ref[...],
                     preferred_element_type=F32).reshape(S, B, H)

    # Time-major attention — no in-kernel batch relayouts.
    att_scores = jnp.einsum('tbh,sbh->tbs', hs, keys_p,
                            preferred_element_type=F32)                         # [T, B, S]
    neg_bias = (key_mask_ref[...] - 1.0) * 1e9                                  # 0 valid / -1e9 pad
    att_scores = att_scores + neg_bias[None, :, :]
    smax = jnp.max(att_scores, axis=-1, keepdims=True)
    e = jnp.exp(att_scores - smax)
    # Exact divide (attention weights are a model output -> parity with f32 reference).
    w_att = e / jnp.sum(e, axis=-1, keepdims=True)                              # [T, B, S]
    context = jnp.einsum('tbs,sbh->tbh', w_att, enc_out,
                         preferred_element_type=F32)                            # [T, B, H]

    # hidden_to_output(cat([h, context], -1)): two bulk matmuls into a lane-dense Vp head,
    # then bulk log_softmax.  Padded bias columns are -1e9 so they vanish in the LSE.
    logits = (jnp.dot(hs.reshape(T * B, H), wout_h_ref[...], preferred_element_type=F32)
              + jnp.dot(context.reshape(T * B, H), wout_c_ref[...], preferred_element_type=F32)
              + bout_ref[...])                                                  # [T*B, Vp]
    lmax = jnp.max(logits, axis=-1, keepdims=True)
    lse = jnp.log(jnp.sum(jnp.exp(logits - lmax), axis=-1, keepdims=True)) + lmax
    scores_ref[...] = (logits - lse).reshape(T, B, Vp)                          # log_softmax

    # Single full lane-dense store of the attention weights (time-major).
    attn_ref[...] = w_att


# ------------------------------------------------------------------
# Parameter construction (deterministic, synthetic)
# ------------------------------------------------------------------
def init_params(key, cfg):
    E, H = cfg['embedding_dim'], cfg['hidden']
    Vi, Vo = cfg['input_vocab'], cfg['target_vocab']
    ks = jax.random.split(key, 20)

    def nrm(k, shape, scale=0.1):
        return (scale * jax.random.normal(k, shape)).astype(jnp.float32)

    p = {}
    p['w_pos'] = nrm(ks[0], (3, H));        p['b_pos'] = nrm(ks[1], (1, H))
    p['w_mlp1'] = nrm(ks[2], (H, H));       p['b_mlp1'] = nrm(ks[3], (1, H))
    p['w_mlp2'] = nrm(ks[4], (H, H));       p['b_mlp2'] = nrm(ks[5], (1, H))
    p['enc_embedding'] = nrm(ks[6], (Vi, E)).at[cfg['input_pad_idx']].set(0.0)
    p['enc_wif'] = nrm(ks[7], (E, 4 * H));  p['enc_whf'] = nrm(ks[8], (H, 4 * H))
    p['enc_bf'] = nrm(ks[9], (1, 4 * H))
    p['enc_wib'] = nrm(ks[10], (E, 4 * H)); p['enc_whb'] = nrm(ks[11], (H, 4 * H))
    p['enc_bb'] = nrm(ks[12], (1, 4 * H))
    p['w_bridge'] = nrm(ks[13], (2 * H, H)); p['b_bridge'] = nrm(ks[14], (1, H))
    p['dec_embedding'] = nrm(ks[15], (Vo, H)).at[cfg['target_pad_idx']].set(0.0)
    p['dec_wi'] = nrm(ks[16], (H, 4 * H));  p['dec_wh'] = nrm(ks[17], (H, 4 * H))
    p['dec_b'] = nrm(ks[18], (1, 4 * H))
    ks2 = jax.random.split(ks[19], 4)
    p['attn_wk'] = nrm(ks2[0], (H, H))
    p['wout_h'] = nrm(ks2[1], (H, Vo));     p['wout_c'] = nrm(ks2[2], (H, Vo))
    p['bout'] = nrm(ks2[3], (1, Vo))
    return p


# ------------------------------------------------------------------
# PlannerModel.forward
# ------------------------------------------------------------------
def planner_forward(params, cfg, input_tensor, input_lengths, agent_position,
                    agent_direction, target_position, planner_target_tensor,
                    planner_target_lengths):
    H = cfg['hidden']
    V = cfg['target_vocab']
    B, S = input_tensor.shape
    T = planner_target_tensor.shape[1]
    Vp = max(128, ((V + 127) // 128) * 128)   # lane-dense output head width

    # prepare_inputs: cat([agent_direction, agent_position, target_position], dim=1) -> [B, 3]
    pos = jnp.stack([agent_direction, agent_position, target_position], axis=1).astype(jnp.float32)

    # Embedding lookups stay in XLA (gather); produced directly time-major.
    emb_sbE = jnp.take(params['enc_embedding'], input_tensor.T, axis=0)               # [S, B, E]
    dec_emb_tbH = jnp.take(params['dec_embedding'], planner_target_tensor.T, axis=0)  # [T, B, H]

    key_mask = (jnp.arange(S)[None, :] < input_lengths[:, None]).astype(jnp.float32)  # [B, S]
    enc_mask_sb1 = key_mask.T[:, :, None]                                             # [S, B, 1]

    # Fused fwd|bwd encoder input projection ([E, 8H]) and lane-padded output head.
    enc_wi8 = jnp.concatenate([params['enc_wif'], params['enc_wib']], axis=1)          # [E, 8H]
    enc_b8 = jnp.concatenate([params['enc_bf'], params['enc_bb']], axis=1)             # [1, 8H]
    wout_h_pad = jnp.zeros((H, Vp), jnp.float32).at[:, :V].set(params['wout_h'])
    wout_c_pad = jnp.zeros((H, Vp), jnp.float32).at[:, :V].set(params['wout_c'])
    bout_pad = jnp.full((1, Vp), -1e9, jnp.float32).at[:, :V].set(params['bout'])

    kernel = functools.partial(planner_fused_kernel, hidden_size=H)
    scores_tbv, attn = pl.pallas_call(
        kernel,
        out_shape=(jax.ShapeDtypeStruct((T, B, Vp), jnp.float32),
                   jax.ShapeDtypeStruct((T, B, S), jnp.float32)),
        in_specs=[_vmem()] * 24,
        out_specs=(_vmem(), _vmem()),
        scratch_shapes=[
            pltpu.VMEM((S, B, H), jnp.float32),       # forward encoder outputs
            pltpu.VMEM((S, B, H), jnp.float32),       # backward encoder outputs
            pltpu.VMEM((S, B, 8 * H), jnp.float32),   # fused hoisted encoder gate projections
            pltpu.VMEM((T, B, H), jnp.float32),       # decoder hidden states
            pltpu.VMEM((T, B, 4 * H), jnp.float32),   # hoisted decoder gate projections
        ],
    )(pos, emb_sbE, enc_mask_sb1, key_mask, dec_emb_tbH,
      params['w_pos'], params['b_pos'], params['w_mlp1'], params['b_mlp1'],
      params['w_mlp2'], params['b_mlp2'],
      enc_wi8, enc_b8, params['enc_whf'], params['enc_whb'],
      params['w_bridge'], params['b_bridge'],
      params['attn_wk'],
      params['dec_wi'], params['dec_wh'], params['dec_b'],
      wout_h_pad, wout_c_pad, bout_pad)

    # forward(): decoder_output.transpose(0, 1) -> [B, T, V]; V-slice removes lane padding.
    scores = jnp.transpose(scores_tbv, (1, 0, 2))[:, :, :V]
    return {'planner_target_tensor_scores': scores,
            'decoder_attention_weights': attn}


if __name__ == "__main__":
    cfg = dict(input_vocab=12, target_vocab=10, embedding_dim=32, hidden=32,
               input_pad_idx=0, target_pad_idx=0, target_sos_idx=1, target_eos_idx=2)

    key = jax.random.PRNGKey(0)
    pkey, dkey = jax.random.split(key)
    params = init_params(pkey, cfg)

    B, S, T = 2, 8, 8
    k1, k2 = jax.random.split(dkey)
    input_lengths = jnp.array([8, 5], dtype=jnp.int32)               # sorted descending (packing)
    target_lengths = jnp.array([8, 6], dtype=jnp.int32)

    input_tensor = jax.random.randint(k1, (B, S), 3, cfg['input_vocab'], dtype=jnp.int32)
    input_tensor = jnp.where(jnp.arange(S)[None, :] < input_lengths[:, None],
                             input_tensor, cfg['input_pad_idx'])

    planner_target = jax.random.randint(k2, (B, T), 3, cfg['target_vocab'], dtype=jnp.int32)
    planner_target = planner_target.at[:, 0].set(cfg['target_sos_idx'])
    planner_target = jnp.where(jnp.arange(T)[None, :] < target_lengths[:, None],
                               planner_target, cfg['target_pad_idx'])

    agent_position = jnp.array([3.0, 10.0], dtype=jnp.float32)
    target_position = jnp.array([7.0, 21.0], dtype=jnp.float32)
    agent_direction = jnp.array([1.0, 2.0], dtype=jnp.float32)

    fwd = jax.jit(lambda p, *args: planner_forward(p, cfg, *args))
    out = fwd(params, input_tensor, input_lengths, agent_position,
              agent_direction, target_position, planner_target, target_lengths)

    scores = jax.block_until_ready(out['planner_target_tensor_scores'])
    attn = jax.block_until_ready(out['decoder_attention_weights'])

    assert scores.shape == (B, T, cfg['target_vocab'])
    assert attn.shape == (T, B, S)
    assert bool(jnp.all(jnp.isfinite(scores)))
    assert bool(jnp.all(jnp.isfinite(attn)))
    # attention rows over valid keys must sum to ~1 (exact softmax divide)
    assert bool(jnp.all(jnp.abs(jnp.sum(attn, axis=-1) - 1.0) < 1e-5))
    print("KERNEL_OK")
</pallas_src>

<mosaic_0001>
module attributes {stable_mosaic.version = 11 : i64} {
  func.func @planner_fused_kernel(%arg0: memref<2x3xf32, #tpu.memory_space<vmem>>, %arg1: memref<8x2x32xf32, #tpu.memory_space<vmem>>, %arg2: memref<8x2x1xf32, #tpu.memory_space<vmem>>, %arg3: memref<2x8xf32, #tpu.memory_space<vmem>>, %arg4: memref<8x2x32xf32, #tpu.memory_space<vmem>>, %arg5: memref<3x32xf32, #tpu.memory_space<vmem>>, %arg6: memref<1x32xf32, #tpu.memory_space<vmem>>, %arg7: memref<32x32xf32, #tpu.memory_space<vmem>>, %arg8: memref<1x32xf32, #tpu.memory_space<vmem>>, %arg9: memref<32x32xf32, #tpu.memory_space<vmem>>, %arg10: memref<1x32xf32, #tpu.memory_space<vmem>>, %arg11: memref<32x256xf32, #tpu.memory_space<vmem>>, %arg12: memref<1x256xf32, #tpu.memory_space<vmem>>, %arg13: memref<32x128xf32, #tpu.memory_space<vmem>>, %arg14: memref<32x128xf32, #tpu.memory_space<vmem>>, %arg15: memref<64x32xf32, #tpu.memory_space<vmem>>, %arg16: memref<1x32xf32, #tpu.memory_space<vmem>>, %arg17: memref<32x32xf32, #tpu.memory_space<vmem>>, %arg18: memref<32x128xf32, #tpu.memory_space<vmem>>, %arg19: memref<32x128xf32, #tpu.memory_space<vmem>>, %arg20: memref<1x128xf32, #tpu.memory_space<vmem>>, %arg21: memref<32x128xf32, #tpu.memory_space<vmem>>, %arg22: memref<32x128xf32, #tpu.memory_space<vmem>>, %arg23: memref<1x128xf32, #tpu.memory_space<vmem>>, %arg24: memref<8x2x128xf32, #tpu.memory_space<vmem>>, %arg25: memref<8x2x8xf32, #tpu.memory_space<vmem>>, %arg26: memref<8x2x32xf32, #tpu.memory_space<vmem>>, %arg27: memref<8x2x32xf32, #tpu.memory_space<vmem>>, %arg28: memref<8x2x256xf32, #tpu.memory_space<vmem>>, %arg29: memref<8x2x32xf32, #tpu.memory_space<vmem>>, %arg30: memref<8x2x128xf32, #tpu.memory_space<vmem>>) attributes {dimension_semantics = [], scalar_prefetch = 0 : i64, scratch_operands = 5 : i64, tpu.core_type = #tpu.core_type<tc>} {
    %c0 = arith.constant 0 : index
    %c0_0 = arith.constant 0 : index
    %0 = vector.load %arg0[%c0, %c0_0] : memref<2x3xf32, #tpu.memory_space<vmem>>, vector<2x3xf32>
    %c0_1 = arith.constant 0 : index
    %c0_2 = arith.constant 0 : index
    %1 = vector.load %arg5[%c0_1, %c0_2] : memref<3x32xf32, #tpu.memory_space<vmem>>, vector<3x32xf32>
    %cst = arith.constant dense<0.000000e+00> : vector<2x32xf32>
    %2 = tpu.matmul %0, %1, %cst {dimension_numbers = #tpu.dot_dimension_numbers<[1], [0], [0], [1], [0, 0, 1, 1], [], []>} : vector<2x3xf32>, vector<3x32xf32>, vector<2x32xf32> -> vector<2x32xf32>
    %c0_3 = arith.constant 0 : index
    %c0_4 = arith.constant 0 : index
    %3 = vector.load %arg6[%c0_3, %c0_4] : memref<1x32xf32, #tpu.memory_space<vmem>>, vector<1x32xf32>
    %4 = vector.broadcast %3 : vector<1x32xf32> to vector<2x32xf32>
    %5 = arith.addf %2, %4 : vector<2x32xf32>
    %c0_5 = arith.constant 0 : index
    %c0_6 = arith.constant 0 : index
    %6 = vector.load %arg7[%c0_5, %c0_6] : memref<32x32xf32, #tpu.memory_space<vmem>>, vector<32x32xf32>
    %cst_7 = arith.constant dense<0.000000e+00> : vector<2x32xf32>
    %7 = tpu.matmul %5, %6, %cst_7 {dimension_numbers = #tpu.dot_dimension_numbers<[1], [0], [0], [1], [0, 0, 1, 1], [], []>} : vector<2x32xf32>, vector<32x32xf32>, vector<2x32xf32> -> vector<2x32xf32>
    %c0_8 = arith.constant 0 : index
    %c0_9 = arith.constant 0 : index
    %8 = vector.load %arg8[%c0_8, %c0_9] : memref<1x32xf32, #tpu.memory_space<vmem>>, vector<1x32xf32>
    %9 = vector.broadcast %8 : vector<1x32xf32> to vector<2x32xf32>
    %10 = arith.addf %7, %9 : vector<2x32xf32>
    %cst_10 = arith.constant 0.000000e+00 : f32
    %11 = vector.broadcast %cst_10 : f32 to vector<2x32xf32>
    %12 = arith.maximumf %10, %11 : vector<2x32xf32>
    %c0_11 = arith.constant 0 : index
    %c0_12 = arith.constant 0 : index
    %13 = vector.load %arg9[%c0_11, %c0_12] : memref<32x32xf32, #tpu.memory_space<vmem>>, vector<32x32xf32>
    %cst_13 = arith.constant dense<0.000000e+00> : vector<2x32xf32>
    %14 = tpu.matmul %12, %13, %cst_13 {dimension_numbers = #tpu.dot_dimension_numbers<[1], [0], [0], [1], [0, 0, 1, 1], [], []>} : vector<2x32xf32>, vector<32x32xf32>, vector<2x32xf32> -> vector<2x32xf32>
    %c0_14 = arith.constant 0 : index
    %c0_15 = arith.constant 0 : index
    %15 = vector.load %arg10[%c0_14, %c0_15] : memref<1x32xf32, #tpu.memory_space<vmem>>, vector<1x32xf32>
    %16 = vector.broadcast %15 : vector<1x32xf32> to vector<2x32xf32>
    %17 = arith.addf %14, %16 : vector<2x32xf32>
    %c0_16 = arith.constant 0 : index
    %c0_17 = arith.constant 0 : index
    %c0_18 = arith.constant 0 : index
    %18 = vector.load %arg1[%c0_16, %c0_17, %c0_18] : memref<8x2x32xf32, #tpu.memory_space<vmem>>, vector<8x2x32xf32>
    %19 = vector.shape_cast %18 : vector<8x2x32xf32> to vector<16x32xf32>
    %cst_19 = arith.constant 0.000000e+00 : f32
    %20 = vector.broadcast %cst_19 : f32 to vector<2x32xf32>
    %c0_20 = arith.constant 0 : index
    %c0_21 = arith.constant 0 : index
    %21 = vector.load %arg11[%c0_20, %c0_21] : memref<32x256xf32, #tpu.memory_space<vmem>>, vector<32x256xf32>
    %cst_22 = arith.constant dense<0.000000e+00> : vector<16x256xf32>
    %22 = tpu.matmul %19, %21, %cst_22 {dimension_numbers = #tpu.dot_dimension_numbers<[1], [0], [0], [1], [0, 0, 1, 1], [], []>} : vector<16x32xf32>, vector<32x256xf32>, vector<16x256xf32> -> vector<16x256xf32>
    %c0_23 = arith.constant 0 : index
    %c0_24 = arith.constant 0 : index
    %23 = vector.load %arg12[%c0_23, %c0_24] : memref<1x256xf32, #tpu.memory_space<vmem>>, vector<1x256xf32>
    %24 = vector.broadcast %23 : vector<1x256xf32> to vector<16x256xf32>
    %25 = arith.addf %22, %24 : vector<16x256xf32>
    %26 = vector.shape_cast %25 : vector<16x256xf32> to vector<8x2x256xf32>
    %c0_25 = arith.constant 0 : index
    %c0_26 = arith.constant 0 : index
    %c0_27 = arith.constant 0 : index
    %27 = vector.load %arg28[%c0_25, %c0_26, %c0_27] : memref<8x2x256xf32, #tpu.memory_space<vmem>>, vector<8x2x256xf32>
    tpu.vector_store %arg28[%c0_25, %c0_26, %c0_27], %26 {strides = array<i32>} : memref<8x2x256xf32, #tpu.memory_space<vmem>>, vector<8x2x256xf32>,
    %c0_28 = arith.constant 0 : index
    %c0_29 = arith.constant 0 : index
    %28 = vector.load %arg13[%c0_28, %c0_29] : memref<32x128xf32, #tpu.memory_space<vmem>>, vector<32x128xf32>
    %c0_30 = arith.constant 0 : index
    %c0_31 = arith.constant 0 : index
    %29 = vector.load %arg14[%c0_30, %c0_31] : memref<32x128xf32, #tpu.memory_space<vmem>>, vector<32x128xf32>
    %c0_i32 = arith.constant 0 : i32
    %c7_i32 = arith.constant 7 : i32
    %30 = arith.subi %c7_i32, %c0_i32 : i32
    %31 = arith.index_cast %c0_i32 : i32 to index
    %c0_32 = arith.constant 0 : index
    %c0_33 = arith.constant 0 : index
    %32 = vector.load %arg2[%31, %c0_32, %c0_33] : memref<8x2x1xf32, #tpu.memory_space<vmem>>, vector<1x2x1xf32>
    %33 = vector.shape_cast %32 : vector<1x2x1xf32> to vector<2x1xf32>
    %34 = arith.index_cast %30 : i32 to index
    %c0_34 = arith.constant 0 : index
    %c0_35 = arith.constant 0 : index
    %35 = vector.load %arg2[%34, %c0_34, %c0_35] : memref<8x2x1xf32, #tpu.memory_space<vmem>>, vector<1x2x1xf32>
    %36 = vector.shape_cast %35 : vector<1x2x1xf32> to vector<2x1xf32>
    %37 = arith.index_cast %c0_i32 : i32 to index
    %c0_36 = arith.constant 0 : index
    %c0_37 = arith.constant 0 : index
    %38 = vector.load %arg28[%37, %c0_36, %c0_37] : memref<8x2x256xf32, #tpu.memory_space<vmem>>, vector<1x2x256xf32>
    %39 = vector.shape_cast %38 : vector<1x2x256xf32> to vector<2x256xf32>
    %40 = arith.index_cast %30 : i32 to index
    %c0_38 = arith.constant 0 : index
    %c0_39 = arith.constant 0 : index
    %41 = vector.load %arg28[%40, %c0_38, %c0_39] : memref<8x2x256xf32, #tpu.memory_space<vmem>>, vector<1x2x256xf32>
    %42 = vector.shape_cast %41 : vector<1x2x256xf32> to vector<2x256xf32>
    %43 = vector.extract_strided_slice %39 {offsets = [0, 0], sizes = [2, 128], strides = [1, 1]} : vector<2x256xf32> to vector<2x128xf32>
    %cst_40 = arith.constant dense<0.000000e+00> : vector<2x128xf32>
    %44 = tpu.matmul %20, %28, %cst_40 {dimension_numbers = #tpu.dot_dimension_numbers<[1], [0], [0], [1], [0, 0, 1, 1], [], []>} : vector<2x32xf32>, vector<32x128xf32>, vector<2x128xf32> -> vector<2x128xf32>
    %45 = arith.addf %43, %44 : vector<2x128xf32>
    %46 = vector.extract_strided_slice %42 {offsets = [0, 128], sizes = [2, 128], strides = [1, 1]} : vector<2x256xf32> to vector<2x128xf32>
    %cst_41 = arith.constant dense<0.000000e+00> : vector<2x128xf32>
    %47 = tpu.matmul %20, %29, %cst_41 {dimension_numbers = #tpu.dot_dimension_numbers<[1], [0], [0], [1], [0, 0, 1, 1], [], []>} : vector<2x32xf32>, vector<32x128xf32>, vector<2x128xf32> -> vector<2x128xf32>
    %48 = arith.addf %46, %47 : vector<2x128xf32>
    %49 = arith.negf %45 : vector<2x128xf32>
    %50 = math.exp %49 : vector<2x128xf32>
    %cst_42 = arith.constant 1.000000e+00 : f32
    %51 = vector.broadcast %cst_42 : f32 to vector<2x128xf32>
    %52 = arith.addf %51, %50 : vector<2x128xf32>
    %53 = arith.divf %51, %52 : vector<2x128xf32>
    %54 = math.tanh %45 : vector<2x128xf32>
    %55 = vector.extract_strided_slice %53 {offsets = [0, 0], sizes = [2, 32], strides = [1, 1]} : vector<2x128xf32> to vector<2x32xf32>
    %56 = vector.extract_strided_slice %53 {offsets = [0, 32], sizes = [2, 32], strides = [1, 1]} : vector<2x128xf32> to vector<2x32xf32>
    %57 = vector.extract_strided_slice %54 {offsets = [0, 64], sizes = [2, 32], strides = [1, 1]} : vector<2x128xf32> to vector<2x32xf32>
    %58 = vector.extract_strided_slice %53 {offsets = [0, 96], sizes = [2, 32], strides = [1, 1]} : vector<2x128xf32> to vector<2x32xf32>
    %59 = arith.mulf %56, %20 : vector<2x32xf32>
    %60 = arith.mulf %55, %57 : vector<2x32xf32>
    %61 = arith.addf %59, %60 : vector<2x32xf32>
    %62 = math.tanh %61 : vector<2x32xf32>
    %63 = arith.mulf %58, %62 : vector<2x32xf32>
    %64 = arith.negf %48 : vector<2x128xf32>
    %65 = math.exp %64 : vector<2x128xf32>
    %cst_43 = arith.constant 1.000000e+00 : f32
    %66 = vector.broadcast %cst_43 : f32 to vector<2x128xf32>
    %67 = arith.addf %66, %65 : vector<2x128xf32>
    %68 = arith.divf %66, %67 : vector<2x128xf32>
    %69 = math.tanh %48 : vector<2x128xf32>
    %70 = vector.extract_strided_slice %68 {offsets = [0, 0], sizes = [2, 32], strides = [1, 1]} : vector<2x128xf32> to vector<2x32xf32>
    %71 = vector.extract_strided_slice %68 {offsets = [0, 32], sizes = [2, 32], strides = [1, 1]} : vector<2x128xf32> to vector<2x32xf32>
    %72 = vector.extract_strided_slice %69 {offsets = [0, 64], sizes = [2, 32], strides = [1, 1]} : vector<2x128xf32> to vector<2x32xf32>
    %73 = vector.extract_strided_slice %68 {offsets = [0, 96], sizes = [2, 32], strides = [1, 1]} : vector<2x128xf32> to vector<2x32xf32>
    %74 = arith.mulf %71, %20 : vector<2x32xf32>
    %75 = arith.mulf %70, %72 : vector<2x32xf32>
    %76 = arith.addf %74, %75 : vector<2x32xf32>
    %77 = math.tanh %76 : vector<2x32xf32>
    %78 = arith.mulf %73, %77 : vector<2x32xf32>
    %79 = vector.broadcast %33 : vector<2x1xf32> to vector<2x32xf32>
    %80 = arith.mulf %79, %63 : vector<2x32xf32>
    %81 = arith.index_cast %c0_i32 : i32 to index
    %c0_44 = arith.constant 0 : index
    %c0_45 = arith.constant 0 : index
    %82 = vector.load %arg26[%81, %c0_44, %c0_45] : memref<8x2x32xf32, #tpu.memory_space<vmem>>, vector<1x2x32xf32>
    %83 = vector.shape_cast %82 : vector<1x2x32xf32> to vector<2x32xf32>
    %84 = vector.shape_cast %80 : vector<2x32xf32> to vector<1x2x32xf32>
    tpu.vector_store %arg26[%81, %c0_44, %c0_45], %84 {strides = array<i32>} : memref<8x2x32xf32, #tpu.memory_space<vmem>>, vector<1x2x32xf32>,
    %85 = vector.broadcast %36 : vector<2x1xf32> to vector<2x32xf32>
    %86 = arith.mulf %85, %78 : vector<2x32xf32>
    %87 = arith.index_cast %30 : i32 to index
    %c0_46 = arith.constant 0 : index
    %c0_47 = arith.constant 0 : index
    %88 = vector.load %arg27[%87, %c0_46, %c0_47] : memref<8x2x32xf32, #tpu.memory_space<vmem>>, vector<1x2x32xf32>
    %89 = vector.shape_cast %88 : vector<1x2x32xf32> to vector<2x32xf32>
    %90 = vector.shape_cast %86 : vector<2x32xf32> to vector<1x2x32xf32>
    tpu.vector_store %arg27[%87, %c0_46, %c0_47], %90 {strides = array<i32>} : memref<8x2x32xf32, #tpu.memory_space<vmem>>, vector<1x2x32xf32>,
    %91 = vector.broadcast %33 : vector<2x1xf32> to vector<2x32xf32>
    %92 = arith.mulf %91, %63 : vector<2x32xf32>
    %cst_48 = arith.constant 1.000000e+00 : f32
    %93 = vector.broadcast %cst_48 : f32 to vector<2x1xf32>
    %94 = arith.subf %93, %33 : vector<2x1xf32>
    %95 = vector.broadcast %94 : vector<2x1xf32> to vector<2x32xf32>
    %96 = arith.mulf %95, %20 : vector<2x32xf32>
    %97 = arith.addf %92, %96 : vector<2x32xf32>
    %98 = vector.broadcast %33 : vector<2x1xf32> to vector<2x32xf32>
    %99 = arith.mulf %98, %61 : vector<2x32xf32>
    %cst_49 = arith.constant 1.000000e+00 : f32
    %100 = vector.broadcast %cst_49 : f32 to vector<2x1xf32>
    %101 = arith.subf %100, %33 : vector<2x1xf32>
    %102 = vector.broadcast %101 : vector<2x1xf32> to vector<2x32xf32>
    %103 = arith.mulf %102, %20 : vector<2x32xf32>
    %104 = arith.addf %99, %103 : vector<2x32xf32>
    %105 = vector.broadcast %36 : vector<2x1xf32> to vector<2x32xf32>
    %106 = arith.mulf %105, %78 : vector<2x32xf32>
    %cst_50 = arith.constant 1.000000e+00 : f32
    %107 = vector.broadcast %cst_50 : f32 to vector<2x1xf32>
    %108 = arith.subf %107, %36 : vector<2x1xf32>
    %109 = vector.broadcast %108 : vector<2x1xf32> to vector<2x32xf32>
    %110 = arith.mulf %109, %20 : vector<2x32xf32>
    %111 = arith.addf %106, %110 : vector<2x32xf32>
    %112 = vector.broadcast %36 : vector<2x1xf32> to vector<2x32xf32>
    %113 = arith.mulf %112, %76 : vector<2x32xf32>
    %cst_51 = arith.constant 1.000000e+00 : f32
    %114 = vector.broadcast %cst_51 : f32 to vector<2x1xf32>
    %115 = arith.subf %114, %36 : vector<2x1xf32>
    %116 = vector.broadcast %115 : vector<2x1xf32> to vector<2x32xf32>
    %117 = arith.mulf %116, %20 : vector<2x32xf32>
    %118 = arith.addf %113, %117 : vector<2x32xf32>
    %c1_i32 = arith.constant 1 : i32
    %c7_i32_52 = arith.constant 7 : i32
    %119 = arith.subi %c7_i32_52, %c1_i32 : i32
    %120 = arith.index_cast %c1_i32 : i32 to index
    %c0_53 = arith.constant 0 : index
    %c0_54 = arith.constant 0 : index
    %121 = vector.load %arg2[%120, %c0_53, %c0_54] : memref<8x2x1xf32, #tpu.memory_space<vmem>>, vector<1x2x1xf32>
    %122 = vector.shape_cast %121 : vector<1x2x1xf32> to vector<2x1xf32>
    %123 = arith.index_cast %119 : i32 to index
    %c0_55 = arith.constant 0 : index
    %c0_56 = arith.constant 0 : index
    %124 = vector.load %arg2[%123, %c0_55, %c0_56] : memref<8x2x1xf32, #tpu.memory_space<vmem>>, vector<1x2x1xf32>
    %125 = vector.shape_cast %124 : vector<1x2x1xf32> to vector<2x1xf32>
    %126 = arith.index_cast %c1_i32 : i32 to index
    %c0_57 = arith.constant 0 : index
    %c0_58 = arith.constant 0 : index
    %127 = vector.load %arg28[%126, %c0_57, %c0_58] : memref<8x2x256xf32, #tpu.memory_space<vmem>>, vector<1x2x256xf32>
    %128 = vector.shape_cast %127 : vector<1x2x256xf32> to vector<2x256xf32>
    %129 = arith.index_cast %119 : i32 to index
    %c0_59 = arith.constant 0 : index
    %c0_60 = arith.constant 0 : index
    %130 = vector.load %arg28[%129, %c0_59, %c0_60] : memref<8x2x256xf32, #tpu.memory_space<vmem>>, vector<1x2x256xf32>
    %131 = vector.shape_cast %130 : vector<1x2x256xf32> to vector<2x256xf32>
    %132 = vector.extract_strided_slice %128 {offsets = [0, 0], sizes = [2, 128], strides = [1, 1]} : vector<2x256xf32> to vector<2x128xf32>
    %cst_61 = arith.constant dense<0.000000e+00> : vector<2x128xf32>
    %133 = tpu.matmul %97, %28, %cst_61 {dimension_numbers = #tpu.dot_dimension_numbers<[1], [0], [0], [1], [0, 0, 1, 1], [], []>} : vector<2x32xf32>, vector<32x128xf32>, vector<2x128xf32> -> vector<2x128xf32>
    %134 = arith.addf %132, %133 : vector<2x128xf32>
    %135 = vector.extract_strided_slice %131 {offsets = [0, 128], sizes = [2, 128], strides = [1, 1]} : vector<2x256xf32> to vector<2x128xf32>
    %cst_62 = arith.constant dense<0.000000e+00> : vector<2x128xf32>
    %136 = tpu.matmul %111, %29, %cst_62 {dimension_numbers = #tpu.dot_dimension_numbers<[1], [0], [0], [1], [0, 0, 1, 1], [], []>} : vector<2x32xf32>, vector<32x128xf32>, vector<2x128xf32> -> vector<2x128xf32>
    %137 = arith.addf %135, %136 : vector<2x128xf32>
    %138 = arith.negf %134 : vector<2x128xf32>
    %139 = math.exp %138 : vector<2x128xf32>
    %cst_63 = arith.constant 1.000000e+00 : f32
    %140 = vector.broadcast %cst_63 : f32 to vector<2x128xf32>
    %141 = arith.addf %140, %139 : vector<2x128xf32>
    %142 = arith.divf %140, %141 : vector<2x128xf32>
    %143 = math.tanh %134 : vector<2x128xf32>
    %144 = vector.extract_strided_slice %142 {offsets = [0, 0], sizes = [2, 32], strides = [1, 1]} : vector<2x128xf32> to vector<2x32xf32>
    %145 = vector.extract_strided_slice %142 {offsets = [0, 32], sizes = [2, 32], strides = [1, 1]} : vector<2x128xf32> to vector<2x32xf32>
    %146 = vector.extract_strided_slice %143 {offsets = [0, 64], sizes = [2, 32], strides = [1, 1]} : vector<2x128xf32> to vector<2x32xf32>
    %147 = vector.extract_strided_slice %142 {offsets = [0, 96], sizes = [2, 32], strides = [1, 1]} : vector<2x128xf32> to vector<2x32xf32>
    %148 = arith.mulf %145, %104 : vector<2x32xf32>
    %149 = arith.mulf %144, %146 : vector<2x32xf32>
    %150 = arith.addf %148, %149 : vector<2x32xf32>
    %151 = math.tanh %150 : vector<2x32xf32>
    %152 = arith.mulf %147, %151 : vector<2x32xf32>
    %153 = arith.negf %137 : vector<2x128xf32>
    %154 = math.exp %153 : vector<2x128xf32>
    %cst_64 = arith.constant 1.000000e+00 : f32
    %155 = vector.broadcast %cst_64 : f32 to vector<2x128xf32>
    %156 = arith.addf %155, %154 : vector<2x128xf32>
    %157 = arith.divf %155, %156 : vector<2x128xf32>
    %158 = math.tanh %137 : vector<2x128xf32>
    %159 = vector.extract_strided_slice %157 {offsets = [0, 0], sizes = [2, 32], strides = [1, 1]} : vector<2x128xf32> to vector<2x32xf32>
    %160 = vector.extract_strided_slice %157 {offsets = [0, 32], sizes = [2, 32], strides = [1, 1]} : vector<2x128xf32> to vector<2x32xf32>
    %161 = vector.extract_strided_slice %158 {offsets = [0, 64], sizes = [2, 32], strides = [1, 1]} : vector<2x128xf32> to vector<2x32xf32>
    %162 = vector.extract_strided_slice %157 {offsets = [0, 96], sizes = [2, 32], strides = [1, 1]} : vector<2x128xf32> to vector<2x32xf32>
    %163 = arith.mulf %160, %118 : vector<2x32xf32>
    %164 = arith.mulf %159, %161 : vector<2x32xf32>
    %165 = arith.addf %163, %164 : vector<2x32xf32>
    %166 = math.tanh %165 : vector<2x32xf32>
    %167 = arith.mulf %162, %166 : vector<2x32xf32>
    %168 = vector.broadcast %122 : vector<2x1xf32> to vector<2x32xf32>
    %169 = arith.mulf %168, %152 : vector<2x32xf32>
    %170 = arith.index_cast %c1_i32 : i32 to index
    %c0_65 = arith.constant 0 : index
    %c0_66 = arith.constant 0 : index
    %171 = vector.load %arg26[%170, %c0_65, %c0_66] : memref<8x2x32xf32, #tpu.memory_space<vmem>>, vector<1x2x32xf32>
    %172 = vector.shape_cast %171 : vector<1x2x32xf32> to vector<2x32xf32>
    %173 = vector.shape_cast %169 : vector<2x32xf32> to vector<1x2x32xf32>
    tpu.vector_store %arg26[%170, %c0_65, %c0_66], %173 {strides = array<i32>} : memref<8x2x32xf32, #tpu.memory_space<vmem>>, vector<1x2x32xf32>,
    %174 = vector.broadcast %125 : vector<2x1xf32> to vector<2x32xf32>
    %175 = arith.mulf %174, %167 : vector<2x32xf32>
    %176 = arith.index_cast %119 : i32 to index
    %c0_67 = arith.constant 0 : index
    %c0_68 = arith.constant 0 : index
    %177 = vector.load %arg27[%176, %c0_67, %c0_68] : memref<8x2x32xf32, #tpu.memory_space<vmem>>, vector<1x2x32xf32>
    %178 = vector.shape_cast %177 : vector<1x2x32xf32> to vector<2x32xf32>
    %179 = vector.shape_cast %175 : vector<2x32xf32> to vector<1x2x32xf32>
    tpu.vector_store %arg27[%176, %c0_67, %c0_68], %179 {strides = array<i32>} : memref<8x2x32xf32, #tpu.memory_space<vmem>>, vector<1x2x32xf32>,
    %180 = vector.broadcast %122 : vector<2x1xf32> to vector<2x32xf32>
    %181 = arith.mulf %180, %152 : vector<2x32xf32>
    %cst_69 = arith.constant 1.000000e+00 : f32
    %182 = vector.broadcast %cst_69 : f32 to vector<2x1xf32>
    %183 = arith.subf %182, %122 : vector<2x1xf32>
    %184 = vector.broadcast %183 : vector<2x1xf32> to vector<2x32xf32>
    %185 = arith.mulf %184, %97 : vector<2x32xf32>
    %186 = arith.addf %181, %185 : vector<2x32xf32>
    %187 = vector.broadcast %122 : vector<2x1xf32> to vector<2x32xf32>
    %188 = arith.mulf %187, %150 : vector<2x32xf32>
    %cst_70 = arith.constant 1.000000e+00 : f32
    %189 = vector.broadcast %cst_70 : f32 to vector<2x1xf32>
    %190 = arith.subf %189, %122 : vector<2x1xf32>
    %191 = vector.broadcast %190 : vector<2x1xf32> to vector<2x32xf32>
    %192 = arith.mulf %191, %104 : vector<2x32xf32>
    %193 = arith.addf %188, %192 : vector<2x32xf32>
    %194 = vector.broadcast %125 : vector<2x1xf32> to vector<2x32xf32>
    %195 = arith.mulf %194, %167 : vector<2x32xf32>
    %cst_71 = arith.constant 1.000000e+00 : f32
    %196 = vector.broadcast %cst_71 : f32 to vector<2x1xf32>
    %197 = arith.subf %196, %125 : vector<2x1xf32>
    %198 = vector.broadcast %197 : vector<2x1xf32> to vector<2x32xf32>
    %199 = arith.mulf %198, %111 : vector<2x32xf32>
    %200 = arith.addf %195, %199 : vector<2x32xf32>
    %201 = vector.broadcast %125 : vector<2x1xf32> to vector<2x32xf32>
    %202 = arith.mulf %201, %165 : vector<2x32xf32>
    %cst_72 = arith.constant 1.000000e+00 : f32
    %203 = vector.broadcast %cst_72 : f32 to vector<2x1xf32>
    %204 = arith.subf %203, %125 : vector<2x1xf32>
    %205 = vector.broadcast %204 : vector<2x1xf32> to vector<2x32xf32>
    %206 = arith.mulf %205, %118 : vector<2x32xf32>
    %207 = arith.addf %202, %206 : vector<2x32xf32>
    %c2_i32 = arith.constant 2 : i32
    %c7_i32_73 = arith.constant 7 : i32
    %208 = arith.subi %c7_i32_73, %c2_i32 : i32
    %209 = arith.index_cast %c2_i32 : i32 to index
    %c0_74 = arith.constant 0 : index
    %c0_75 = arith.constant 0 : index
    %210 = vector.load %arg2[%209, %c0_74, %c0_75] : memref<8x2x1xf32, #tpu.memory_space<vmem>>, vector<1x2x1xf32>
    %211 = vector.shape_cast %210 : vector<1x2x1xf32> to vector<2x1xf32>
    %212 = arith.index_cast %208 : i32 to index
    %c0_76 = arith.constant 0 : index
    %c0_77 = arith.constant 0 : index
    %213 = vector.load %arg2[%212, %c0_76, %c0_77] : memref<8x2x1xf32, #tpu.memory_space<vmem>>, vector<1x2x1xf32>
    %214 = vector.shape_cast %213 : vector<1x2x1xf32> to vector<2x1xf32>
    %215 = arith.index_cast %c2_i32 : i32 to index
    %c0_78 = arith.constant 0 : index
    %c0_79 = arith.constant 0 : index
    %216 = vector.load %arg28[%215, %c0_78, %c0_79] : memref<8x2x256xf32, #tpu.memory_space<vmem>>, vector<1x2x256xf32>
    %217 = vector.shape_cast %216 : vector<1x2x256xf32> to vector<2x256xf32>
    %218 = arith.index_cast %208 : i32 to index
    %c0_80 = arith.constant 0 : index
    %c0_81 = arith.constant 0 : index
    %219 = vector.load %arg28[%218, %c0_80, %c0_81] : memref<8x2x256xf32, #tpu.memory_space<vmem>>, vector<1x2x256xf32>
    %220 = vector.shape_cast %219 : vector<1x2x256xf32> to vector<2x256xf32>
    %221 = vector.extract_strided_slice %217 {offsets = [0, 0], sizes = [2, 128], strides = [1, 1]} : vector<2x256xf32> to vector<2x128xf32>
    %cst_82 = arith.constant dense<0.000000e+00> : vector<2x128xf32>
    %222 = tpu.matmul %186, %28, %cst_82 {dimension_numbers = #tpu.dot_dimension_numbers<[1], [0], [0], [1], [0, 0, 1, 1], [], []>} : vector<2x32xf32>, vector<32x128xf32>, vector<2x128xf32> -> vector<2x128xf32>
    %223 = arith.addf %221, %222 : vector<2x128xf32>
    %224 = vector.extract_strided_slice %220 {offsets = [0, 128], sizes = [2, 128], strides = [1, 1]} : vector<2x256xf32> to vector<2x128xf32>
    %cst_83 = arith.constant dense<0.000000e+00> : vector<2x128xf32>
    %225 = tpu.matmul %200, %29, %cst_83 {dimension_numbers = #tpu.dot_dimension_numbers<[1], [0], [0], [1], [0, 0, 1, 1], [], []>} : vector<2x32xf32>, vector<32x128xf32>, vector<2x128xf32> -> vector<2x128xf32>
    %226 = arith.addf %224, %225 : vector<2x128xf32>
    %227 = arith.negf %223 : vector<2x128xf32>
    %228 = math.exp %227 : vector<2x128xf32>
    %cst_84 = arith.constant 1.000000e+00 : f32
    %229 = vector.broadcast %cst_84 : f32 to vector<2x128xf32>
    %230 = arith.addf %229, %228 : vector<2x128xf32>
    %231 = arith.divf %229, %230 : vector<2x128xf32>
    %232 = math.tanh %223 : vector<2x128xf32>
    %233 = vector.extract_strided_slice %231 {offsets = [0, 0], sizes = [2, 32], strides = [1, 1]} : vector<2x128xf32> to vector<2x32xf32>
    %234 = vector.extract_strided_slice %231 {offsets = [0, 32], sizes = [2, 32], strides = [1, 1]} : vector<2x128xf32> to vector<2x32xf32>
    %235 = vector.extract_strided_slice %232 {offsets = [0, 64], sizes = [2, 32], strides = [1, 1]} : vector<2x128xf32> to vector<2x32xf32>
    %236 = vector.extract_strided_slice %231 {offsets = [0, 96], sizes = [2, 32], strides = [1, 1]} : vector<2x128xf32> to vector<2x32xf32>
    %237 = arith.mulf %234, %193 : vector<2x32xf32>
    %238 = arith.mulf %233, %235 : vector<2x32xf32>
    %239 = arith.addf %237, %238 : vector<2x32xf32>
    %240 = math.tanh %239 : vector<2x32xf32>
    %241 = arith.mulf %236, %240 : vector<2x32xf32>
    %242 = arith.negf %226 : vector<2x128xf32>
    %243 = math.exp %242 : vector<2x128xf32>
    %cst_85 = arith.constant 1.000000e+00 : f32
    %244 = vector.broadcast %cst_85 : f32 to vector<2x128xf32>
    %245 = arith.addf %244, %243 : vector<2x128xf32>
    %246 = arith.divf %244, %245 : vector<2x128xf32>
    %247 = math.tanh %226 : vector<2x128xf32>
    %248 = vector.extract_strided_slice %246 {offsets = [0, 0], sizes = [2, 32], strides = [1, 1]} : vector<2x128xf32> to vector<2x32xf32>
    %249 = vector.extract_strided_slice %246 {offsets = [0, 32], sizes = [2, 32], strides = [1, 1]} : vector<2x128xf32> to vector<2x32xf32>
    %250 = vector.extract_strided_slice %247 {offsets = [0, 64], sizes = [2, 32], strides = [1, 1]} : vector<2x128xf32> to vector<2x32xf32>
    %251 = vector.extract_strided_slice %246 {offsets = [0, 96], sizes = [2, 32], strides = [1, 1]} : vector<2x128xf32> to vector<2x32xf32>
    %252 = arith.mulf %249, %207 : vector<2x32xf32>
    %253 = arith.mulf %248, %250 : vector<2x32xf32>
    %254 = arith.addf %252, %253 : vector<2x32xf32>
    %255 = math.tanh %254 : vector<2x32xf32>
    %256 = arith.mulf %251, %255 : vector<2x32xf32>
    %257 = vector.broadcast %211 : vector<2x1xf32> to vector<2x32xf32>
    %258 = arith.mulf %257, %241 : vector<2x32xf32>
    %259 = arith.index_cast %c2_i32 : i32 to index
    %c0_86 = arith.constant 0 : index
    %c0_87 = arith.constant 0 : index
    %260 = vector.load %arg26[%259, %c0_86, %c0_87] : memref<8x2x32xf32, #tpu.memory_space<vmem>>, vector<1x2x32xf32>
    %261 = vector.shape_cast %260 : vector<1x2x32xf32> to vector<2x32xf32>
    %262 = vector.shape_cast %258 : vector<2x32xf32> to vector<1x2x32xf32>
    tpu.vector_store %arg26[%259, %c0_86, %c0_87], %262 {strides = array<i32>} : memref<8x2x32xf32, #tpu.memory_space<vmem>>, vector<1x2x32xf32>,
    %263 = vector.broadcast %214 : vector<2x1xf32> to vector<2x32xf32>
    %264 = arith.mulf %263, %256 : vector<2x32xf32>
    %265 = arith.index_cast %208 : i32 to index
    %c0_88 = arith.constant 0 : index
    %c0_89 = arith.constant 0 : index
    %266 = vector.load %arg27[%265, %c0_88, %c0_89] : memref<8x2x32xf32, #tpu.memory_space<vmem>>, vector<1x2x32xf32>
    %267 = vector.shape_cast %266 : vector<1x2x32xf32> to vector<2x32xf32>
    %268 = vector.shape_cast %264 : vector<2x32xf32> to vector<1x2x32xf32>
    tpu.vector_store %arg27[%265, %c0_88, %c0_89], %268 {strides = array<i32>} : memref<8x2x32xf32, #tpu.memory_space<vmem>>, vector<1x2x32xf32>,
    %269 = vector.broadcast %211 : vector<2x1xf32> to vector<2x32xf32>
    %270 = arith.mulf %269, %241 : vector<2x32xf32>
    %cst_90 = arith.constant 1.000000e+00 : f32
    %271 = vector.broadcast %cst_90 : f32 to vector<2x1xf32>
    %272 = arith.subf %271, %211 : vector<2x1xf32>
    %273 = vector.broadcast %272 : vector<2x1xf32> to vector<2x32xf32>
    %274 = arith.mulf %273, %186 : vector<2x32xf32>
    %275 = arith.addf %270, %274 : vector<2x32xf32>
    %276 = vector.broadcast %211 : vector<2x1xf32> to vector<2x32xf32>
    %277 = arith.mulf %276, %239 : vector<2x32xf32>
    %cst_91 = arith.constant 1.000000e+00 : f32
    %278 = vector.broadcast %cst_91 : f32 to vector<2x1xf32>
    %279 = arith.subf %278, %211 : vector<2x1xf32>
    %280 = vector.broadcast %279 : vector<2x1xf32> to vector<2x32xf32>
    %281 = arith.mulf %280, %193 : vector<2x32xf32>
    %282 = arith.addf %277, %281 : vector<2x32xf32>
    %283 = vector.broadcast %214 : vector<2x1xf32> to vector<2x32xf32>
    %284 = arith.mulf %283, %256 : vector<2x32xf32>
    %cst_92 = arith.constant 1.000000e+00 : f32
    %285 = vector.broadcast %cst_92 : f32 to vector<2x1xf32>
    %286 = arith.subf %285, %214 : vector<2x1xf32>
    %287 = vector.broadcast %286 : vector<2x1xf32> to vector<2x32xf32>
    %288 = arith.mulf %287, %200 : vector<2x32xf32>
    %289 = arith.addf %284, %288 : vector<2x32xf32>
    %290 = vector.broadcast %214 : vector<2x1xf32> to vector<2x32xf32>
    %291 = arith.mulf %290, %254 : vector<2x32xf32>
    %cst_93 = arith.constant 1.000000e+00 : f32
    %292 = vector.broadcast %cst_93 : f32 to vector<2x1xf32>
    %293 = arith.subf %292, %214 : vector<2x1xf32>
    %294 = vector.broadcast %293 : vector<2x1xf32> to vector<2x32xf32>
    %295 = arith.mulf %294, %207 : vector<2x32xf32>
    %296 = arith.addf %291, %295 : vector<2x32xf32>
    %c3_i32 = arith.constant 3 : i32
    %c7_i32_94 = arith.constant 7 : i32
    %297 = arith.subi %c7_i32_94, %c3_i32 : i32
    %298 = arith.index_cast %c3_i32 : i32 to index
    %c0_95 = arith.constant 0 : index
    %c0_96 = arith.constant 0 : index
    %299 = vector.load %arg2[%298, %c0_95, %c0_96] : memref<8x2x1xf32, #tpu.memory_space<vmem>>, vector<1x2x1xf32>
    %300 = vector.shape_cast %299 : vector<1x2x1xf32> to vector<2x1xf32>
    %301 = arith.index_cast %297 : i32 to index
    %c0_97 = arith.constant 0 : index
    %c0_98 = arith.constant 0 : index
    %302 = vector.load %arg2[%301, %c0_97, %c0_98] : memref<8x2x1xf32, #tpu.memory_space<vmem>>, vector<1x2x1xf32>
    %303 = vector.shape_cast %302 : vector<1x2x1xf32> to vector<2x1xf32>
    %304 = arith.index_cast %c3_i32 : i32 to index
    %c0_99 = arith.constant 0 : index
    %c0_100 = arith.constant 0 : index
    %305 = vector.load %arg28[%304, %c0_99, %c0_100] : memref<8x2x256xf32, #tpu.memory_space<vmem>>, vector<1x2x256xf32>
    %306 = vector.shape_cast %305 : vector<1x2x256xf32> to vector<2x256xf32>
    %307 = arith.index_cast %297 : i32 to index
    %c0_101 = arith.constant 0 : index
    %c0_102 = arith.constant 0 : index
    %308 = vector.load %arg28[%307, %c0_101, %c0_102] : memref<8x2x256xf32, #tpu.memory_space<vmem>>, vector<1x2x256xf32>
    %309 = vector.shape_cast %308 : vector<1x2x256xf32> to vector<2x256xf32>
    %310 = vector.extract_strided_slice %306 {offsets = [0, 0], sizes = [2, 128], strides = [1, 1]} : vector<2x256xf32> to vector<2x128xf32>
    %cst_103 = arith.constant dense<0.000000e+00> : vector<2x128xf32>
    %311 = tpu.matmul %275, %28, %cst_103 {dimension_numbers = #tpu.dot_dimension_numbers<[1], [0], [0], [1], [0, 0, 1, 1], [], []>} : vector<2x32xf32>, vector<32x128xf32>, vector<2x128xf32> -> vector<2x128xf32>
    %312 = arith.addf %310, %311 : vector<2x128xf32>
    %313 = vector.extract_strided_slice %309 {offsets = [0, 128], sizes = [2, 128], strides = [1, 1]} : vector<2x256xf32> to vector<2x128xf32>
    %cst_104 = arith.constant dense<0.000000e+00> : vector<2x128xf32>
    %314 = tpu.matmul %289, %29, %cst_104 {dimension_numbers = #tpu.dot_dimension_numbers<[1], [0], [0], [1], [0, 0, 1, 1], [], []>} : vector<2x32xf32>, vector<32x128xf32>, vector<2x128xf32> -> vector<2x128xf32>
    %315 = arith.addf %313, %314 : vector<2x128xf32>
    %316 = arith.negf %312 : vector<2x128xf32>
    %317 = math.exp %316 : vector<2x128xf32>
    %cst_105 = arith.constant 1.000000e+00 : f32
    %318 = vector.broadcast %cst_105 : f32 to vector<2x128xf32>
    %319 = arith.addf %318, %317 : vector<2x128xf32>
    %320 = arith.divf %318, %319 : vector<2x128xf32>
    %321 = math.tanh %312 : vector<2x128xf32>
    %322 = vector.extract_strided_slice %320 {offsets = [0, 0], sizes = [2, 32], strides = [1, 1]} : vector<2x128xf32> to vector<2x32xf32>
    %323 = vector.extract_strided_slice %320 {offsets = [0, 32], sizes = [2, 32], strides = [1, 1]} : vector<2x128xf32> to vector<2x32xf32>
    %324 = vector.extract_strided_slice %321 {offsets = [0, 64], sizes = [2, 32], strides = [1, 1]} : vector<2x128xf32> to vector<2x32xf32>
    %325 = vector.extract_strided_slice %320 {offsets = [0, 96], sizes = [2, 32], strides = [1, 1]} : vector<2x128xf32> to vector<2x32xf32>
    %326 = arith.mulf %323, %282 : vector<2x32xf32>
    %327 = arith.mulf %322, %324 : vector<2x32xf32>
    %328 = arith.addf %326, %327 : vector<2x32xf32>
    %329 = math.tanh %328 : vector<2x32xf32>
    %330 = arith.mulf %325, %329 : vector<2x32xf32>
    %331 = arith.negf %315 : vector<2x128xf32>
    %332 = math.exp %331 : vector<2x128xf32>
    %cst_106 = arith.constant 1.000000e+00 : f32
    %333 = vector.broadcast %cst_106 : f32 to vector<2x128xf32>
    %334 = arith.addf %333, %332 : vector<2x128xf32>
    %335 = arith.divf %333, %334 : vector<2x128xf32>
    %336 = math.tanh %315 : vector<2x128xf32>
    %337 = vector.extract_strided_slice %335 {offsets = [0, 0], sizes = [2, 32], strides = [1, 1]} : vector<2x128xf32> to vector<2x32xf32>
    %338 = vector.extract_strided_slice %335 {offsets = [0, 32], sizes = [2, 32], strides = [1, 1]} : vector<2x128xf32> to vector<2x32xf32>
    %339 = vector.extract_strided_slice %336 {offsets = [0, 64], sizes = [2, 32], strides = [1, 1]} : vector<2x128xf32> to vector<2x32xf32>
    %340 = vector.extract_strided_slice %335 {offsets = [0, 96], sizes = [2, 32], strides = [1, 1]} : vector<2x128xf32> to vector<2x32xf32>
    %341 = arith.mulf %338, %296 : vector<2x32xf32>
    %342 = arith.mulf %337, %339 : vector<2x32xf32>
    %343 = arith.addf %341, %342 : vector<2x32xf32>
    %344 = math.tanh %343 : vector<2x32xf32>
    %345 = arith.mulf %340, %344 : vector<2x32xf32>
    %346 = vector.broadcast %300 : vector<2x1xf32> to vector<2x32xf32>
    %347 = arith.mulf %346, %330 : vector<2x32xf32>
    %348 = arith.index_cast %c3_i32 : i32 to index
    %c0_107 = arith.constant 0 : index
    %c0_108 = arith.constant 0 : index
    %349 = vector.load %arg26[%348, %c0_107, %c0_108] : memref<8x2x32xf32, #tpu.memory_space<vmem>>, vector<1x2x32xf32>
    %350 = vector.shape_cast %349 : vector<1x2x32xf32> to vector<2x32xf32>
    %351 = vector.shape_cast %347 : vector<2x32xf32> to vector<1x2x32xf32>
    tpu.vector_store %arg26[%348, %c0_107, %c0_108], %351 {strides = array<i32>} : memref<8x2x32xf32, #tpu.memory_space<vmem>>, vector<1x2x32xf32>,
    %352 = vector.broadcast %303 : vector<2x1xf32> to vector<2x32xf32>
    %353 = arith.mulf %352, %345 : vector<2x32xf32>
    %354 = arith.index_cast %297 : i32 to index
    %c0_109 = arith.constant 0 : index
    %c0_110 = arith.constant 0 : index
    %355 = vector.load %arg27[%354, %c0_109, %c0_110] : memref<8x2x32xf32, #tpu.memory_space<vmem>>, vector<1x2x32xf32>
    %356 = vector.shape_cast %355 : vector<1x2x32xf32> to vector<2x32xf32>
    %357 = vector.shape_cast %353 : vector<2x32xf32> to vector<1x2x32xf32>
    tpu.vector_store %arg27[%354, %c0_109, %c0_110], %357 {strides = array<i32>} : memref<8x2x32xf32, #tpu.memory_space<vmem>>, vector<1x2x32xf32>,
    %358 = vector.broadcast %300 : vector<2x1xf32> to vector<2x32xf32>
    %359 = arith.mulf %358, %330 : vector<2x32xf32>
    %cst_111 = arith.constant 1.000000e+00 : f32
    %360 = vector.broadcast %cst_111 : f32 to vector<2x1xf32>
    %361 = arith.subf %360, %300 : vector<2x1xf32>
    %362 = vector.broadcast %361 : vector<2x1xf32> to vector<2x32xf32>
    %363 = arith.mulf %362, %275 : vector<2x32xf32>
    %364 = arith.addf %359, %363 : vector<2x32xf32>
    %365 = vector.broadcast %300 : vector<2x1xf32> to vector<2x32xf32>
    %366 = arith.mulf %365, %328 : vector<2x32xf32>
    %cst_112 = arith.constant 1.000000e+00 : f32
    %367 = vector.broadcast %cst_112 : f32 to vector<2x1xf32>
    %368 = arith.subf %367, %300 : vector<2x1xf32>
    %369 = vector.broadcast %368 : vector<2x1xf32> to vector<2x32xf32>
    %370 = arith.mulf %369, %282 : vector<2x32xf32>
    %371 = arith.addf %366, %370 : vector<2x32xf32>
    %372 = vector.broadcast %303 : vector<2x1xf32> to vector<2x32xf32>
    %373 = arith.mulf %372, %345 : vector<2x32xf32>
    %cst_113 = arith.constant 1.000000e+00 : f32
    %374 = vector.broadcast %cst_113 : f32 to vector<2x1xf32>
    %375 = arith.subf %374, %303 : vector<2x1xf32>
    %376 = vector.broadcast %375 : vector<2x1xf32> to vector<2x32xf32>
    %377 = arith.mulf %376, %289 : vector<2x32xf32>
    %378 = arith.addf %373, %377 : vector<2x32xf32>
    %379 = vector.broadcast %303 : vector<2x1xf32> to vector<2x32xf32>
    %380 = arith.mulf %379, %343 : vector<2x32xf32>
    %cst_114 = arith.constant 1.000000e+00 : f32
    %381 = vector.broadcast %cst_114 : f32 to vector<2x1xf32>
    %382 = arith.subf %381, %303 : vector<2x1xf32>
    %383 = vector.broadcast %382 : vector<2x1xf32> to vector<2x32xf32>
    %384 = arith.mulf %383, %296 : vector<2x32xf32>
    %385 = arith.addf %380, %384 : vector<2x32xf32>
    %c4_i32 = arith.constant 4 : i32
    %c7_i32_115 = arith.constant 7 : i32
    %386 = arith.subi %c7_i32_115, %c4_i32 : i32
    %387 = arith.index_cast %c4_i32 : i32 to index
    %c0_116 = arith.constant 0 : index
    %c0_117 = arith.constant 0 : index
    %388 = vector.load %arg2[%387, %c0_116, %c0_117] : memref<8x2x1xf32, #tpu.memory_space<vmem>>, vector<1x2x1xf32>
    %389 = vector.shape_cast %388 : vector<1x2x1xf32> to vector<2x1xf32>
    %390 = arith.index_cast %386 : i32 to index
    %c0_118 = arith.constant 0 : index
    %c0_119 = arith.constant 0 : index
    %391 = vector.load %arg2[%390, %c0_118, %c0_119] : memref<8x2x1xf32, #tpu.memory_space<vmem>>, vector<1x2x1xf32>
    %392 = vector.shape_cast %391 : vector<1x2x1xf32> to vector<2x1xf32>
    %393 = arith.index_cast %c4_i32 : i32 to index
    %c0_120 = arith.constant 0 : index
    %c0_121 = arith.constant 0 : index
    %394 = vector.load %arg28[%393, %c0_120, %c0_121] : memref<8x2x256xf32, #tpu.memory_space<vmem>>, vector<1x2x256xf32>
    %395 = vector.shape_cast %394 : vector<1x2x256xf32> to vector<2x256xf32>
    %396 = arith.index_cast %386 : i32 to index
    %c0_122 = arith.constant 0 : index
    %c0_123 = arith.constant 0 : index
    %397 = vector.load %arg28[%396, %c0_122, %c0_123] : memref<8x2x256xf32, #tpu.memory_space<vmem>>, vector<1x2x256xf32>
    %398 = vector.shape_cast %397 : vector<1x2x256xf32> to vector<2x256xf32>
    %399 = vector.extract_strided_slice %395 {offsets = [0, 0], sizes = [2, 128], strides = [1, 1]} : vector<2x256xf32> to vector<2x128xf32>
    %cst_124 = arith.constant dense<0.000000e+00> : vector<2x128xf32>
    %400 = tpu.matmul %364, %28, %cst_124 {dimension_numbers = #tpu.dot_dimension_numbers<[1], [0], [0], [1], [0, 0, 1, 1], [], []>} : vector<2x32xf32>, vector<32x128xf32>, vector<2x128xf32> -> vector<2x128xf32>
    %401 = arith.addf %399, %400 : vector<2x128xf32>
    %402 = vector.extract_strided_slice %398 {offsets = [0, 128], sizes = [2, 128], strides = [1, 1]} : vector<2x256xf32> to vector<2x128xf32>
    %cst_125 = arith.constant dense<0.000000e+00> : vector<2x128xf32>
    %403 = tpu.matmul %378, %29, %cst_125 {dimension_numbers = #tpu.dot_dimension_numbers<[1], [0], [0], [1], [0, 0, 1, 1], [], []>} : vector<2x32xf32>, vector<32x128xf32>, vector<2x128xf32> -> vector<2x128xf32>
    %404 = arith.addf %402, %403 : vector<2x128xf32>
    %405 = arith.negf %401 : vector<2x128xf32>
    %406 = math.exp %405 : vector<2x128xf32>
    %cst_126 = arith.constant 1.000000e+00 : f32
    %407 = vector.broadcast %cst_126 : f32 to vector<2x128xf32>
    %408 = arith.addf %407, %406 : vector<2x128xf32>
    %409 = arith.divf %407, %408 : vector<2x128xf32>
    %410 = math.tanh %401 : vector<2x128xf32>
    %411 = vector.extract_strided_slice %409 {offsets = [0, 0], sizes = [2, 32], strides = [1, 1]} : vector<2x128xf32> to vector<2x32xf32>
    %412 = vector.extract_strided_slice %409 {offsets = [0, 32], sizes = [2, 32], strides = [1, 1]} : vector<2x128xf32> to vector<2x32xf32>
    %413 = vector.extract_strided_slice %410 {offsets = [0, 64], sizes = [2, 32], strides = [1, 1]} : vector<2x128xf32> to vector<2x32xf32>
    %414 = vector.extract_strided_slice %409 {offsets = [0, 96], sizes = [2, 32], strides = [1, 1]} : vector<2x128xf32> to vector<2x32xf32>
    %415 = arith.mulf %412, %371 : vector<2x32xf32>
    %416 = arith.mulf %411, %413 : vector<2x32xf32>
    %417 = arith.addf %415, %416 : vector<2x32xf32>
    %418 = math.tanh %417 : vector<2x32xf32>
    %419 = arith.mulf %414, %418 : vector<2x32xf32>
    %420 = arith.negf %404 : vector<2x128xf32>
    %421 = math.exp %420 : vector<2x128xf32>
    %cst_127 = arith.constant 1.000000e+00 : f32
    %422 = vector.broadcast %cst_127 : f32 to vector<2x128xf32>
    %423 = arith.addf %422, %421 : vector<2x128xf32>
    %424 = arith.divf %422, %423 : vector<2x128xf32>
    %425 = math.tanh %404 : vector<2x128xf32>
    %426 = vector.extract_strided_slice %424 {offsets = [0, 0], sizes = [2, 32], strides = [1, 1]} : vector<2x128xf32> to vector<2x32xf32>
    %427 = vector.extract_strided_slice %424 {offsets = [0, 32], sizes = [2, 32], strides = [1, 1]} : vector<2x128xf32> to vector<2x32xf32>
    %428 = vector.extract_strided_slice %425 {offsets = [0, 64], sizes = [2, 32], strides = [1, 1]} : vector<2x128xf32> to vector<2x32xf32>
    %429 = vector.extract_strided_slice %424 {offsets = [0, 96], sizes = [2, 32], strides = [1, 1]} : vector<2x128xf32> to vector<2x32xf32>
    %430 = arith.mulf %427, %385 : vector<2x32xf32>
    %431 = arith.mulf %426, %428 : vector<2x32xf32>
    %432 = arith.addf %430, %431 : vector<2x32xf32>
    %433 = math.tanh %432 : vector<2x32xf32>
    %434 = arith.mulf %429, %433 : vector<2x32xf32>
    %435 = vector.broadcast %389 : vector<2x1xf32> to vector<2x32xf32>
    %436 = arith.mulf %435, %419 : vector<2x32xf32>
    %437 = arith.index_cast %c4_i32 : i32 to index
    %c0_128 = arith.constant 0 : index
    %c0_129 = arith.constant 0 : index
    %438 = vector.load %arg26[%437, %c0_128, %c0_129] : memref<8x2x32xf32, #tpu.memory_space<vmem>>, vector<1x2x32xf32>
    %439 = vector.shape_cast %438 : vector<1x2x32xf32> to vector<2x32xf32>
    %440 = vector.shape_cast %436 : vector<2x32xf32> to vector<1x2x32xf32>
    tpu.vector_store %arg26[%437, %c0_128, %c0_129], %440 {strides = array<i32>} : memref<8x2x32xf32, #tpu.memory_space<vmem>>, vector<1x2x32xf32>,
    %441 = vector.broadcast %392 : vector<2x1xf32> to vector<2x32xf32>
    %442 = arith.mulf %441, %434 : vector<2x32xf32>
    %443 = arith.index_cast %386 : i32 to index
    %c0_130 = arith.constant 0 : index
    %c0_131 = arith.constant 0 : index
    %444 = vector.load %arg27[%443, %c0_130, %c0_131] : memref<8x2x32xf32, #tpu.memory_space<vmem>>, vector<1x2x32xf32>
    %445 = vector.shape_cast %444 : vector<1x2x32xf32> to vector<2x32xf32>
    %446 = vector.shape_cast %442 : vector<2x32xf32> to vector<1x2x32xf32>
    tpu.vector_store %arg27[%443, %c0_130, %c0_131], %446 {strides = array<i32>} : memref<8x2x32xf32, #tpu.memory_space<vmem>>, vector<1x2x32xf32>,
    %447 = vector.broadcast %389 : vector<2x1xf32> to vector<2x32xf32>
    %448 = arith.mulf %447, %419 : vector<2x32xf32>
    %cst_132 = arith.constant 1.000000e+00 : f32
    %449 = vector.broadcast %cst_132 : f32 to vector<2x1xf32>
    %450 = arith.subf %449, %389 : vector<2x1xf32>
    %451 = vector.broadcast %450 : vector<2x1xf32> to vector<2x32xf32>
    %452 = arith.mulf %451, %364 : vector<2x32xf32>
    %453 = arith.addf %448, %452 : vector<2x32xf32>
    %454 = vector.broadcast %389 : vector<2x1xf32> to vector<2x32xf32>
    %455 = arith.mulf %454, %417 : vector<2x32xf32>
    %cst_133 = arith.constant 1.000000e+00 : f32
    %456 = vector.broadcast %cst_133 : f32 to vector<2x1xf32>
    %457 = arith.subf %456, %389 : vector<2x1xf32>
    %458 = vector.broadcast %457 : vector<2x1xf32> to vector<2x32xf32>
    %459 = arith.mulf %458, %371 : vector<2x32xf32>
    %460 = arith.addf %455, %459 : vector<2x32xf32>
    %461 = vector.broadcast %392 : vector<2x1xf32> to vector<2x32xf32>
    %462 = arith.mulf %461, %434 : vector<2x32xf32>
    %cst_134 = arith.constant 1.000000e+00 : f32
    %463 = vector.broadcast %cst_134 : f32 to vector<2x1xf32>
    %464 = arith.subf %463, %392 : vector<2x1xf32>
    %465 = vector.broadcast %464 : vector<2x1xf32> to vector<2x32xf32>
    %466 = arith.mulf %465, %378 : vector<2x32xf32>
    %467 = arith.addf %462, %466 : vector<2x32xf32>
    %468 = vector.broadcast %392 : vector<2x1xf32> to vector<2x32xf32>
    %469 = arith.mulf %468, %432 : vector<2x32xf32>
    %cst_135 = arith.constant 1.000000e+00 : f32
    %470 = vector.broadcast %cst_135 : f32 to vector<2x1xf32>
    %471 = arith.subf %470, %392 : vector<2x1xf32>
    %472 = vector.broadcast %471 : vector<2x1xf32> to vector<2x32xf32>
    %473 = arith.mulf %472, %385 : vector<2x32xf32>
    %474 = arith.addf %469, %473 : vector<2x32xf32>
    %c5_i32 = arith.constant 5 : i32
    %c7_i32_136 = arith.constant 7 : i32
    %475 = arith.subi %c7_i32_136, %c5_i32 : i32
    %476 = arith.index_cast %c5_i32 : i32 to index
    %c0_137 = arith.constant 0 : index
    %c0_138 = arith.constant 0 : index
    %477 = vector.load %arg2[%476, %c0_137, %c0_138] : memref<8x2x1xf32, #tpu.memory_space<vmem>>, vector<1x2x1xf32>
    %478 = vector.shape_cast %477 : vector<1x2x1xf32> to vector<2x1xf32>
    %479 = arith.index_cast %475 : i32 to index
    %c0_139 = arith.constant 0 : index
    %c0_140 = arith.constant 0 : index
    %480 = vector.load %arg2[%479, %c0_139, %c0_140] : memref<8x2x1xf32, #tpu.memory_space<vmem>>, vector<1x2x1xf32>
    %481 = vector.shape_cast %480 : vector<1x2x1xf32> to vector<2x1xf32>
    %482 = arith.index_cast %c5_i32 : i32 to index
    %c0_141 = arith.constant 0 : index
    %c0_142 = arith.constant 0 : index
    %483 = vector.load %arg28[%482, %c0_141, %c0_142] : memref<8x2x256xf32, #tpu.memory_space<vmem>>, vector<1x2x256xf32>
    %484 = vector.shape_cast %483 : vector<1x2x256xf32> to vector<2x256xf32>
    %485 = arith.index_cast %475 : i32 to index
    %c0_143 = arith.constant 0 : index
    %c0_144 = arith.constant 0 : index
    %486 = vector.load %arg28[%485, %c0_143, %c0_144] : memref<8x2x256xf32, #tpu.memory_space<vmem>>, vector<1x2x256xf32>
    %487 = vector.shape_cast %486 : vector<1x2x256xf32> to vector<2x256xf32>
    %488 = vector.extract_strided_slice %484 {offsets = [0, 0], sizes = [2, 128], strides = [1, 1]} : vector<2x256xf32> to vector<2x128xf32>
    %cst_145 = arith.constant dense<0.000000e+00> : vector<2x128xf32>
    %489 = tpu.matmul %453, %28, %cst_145 {dimension_numbers = #tpu.dot_dimension_numbers<[1], [0], [0], [1], [0, 0, 1, 1], [], []>} : vector<2x32xf32>, vector<32x128xf32>, vector<2x128xf32> -> vector<2x128xf32>
    %490 = arith.addf %488, %489 : vector<2x128xf32>
    %491 = vector.extract_strided_slice %487 {offsets = [0, 128], sizes = [2, 128], strides = [1, 1]} : vector<2x256xf32> to vector<2x128xf32>
    %cst_146 = arith.constant dense<0.000000e+00> : vector<2x128xf32>
    %492 = tpu.matmul %467, %29, %cst_146 {dimension_numbers = #tpu.dot_dimension_numbers<[1], [0], [0], [1], [0, 0, 1, 1], [], []>} : vector<2x32xf32>, vector<32x128xf32>, vector<2x128xf32> -> vector<2x128xf32>
    %493 = arith.addf %491, %492 : vector<2x128xf32>
    %494 = arith.negf %490 : vector<2x128xf32>
    %495 = math.exp %494 : vector<2x128xf32>
    %cst_147 = arith.constant 1.000000e+00 : f32
    %496 = vector.broadcast %cst_147 : f32 to vector<2x128xf32>
    %497 = arith.addf %496, %495 : vector<2x128xf32>
    %498 = arith.divf %496, %497 : vector<2x128xf32>
    %499 = math.tanh %490 : vector<2x128xf32>
    %500 = vector.extract_strided_slice %498 {offsets = [0, 0], sizes = [2, 32], strides = [1, 1]} : vector<2x128xf32> to vector<2x32xf32>
    %501 = vector.extract_strided_slice %498 {offsets = [0, 32], sizes = [2, 32], strides = [1, 1]} : vector<2x128xf32> to vector<2x32xf32>
    %502 = vector.extract_strided_slice %499 {offsets = [0, 64], sizes = [2, 32], strides = [1, 1]} : vector<2x128xf32> to vector<2x32xf32>
    %503 = vector.extract_strided_slice %498 {offsets = [0, 96], sizes = [2, 32], strides = [1, 1]} : vector<2x128xf32> to vector<2x32xf32>
    %504 = arith.mulf %501, %460 : vector<2x32xf32>
    %505 = arith.mulf %500, %502 : vector<2x32xf32>
    %506 = arith.addf %504, %505 : vector<2x32xf32>
    %507 = math.tanh %506 : vector<2x32xf32>
    %508 = arith.mulf %503, %507 : vector<2x32xf32>
    %509 = arith.negf %493 : vector<2x128xf32>
    %510 = math.exp %509 : vector<2x128xf32>
    %cst_148 = arith.constant 1.000000e+00 : f32
    %511 = vector.broadcast %cst_148 : f32 to vector<2x128xf32>
    %512 = arith.addf %511, %510 : vector<2x128xf32>
    %513 = arith.divf %511, %512 : vector<2x128xf32>
    %514 = math.tanh %493 : vector<2x128xf32>
    %515 = vector.extract_strided_slice %513 {offsets = [0, 0], sizes = [2, 32], strides = [1, 1]} : vector<2x128xf32> to vector<2x32xf32>
    %516 = vector.extract_strided_slice %513 {offsets = [0, 32], sizes = [2, 32], strides = [1, 1]} : vector<2x128xf32> to vector<2x32xf32>
    %517 = vector.extract_strided_slice %514 {offsets = [0, 64], sizes = [2, 32], strides = [1, 1]} : vector<2x128xf32> to vector<2x32xf32>
    %518 = vector.extract_strided_slice %513 {offsets = [0, 96], sizes = [2, 32], strides = [1, 1]} : vector<2x128xf32> to vector<2x32xf32>
    %519 = arith.mulf %516, %474 : vector<2x32xf32>
    %520 = arith.mulf %515, %517 : vector<2x32xf32>
    %521 = arith.addf %519, %520 : vector<2x32xf32>
    %522 = math.tanh %521 : vector<2x32xf32>
    %523 = arith.mulf %518, %522 : vector<2x32xf32>
    %524 = vector.broadcast %478 : vector<2x1xf32> to vector<2x32xf32>
    %525 = arith.mulf %524, %508 : vector<2x32xf32>
    %526 = arith.index_cast %c5_i32 : i32 to index
    %c0_149 = arith.constant 0 : index
    %c0_150 = arith.constant 0 : index
    %527 = vector.load %arg26[%526, %c0_149, %c0_150] : memref<8x2x32xf32, #tpu.memory_space<vmem>>, vector<1x2x32xf32>
    %528 = vector.shape_cast %527 : vector<1x2x32xf32> to vector<2x32xf32>
    %529 = vector.shape_cast %525 : vector<2x32xf32> to vector<1x2x32xf32>
    tpu.vector_store %arg26[%526, %c0_149, %c0_150], %529 {strides = array<i32>} : memref<8x2x32xf32, #tpu.memory_space<vmem>>, vector<1x2x32xf32>,
    %530 = vector.broadcast %481 : vector<2x1xf32> to vector<2x32xf32>
    %531 = arith.mulf %530, %523 : vector<2x32xf32>
    %532 = arith.index_cast %475 : i32 to index
    %c0_151 = arith.constant 0 : index
    %c0_152 = arith.constant 0 : index
    %533 = vector.load %arg27[%532, %c0_151, %c0_152] : memref<8x2x32xf32, #tpu.memory_space<vmem>>, vector<1x2x32xf32>
    %534 = vector.shape_cast %533 : vector<1x2x32xf32> to vector<2x32xf32>
    %535 = vector.shape_cast %531 : vector<2x32xf32> to vector<1x2x32xf32>
    tpu.vector_store %arg27[%532, %c0_151, %c0_152], %535 {strides = array<i32>} : memref<8x2x32xf32, #tpu.memory_space<vmem>>, vector<1x2x32xf32>,
    %536 = vector.broadcast %478 : vector<2x1xf32> to vector<2x32xf32>
    %537 = arith.mulf %536, %508 : vector<2x32xf32>
    %cst_153 = arith.constant 1.000000e+00 : f32
    %538 = vector.broadcast %cst_153 : f32 to vector<2x1xf32>
    %539 = arith.subf %538, %478 : vector<2x1xf32>
    %540 = vector.broadcast %539 : vector<2x1xf32> to vector<2x32xf32>
    %541 = arith.mulf %540, %453 : vector<2x32xf32>
    %542 = arith.addf %537, %541 : vector<2x32xf32>
    %543 = vector.broadcast %478 : vector<2x1xf32> to vector<2x32xf32>
    %544 = arith.mulf %543, %506 : vector<2x32xf32>
    %cst_154 = arith.constant 1.000000e+00 : f32
    %545 = vector.broadcast %cst_154 : f32 to vector<2x1xf32>
    %546 = arith.subf %545, %478 : vector<2x1xf32>
    %547 = vector.broadcast %546 : vector<2x1xf32> to vector<2x32xf32>
    %548 = arith.mulf %547, %460 : vector<2x32xf32>
    %549 = arith.addf %544, %548 : vector<2x32xf32>
    %550 = vector.broadcast %481 : vector<2x1xf32> to vector<2x32xf32>
    %551 = arith.mulf %550, %523 : vector<2x32xf32>
    %cst_155 = arith.constant 1.000000e+00 : f32
    %552 = vector.broadcast %cst_155 : f32 to vector<2x1xf32>
    %553 = arith.subf %552, %481 : vector<2x1xf32>
    %554 = vector.broadcast %553 : vector<2x1xf32> to vector<2x32xf32>
    %555 = arith.mulf %554, %467 : vector<2x32xf32>
    %556 = arith.addf %551, %555 : vector<2x32xf32>
    %557 = vector.broadcast %481 : vector<2x1xf32> to vector<2x32xf32>
    %558 = arith.mulf %557, %521 : vector<2x32xf32>
    %cst_156 = arith.constant 1.000000e+00 : f32
    %559 = vector.broadcast %cst_156 : f32 to vector<2x1xf32>
    %560 = arith.subf %559, %481 : vector<2x1xf32>
    %561 = vector.broadcast %560 : vector<2x1xf32> to vector<2x32xf32>
    %562 = arith.mulf %561, %474 : vector<2x32xf32>
    %563 = arith.addf %558, %562 : vector<2x32xf32>
    %c6_i32 = arith.constant 6 : i32
    %c7_i32_157 = arith.constant 7 : i32
    %564 = arith.subi %c7_i32_157, %c6_i32 : i32
    %565 = arith.index_cast %c6_i32 : i32 to index
    %c0_158 = arith.constant 0 : index
    %c0_159 = arith.constant 0 : index
    %566 = vector.load %arg2[%565, %c0_158, %c0_159] : memref<8x2x1xf32, #tpu.memory_space<vmem>>, vector<1x2x1xf32>
    %567 = vector.shape_cast %566 : vector<1x2x1xf32> to vector<2x1xf32>
    %568 = arith.index_cast %564 : i32 to index
    %c0_160 = arith.constant 0 : index
    %c0_161 = arith.constant 0 : index
    %569 = vector.load %arg2[%568, %c0_160, %c0_161] : memref<8x2x1xf32, #tpu.memory_space<vmem>>, vector<1x2x1xf32>
    %570 = vector.shape_cast %569 : vector<1x2x1xf32> to vector<2x1xf32>
    %571 = arith.index_cast %c6_i32 : i32 to index
    %c0_162 = arith.constant 0 : index
    %c0_163 = arith.constant 0 : index
    %572 = vector.load %arg28[%571, %c0_162, %c0_163] : memref<8x2x256xf32, #tpu.memory_space<vmem>>, vector<1x2x256xf32>
    %573 = vector.shape_cast %572 : vector<1x2x256xf32> to vector<2x256xf32>
    %574 = arith.index_cast %564 : i32 to index
    %c0_164 = arith.constant 0 : index
    %c0_165 = arith.constant 0 : index
    %575 = vector.load %arg28[%574, %c0_164, %c0_165] : memref<8x2x256xf32, #tpu.memory_space<vmem>>, vector<1x2x256xf32>
    %576 = vector.shape_cast %575 : vector<1x2x256xf32> to vector<2x256xf32>
    %577 = vector.extract_strided_slice %573 {offsets = [0, 0], sizes = [2, 128], strides = [1, 1]} : vector<2x256xf32> to vector<2x128xf32>
    %cst_166 = arith.constant dense<0.000000e+00> : vector<2x128xf32>
    %578 = tpu.matmul %542, %28, %cst_166 {dimension_numbers = #tpu.dot_dimension_numbers<[1], [0], [0], [1], [0, 0, 1, 1], [], []>} : vector<2x32xf32>, vector<32x128xf32>, vector<2x128xf32> -> vector<2x128xf32>
    %579 = arith.addf %577, %578 : vector<2x128xf32>
    %580 = vector.extract_strided_slice %576 {offsets = [0, 128], sizes = [2, 128], strides = [1, 1]} : vector<2x256xf32> to vector<2x128xf32>
    %cst_167 = arith.constant dense<0.000000e+00> : vector<2x128xf32>
    %581 = tpu.matmul %556, %29, %cst_167 {dimension_numbers = #tpu.dot_dimension_numbers<[1], [0], [0], [1], [0, 0, 1, 1], [], []>} : vector<2x32xf32>, vector<32x128xf32>, vector<2x128xf32> -> vector<2x128xf32>
    %582 = arith.addf %580, %581 : vector<2x128xf32>
    %583 = arith.negf %579 : vector<2x128xf32>
    %584 = math.exp %583 : vector<2x128xf32>
    %cst_168 = arith.constant 1.000000e+00 : f32
    %585 = vector.broadcast %cst_168 : f32 to vector<2x128xf32>
    %586 = arith.addf %585, %584 : vector<2x128xf32>
    %587 = arith.divf %585, %586 : vector<2x128xf32>
    %588 = math.tanh %579 : vector<2x128xf32>
    %589 = vector.extract_strided_slice %587 {offsets = [0, 0], sizes = [2, 32], strides = [1, 1]} : vector<2x128xf32> to vector<2x32xf32>
    %590 = vector.extract_strided_slice %587 {offsets = [0, 32], sizes = [2, 32], strides = [1, 1]} : vector<2x128xf32> to vector<2x32xf32>
    %591 = vector.extract_strided_slice %588 {offsets = [0, 64], sizes = [2, 32], strides = [1, 1]} : vector<2x128xf32> to vector<2x32xf32>
    %592 = vector.extract_strided_slice %587 {offsets = [0, 96], sizes = [2, 32], strides = [1, 1]} : vector<2x128xf32> to vector<2x32xf32>
    %593 = arith.mulf %590, %549 : vector<2x32xf32>
    %594 = arith.mulf %589, %591 : vector<2x32xf32>
    %595 = arith.addf %593, %594 : vector<2x32xf32>
    %596 = math.tanh %595 : vector<2x32xf32>
    %597 = arith.mulf %592, %596 : vector<2x32xf32>
    %598 = arith.negf %582 : vector<2x128xf32>
    %599 = math.exp %598 : vector<2x128xf32>
    %cst_169 = arith.constant 1.000000e+00 : f32
    %600 = vector.broadcast %cst_169 : f32 to vector<2x128xf32>
    %601 = arith.addf %600, %599 : vector<2x128xf32>
    %602 = arith.divf %600, %601 : vector<2x128xf32>
    %603 = math.tanh %582 : vector<2x128xf32>
    %604 = vector.extract_strided_slice %602 {offsets = [0, 0], sizes = [2, 32], strides = [1, 1]} : vector<2x128xf32> to vector<2x32xf32>
    %605 = vector.extract_strided_slice %602 {offsets = [0, 32], sizes = [2, 32], strides = [1, 1]} : vector<2x128xf32> to vector<2x32xf32>
    %606 = vector.extract_strided_slice %603 {offsets = [0, 64], sizes = [2, 32], strides = [1, 1]} : vector<2x128xf32> to vector<2x32xf32>
    %607 = vector.extract_strided_slice %602 {offsets = [0, 96], sizes = [2, 32], strides = [1, 1]} : vector<2x128xf32> to vector<2x32xf32>
    %608 = arith.mulf %605, %563 : vector<2x32xf32>
    %609 = arith.mulf %604, %606 : vector<2x32xf32>
    %610 = arith.addf %608, %609 : vector<2x32xf32>
    %611 = math.tanh %610 : vector<2x32xf32>
    %612 = arith.mulf %607, %611 : vector<2x32xf32>
    %613 = vector.broadcast %567 : vector<2x1xf32> to vector<2x32xf32>
    %614 = arith.mulf %613, %597 : vector<2x32xf32>
    %615 = arith.index_cast %c6_i32 : i32 to index
    %c0_170 = arith.constant 0 : index
    %c0_171 = arith.constant 0 : index
    %616 = vector.load %arg26[%615, %c0_170, %c0_171] : memref<8x2x32xf32, #tpu.memory_space<vmem>>, vector<1x2x32xf32>
    %617 = vector.shape_cast %616 : vector<1x2x32xf32> to vector<2x32xf32>
    %618 = vector.shape_cast %614 : vector<2x32xf32> to vector<1x2x32xf32>
    tpu.vector_store %arg26[%615, %c0_170, %c0_171], %618 {strides = array<i32>} : memref<8x2x32xf32, #tpu.memory_space<vmem>>, vector<1x2x32xf32>,
    %619 = vector.broadcast %570 : vector<2x1xf32> to vector<2x32xf32>
    %620 = arith.mulf %619, %612 : vector<2x32xf32>
    %621 = arith.index_cast %564 : i32 to index
    %c0_172 = arith.constant 0 : index
    %c0_173 = arith.constant 0 : index
    %622 = vector.load %arg27[%621, %c0_172, %c0_173] : memref<8x2x32xf32, #tpu.memory_space<vmem>>, vector<1x2x32xf32>
    %623 = vector.shape_cast %622 : vector<1x2x32xf32> to vector<2x32xf32>
    %624 = vector.shape_cast %620 : vector<2x32xf32> to vector<1x2x32xf32>
    tpu.vector_store %arg27[%621, %c0_172, %c0_173], %624 {strides = array<i32>} : memref<8x2x32xf32, #tpu.memory_space<vmem>>, vector<1x2x32xf32>,
    %625 = vector.broadcast %567 : vector<2x1xf32> to vector<2x32xf32>
    %626 = arith.mulf %625, %597 : vector<2x32xf32>
    %cst_174 = arith.constant 1.000000e+00 : f32
    %627 = vector.broadcast %cst_174 : f32 to vector<2x1xf32>
    %628 = arith.subf %627, %567 : vector<2x1xf32>
    %629 = vector.broadcast %628 : vector<2x1xf32> to vector<2x32xf32>
    %630 = arith.mulf %629, %542 : vector<2x32xf32>
    %631 = arith.addf %626, %630 : vector<2x32xf32>
    %632 = vector.broadcast %567 : vector<2x1xf32> to vector<2x32xf32>
    %633 = arith.mulf %632, %595 : vector<2x32xf32>
    %cst_175 = arith.constant 1.000000e+00 : f32
    %634 = vector.broadcast %cst_175 : f32 to vector<2x1xf32>
    %635 = arith.subf %634, %567 : vector<2x1xf32>
    %636 = vector.broadcast %635 : vector<2x1xf32> to vector<2x32xf32>
    %637 = arith.mulf %636, %549 : vector<2x32xf32>
    %638 = arith.addf %633, %637 : vector<2x32xf32>
    %639 = vector.broadcast %570 : vector<2x1xf32> to vector<2x32xf32>
    %640 = arith.mulf %639, %612 : vector<2x32xf32>
    %cst_176 = arith.constant 1.000000e+00 : f32
    %641 = vector.broadcast %cst_176 : f32 to vector<2x1xf32>
    %642 = arith.subf %641, %570 : vector<2x1xf32>
    %643 = vector.broadcast %642 : vector<2x1xf32> to vector<2x32xf32>
    %644 = arith.mulf %643, %556 : vector<2x32xf32>
    %645 = arith.addf %640, %644 : vector<2x32xf32>
    %646 = vector.broadcast %570 : vector<2x1xf32> to vector<2x32xf32>
    %647 = arith.mulf %646, %610 : vector<2x32xf32>
    %cst_177 = arith.constant 1.000000e+00 : f32
    %648 = vector.broadcast %cst_177 : f32 to vector<2x1xf32>
    %649 = arith.subf %648, %570 : vector<2x1xf32>
    %650 = vector.broadcast %649 : vector<2x1xf32> to vector<2x32xf32>
    %651 = arith.mulf %650, %563 : vector<2x32xf32>
    %652 = arith.addf %647, %651 : vector<2x32xf32>
    %c7_i32_178 = arith.constant 7 : i32
    %c7_i32_179 = arith.constant 7 : i32
    %653 = arith.subi %c7_i32_179, %c7_i32_178 : i32
    %654 = arith.index_cast %c7_i32_178 : i32 to index
    %c0_180 = arith.constant 0 : index
    %c0_181 = arith.constant 0 : index
    %655 = vector.load %arg2[%654, %c0_180, %c0_181] : memref<8x2x1xf32, #tpu.memory_space<vmem>>, vector<1x2x1xf32>
    %656 = vector.shape_cast %655 : vector<1x2x1xf32> to vector<2x1xf32>
    %657 = arith.index_cast %653 : i32 to index
    %c0_182 = arith.constant 0 : index
    %c0_183 = arith.constant 0 : index
    %658 = vector.load %arg2[%657, %c0_182, %c0_183] : memref<8x2x1xf32, #tpu.memory_space<vmem>>, vector<1x2x1xf32>
    %659 = vector.shape_cast %658 : vector<1x2x1xf32> to vector<2x1xf32>
    %660 = arith.index_cast %c7_i32_178 : i32 to index
    %c0_184 = arith.constant 0 : index
    %c0_185 = arith.constant 0 : index
    %661 = vector.load %arg28[%660, %c0_184, %c0_185] : memref<8x2x256xf32, #tpu.memory_space<vmem>>, vector<1x2x256xf32>
    %662 = vector.shape_cast %661 : vector<1x2x256xf32> to vector<2x256xf32>
    %663 = arith.index_cast %653 : i32 to index
    %c0_186 = arith.constant 0 : index
    %c0_187 = arith.constant 0 : index
    %664 = vector.load %arg28[%663, %c0_186, %c0_187] : memref<8x2x256xf32, #tpu.memory_space<vmem>>, vector<1x2x256xf32>
    %665 = vector.shape_cast %664 : vector<1x2x256xf32> to vector<2x256xf32>
    %666 = vector.extract_strided_slice %662 {offsets = [0, 0], sizes = [2, 128], strides = [1, 1]} : vector<2x256xf32> to vector<2x128xf32>
    %cst_188 = arith.constant dense<0.000000e+00> : vector<2x128xf32>
    %667 = tpu.matmul %631, %28, %cst_188 {dimension_numbers = #tpu.dot_dimension_numbers<[1], [0], [0], [1], [0, 0, 1, 1], [], []>} : vector<2x32xf32>, vector<32x128xf32>, vector<2x128xf32> -> vector<2x128xf32>
    %668 = arith.addf %666, %667 : vector<2x128xf32>
    %669 = vector.extract_strided_slice %665 {offsets = [0, 128], sizes = [2, 128], strides = [1, 1]} : vector<2x256xf32> to vector<2x128xf32>
    %cst_189 = arith.constant dense<0.000000e+00> : vector<2x128xf32>
    %670 = tpu.matmul %645, %29, %cst_189 {dimension_numbers = #tpu.dot_dimension_numbers<[1], [0], [0], [1], [0, 0, 1, 1], [], []>} : vector<2x32xf32>, vector<32x128xf32>, vector<2x128xf32> -> vector<2x128xf32>
    %671 = arith.addf %669, %670 : vector<2x128xf32>
    %672 = arith.negf %668 : vector<2x128xf32>
    %673 = math.exp %672 : vector<2x128xf32>
    %cst_190 = arith.constant 1.000000e+00 : f32
    %674 = vector.broadcast %cst_190 : f32 to vector<2x128xf32>
    %675 = arith.addf %674, %673 : vector<2x128xf32>
    %676 = arith.divf %674, %675 : vector<2x128xf32>
    %677 = math.tanh %668 : vector<2x128xf32>
    %678 = vector.extract_strided_slice %676 {offsets = [0, 0], sizes = [2, 32], strides = [1, 1]} : vector<2x128xf32> to vector<2x32xf32>
    %679 = vector.extract_strided_slice %676 {offsets = [0, 32], sizes = [2, 32], strides = [1, 1]} : vector<2x128xf32> to vector<2x32xf32>
    %680 = vector.extract_strided_slice %677 {offsets = [0, 64], sizes = [2, 32], strides = [1, 1]} : vector<2x128xf32> to vector<2x32xf32>
    %681 = vector.extract_strided_slice %676 {offsets = [0, 96], sizes = [2, 32], strides = [1, 1]} : vector<2x128xf32> to vector<2x32xf32>
    %682 = arith.mulf %679, %638 : vector<2x32xf32>
    %683 = arith.mulf %678, %680 : vector<2x32xf32>
    %684 = arith.addf %682, %683 : vector<2x32xf32>
    %685 = math.tanh %684 : vector<2x32xf32>
    %686 = arith.mulf %681, %685 : vector<2x32xf32>
    %687 = arith.negf %671 : vector<2x128xf32>
    %688 = math.exp %687 : vector<2x128xf32>
    %cst_191 = arith.constant 1.000000e+00 : f32
    %689 = vector.broadcast %cst_191 : f32 to vector<2x128xf32>
    %690 = arith.addf %689, %688 : vector<2x128xf32>
    %691 = arith.divf %689, %690 : vector<2x128xf32>
    %692 = math.tanh %671 : vector<2x128xf32>
    %693 = vector.extract_strided_slice %691 {offsets = [0, 0], sizes = [2, 32], strides = [1, 1]} : vector<2x128xf32> to vector<2x32xf32>
    %694 = vector.extract_strided_slice %691 {offsets = [0, 32], sizes = [2, 32], strides = [1, 1]} : vector<2x128xf32> to vector<2x32xf32>
    %695 = vector.extract_strided_slice %692 {offsets = [0, 64], sizes = [2, 32], strides = [1, 1]} : vector<2x128xf32> to vector<2x32xf32>
    %696 = vector.extract_strided_slice %691 {offsets = [0, 96], sizes = [2, 32], strides = [1, 1]} : vector<2x128xf32> to vector<2x32xf32>
    %697 = arith.mulf %694, %652 : vector<2x32xf32>
    %698 = arith.mulf %693, %695 : vector<2x32xf32>
    %699 = arith.addf %697, %698 : vector<2x32xf32>
    %700 = math.tanh %699 : vector<2x32xf32>
    %701 = arith.mulf %696, %700 : vector<2x32xf32>
    %702 = vector.broadcast %656 : vector<2x1xf32> to vector<2x32xf32>
    %703 = arith.mulf %702, %686 : vector<2x32xf32>
    %704 = arith.index_cast %c7_i32_178 : i32 to index
    %c0_192 = arith.constant 0 : index
    %c0_193 = arith.constant 0 : index
    %705 = vector.load %arg26[%704, %c0_192, %c0_193] : memref<8x2x32xf32, #tpu.memory_space<vmem>>, vector<1x2x32xf32>
    %706 = vector.shape_cast %705 : vector<1x2x32xf32> to vector<2x32xf32>
    %707 = vector.shape_cast %703 : vector<2x32xf32> to vector<1x2x32xf32>
    tpu.vector_store %arg26[%704, %c0_192, %c0_193], %707 {strides = array<i32>} : memref<8x2x32xf32, #tpu.memory_space<vmem>>, vector<1x2x32xf32>,
    %708 = vector.broadcast %659 : vector<2x1xf32> to vector<2x32xf32>
    %709 = arith.mulf %708, %701 : vector<2x32xf32>
    %710 = arith.index_cast %653 : i32 to index
    %c0_194 = arith.constant 0 : index
    %c0_195 = arith.constant 0 : index
    %711 = vector.load %arg27[%710, %c0_194, %c0_195] : memref<8x2x32xf32, #tpu.memory_space<vmem>>, vector<1x2x32xf32>
    %712 = vector.shape_cast %711 : vector<1x2x32xf32> to vector<2x32xf32>
    %713 = vector.shape_cast %709 : vector<2x32xf32> to vector<1x2x32xf32>
    tpu.vector_store %arg27[%710, %c0_194, %c0_195], %713 {strides = array<i32>} : memref<8x2x32xf32, #tpu.memory_space<vmem>>, vector<1x2x32xf32>,
    %714 = vector.broadcast %656 : vector<2x1xf32> to vector<2x32xf32>
    %715 = arith.mulf %714, %686 : vector<2x32xf32>
    %cst_196 = arith.constant 1.000000e+00 : f32
    %716 = vector.broadcast %cst_196 : f32 to vector<2x1xf32>
    %717 = arith.subf %716, %656 : vector<2x1xf32>
    %718 = vector.broadcast %717 : vector<2x1xf32> to vector<2x32xf32>
    %719 = arith.mulf %718, %631 : vector<2x32xf32>
    %720 = arith.addf %715, %719 : vector<2x32xf32>
    %721 = vector.broadcast %656 : vector<2x1xf32> to vector<2x32xf32>
    %722 = arith.mulf %721, %684 : vector<2x32xf32>
    %cst_197 = arith.constant 1.000000e+00 : f32
    %723 = vector.broadcast %cst_197 : f32 to vector<2x1xf32>
    %724 = arith.subf %723, %656 : vector<2x1xf32>
    %725 = vector.broadcast %724 : vector<2x1xf32> to vector<2x32xf32>
    %726 = arith.mulf %725, %638 : vector<2x32xf32>
    %727 = arith.addf %722, %726 : vector<2x32xf32>
    %728 = vector.broadcast %659 : vector<2x1xf32> to vector<2x32xf32>
    %729 = arith.mulf %728, %701 : vector<2x32xf32>
    %cst_198 = arith.constant 1.000000e+00 : f32
    %730 = vector.broadcast %cst_198 : f32 to vector<2x1xf32>
    %731 = arith.subf %730, %659 : vector<2x1xf32>
    %732 = vector.broadcast %731 : vector<2x1xf32> to vector<2x32xf32>
    %733 = arith.mulf %732, %645 : vector<2x32xf32>
    %734 = arith.addf %729, %733 : vector<2x32xf32>
    %735 = vector.broadcast %659 : vector<2x1xf32> to vector<2x32xf32>
    %736 = arith.mulf %735, %699 : vector<2x32xf32>
    %cst_199 = arith.constant 1.000000e+00 : f32
    %737 = vector.broadcast %cst_199 : f32 to vector<2x1xf32>
    %738 = arith.subf %737, %659 : vector<2x1xf32>
    %739 = vector.broadcast %738 : vector<2x1xf32> to vector<2x32xf32>
    %740 = arith.mulf %739, %652 : vector<2x32xf32>
    %741 = arith.addf %736, %740 : vector<2x32xf32>
    %c8_i32 = arith.constant 8 : i32
    %c0_200 = arith.constant 0 : index
    %c0_201 = arith.constant 0 : index
    %c0_202 = arith.constant 0 : index
    %742 = vector.load %arg26[%c0_200, %c0_201, %c0_202] : memref<8x2x32xf32, #tpu.memory_space<vmem>>, vector<8x2x32xf32>
    %c0_203 = arith.constant 0 : index
    %c0_204 = arith.constant 0 : index
    %c0_205 = arith.constant 0 : index
    %743 = vector.load %arg27[%c0_203, %c0_204, %c0_205] : memref<8x2x32xf32, #tpu.memory_space<vmem>>, vector<8x2x32xf32>
    %744 = arith.addf %742, %743 : vector<8x2x32xf32>
    %745 = arith.addf %720, %734 : vector<2x32xf32>
    %746 = tpu.concatenate %745, %17 in 1 : vector<2x32xf32>, vector<2x32xf32> -> vector<2x64xf32>
    %c0_206 = arith.constant 0 : index
    %c0_207 = arith.constant 0 : index
    %747 = vector.load %arg15[%c0_206, %c0_207] : memref<64x32xf32, #tpu.memory_space<vmem>>, vector<64x32xf32>
    %cst_208 = arith.constant dense<0.000000e+00> : vector<2x32xf32>
    %748 = tpu.matmul %746, %747, %cst_208 {dimension_numbers = #tpu.dot_dimension_numbers<[1], [0], [0], [1], [0, 0, 1, 1], [], []>} : vector<2x64xf32>, vector<64x32xf32>, vector<2x32xf32> -> vector<2x32xf32>
    %c0_209 = arith.constant 0 : index
    %c0_210 = arith.constant 0 : index
    %749 = vector.load %arg16[%c0_209, %c0_210] : memref<1x32xf32, #tpu.memory_space<vmem>>, vector<1x32xf32>
    %750 = vector.broadcast %749 : vector<1x32xf32> to vector<2x32xf32>
    %751 = arith.addf %748, %750 : vector<2x32xf32>
    %752 = math.tanh %751 : vector<2x32xf32>
    %c0_211 = arith.constant 0 : index
    %c0_212 = arith.constant 0 : index
    %c0_213 = arith.constant 0 : index
    %753 = vector.load %arg4[%c0_211, %c0_212, %c0_213] : memref<8x2x32xf32, #tpu.memory_space<vmem>>, vector<8x2x32xf32>
    %754 = vector.shape_cast %753 : vector<8x2x32xf32> to vector<16x32xf32>
    %c0_214 = arith.constant 0 : index
    %c0_215 = arith.constant 0 : index
    %755 = vector.load %arg18[%c0_214, %c0_215] : memref<32x128xf32, #tpu.memory_space<vmem>>, vector<32x128xf32>
    %cst_216 = arith.constant dense<0.000000e+00> : vector<16x128xf32>
    %756 = tpu.matmul %754, %755, %cst_216 {dimension_numbers = #tpu.dot_dimension_numbers<[1], [0], [0], [1], [0, 0, 1, 1], [], []>} : vector<16x32xf32>, vector<32x128xf32>, vector<16x128xf32> -> vector<16x128xf32>
    %c0_217 = arith.constant 0 : index
    %c0_218 = arith.constant 0 : index
    %757 = vector.load %arg20[%c0_217, %c0_218] : memref<1x128xf32, #tpu.memory_space<vmem>>, vector<1x128xf32>
    %758 = vector.broadcast %757 : vector<1x128xf32> to vector<16x128xf32>
    %759 = arith.addf %756, %758 : vector<16x128xf32>
    %760 = vector.shape_cast %759 : vector<16x128xf32> to vector<8x2x128xf32>
    %c0_219 = arith.constant 0 : index
    %c0_220 = arith.constant 0 : index
    %c0_221 = arith.constant 0 : index
    %761 = vector.load %arg30[%c0_219, %c0_220, %c0_221] : memref<8x2x128xf32, #tpu.memory_space<vmem>>, vector<8x2x128xf32>
    tpu.vector_store %arg30[%c0_219, %c0_220, %c0_221], %760 {strides = array<i32>} : memref<8x2x128xf32, #tpu.memory_space<vmem>>, vector<8x2x128xf32>,
    %c0_222 = arith.constant 0 : index
    %c0_223 = arith.constant 0 : index
    %762 = vector.load %arg19[%c0_222, %c0_223] : memref<32x128xf32, #tpu.memory_space<vmem>>, vector<32x128xf32>
    %c0_i32_224 = arith.constant 0 : i32
    %763 = arith.index_cast %c0_i32_224 : i32 to index
    %c0_225 = arith.constant 0 : index
    %c0_226 = arith.constant 0 : index
    %764 = vector.load %arg30[%763, %c0_225, %c0_226] : memref<8x2x128xf32, #tpu.memory_space<vmem>>, vector<1x2x128xf32>
    %765 = vector.shape_cast %764 : vector<1x2x128xf32> to vector<2x128xf32>
    %cst_227 = arith.constant dense<0.000000e+00> : vector<2x128xf32>
    %766 = tpu.matmul %752, %762, %cst_227 {dimension_numbers = #tpu.dot_dimension_numbers<[1], [0], [0], [1], [0, 0, 1, 1], [], []>} : vector<2x32xf32>, vector<32x128xf32>, vector<2x128xf32> -> vector<2x128xf32>
    %767 = arith.addf %765, %766 : vector<2x128xf32>
    %768 = arith.negf %767 : vector<2x128xf32>
    %769 = math.exp %768 : vector<2x128xf32>
    %cst_228 = arith.constant 1.000000e+00 : f32
    %770 = vector.broadcast %cst_228 : f32 to vector<2x128xf32>
    %771 = arith.addf %770, %769 : vector<2x128xf32>
    %772 = arith.divf %770, %771 : vector<2x128xf32>
    %773 = math.tanh %767 : vector<2x128xf32>
    %774 = vector.extract_strided_slice %772 {offsets = [0, 0], sizes = [2, 32], strides = [1, 1]} : vector<2x128xf32> to vector<2x32xf32>
    %775 = vector.extract_strided_slice %772 {offsets = [0, 32], sizes = [2, 32], strides = [1, 1]} : vector<2x128xf32> to vector<2x32xf32>
    %776 = vector.extract_strided_slice %773 {offsets = [0, 64], sizes = [2, 32], strides = [1, 1]} : vector<2x128xf32> to vector<2x32xf32>
    %777 = vector.extract_strided_slice %772 {offsets = [0, 96], sizes = [2, 32], strides = [1, 1]} : vector<2x128xf32> to vector<2x32xf32>
    %778 = arith.mulf %775, %752 : vector<2x32xf32>
    %779 = arith.mulf %774, %776 : vector<2x32xf32>
    %780 = arith.addf %778, %779 : vector<2x32xf32>
    %781 = math.tanh %780 : vector<2x32xf32>
    %782 = arith.mulf %777, %781 : vector<2x32xf32>
    %783 = arith.index_cast %c0_i32_224 : i32 to index
    %c0_229 = arith.constant 0 : index
    %c0_230 = arith.constant 0 : index
    %784 = vector.load %arg29[%783, %c0_229, %c0_230] : memref<8x2x32xf32, #tpu.memory_space<vmem>>, vector<1x2x32xf32>
    %785 = vector.shape_cast %784 : vector<1x2x32xf32> to vector<2x32xf32>
    %786 = vector.shape_cast %782 : vector<2x32xf32> to vector<1x2x32xf32>
    tpu.vector_store %arg29[%783, %c0_229, %c0_230], %786 {strides = array<i32>} : memref<8x2x32xf32, #tpu.memory_space<vmem>>, vector<1x2x32xf32>,
    %c1_i32_231 = arith.constant 1 : i32
    %787 = arith.index_cast %c1_i32_231 : i32 to index
    %c0_232 = arith.constant 0 : index
    %c0_233 = arith.constant 0 : index
    %788 = vector.load %arg30[%787, %c0_232, %c0_233] : memref<8x2x128xf32, #tpu.memory_space<vmem>>, vector<1x2x128xf32>
    %789 = vector.shape_cast %788 : vector<1x2x128xf32> to vector<2x128xf32>
    %cst_234 = arith.constant dense<0.000000e+00> : vector<2x128xf32>
    %790 = tpu.matmul %782, %762, %cst_234 {dimension_numbers = #tpu.dot_dimension_numbers<[1], [0], [0], [1], [0, 0, 1, 1], [], []>} : vector<2x32xf32>, vector<32x128xf32>, vector<2x128xf32> -> vector<2x128xf32>
    %791 = arith.addf %789, %790 : vector<2x128xf32>
    %792 = arith.negf %791 : vector<2x128xf32>
    %793 = math.exp %792 : vector<2x128xf32>
    %cst_235 = arith.constant 1.000000e+00 : f32
    %794 = vector.broadcast %cst_235 : f32 to vector<2x128xf32>
    %795 = arith.addf %794, %793 : vector<2x128xf32>
    %796 = arith.divf %794, %795 : vector<2x128xf32>
    %797 = math.tanh %791 : vector<2x128xf32>
    %798 = vector.extract_strided_slice %796 {offsets = [0, 0], sizes = [2, 32], strides = [1, 1]} : vector<2x128xf32> to vector<2x32xf32>
    %799 = vector.extract_strided_slice %796 {offsets = [0, 32], sizes = [2, 32], strides = [1, 1]} : vector<2x128xf32> to vector<2x32xf32>
    %800 = vector.extract_strided_slice %797 {offsets = [0, 64], sizes = [2, 32], strides = [1, 1]} : vector<2x128xf32> to vector<2x32xf32>
    %801 = vector.extract_strided_slice %796 {offsets = [0, 96], sizes = [2, 32], strides = [1, 1]} : vector<2x128xf32> to vector<2x32xf32>
    %802 = arith.mulf %799, %780 : vector<2x32xf32>
    %803 = arith.mulf %798, %800 : vector<2x32xf32>
    %804 = arith.addf %802, %803 : vector<2x32xf32>
    %805 = math.tanh %804 : vector<2x32xf32>
    %806 = arith.mulf %801, %805 : vector<2x32xf32>
    %807 = arith.index_cast %c1_i32_231 : i32 to index
    %c0_236 = arith.constant 0 : index
    %c0_237 = arith.constant 0 : index
    %808 = vector.load %arg29[%807, %c0_236, %c0_237] : memref<8x2x32xf32, #tpu.memory_space<vmem>>, vector<1x2x32xf32>
    %809 = vector.shape_cast %808 : vector<1x2x32xf32> to vector<2x32xf32>
    %810 = vector.shape_cast %806 : vector<2x32xf32> to vector<1x2x32xf32>
    tpu.vector_store %arg29[%807, %c0_236, %c0_237], %810 {strides = array<i32>} : memref<8x2x32xf32, #tpu.memory_space<vmem>>, vector<1x2x32xf32>,
    %c2_i32_238 = arith.constant 2 : i32
    %811 = arith.index_cast %c2_i32_238 : i32 to index
    %c0_239 = arith.constant 0 : index
    %c0_240 = arith.constant 0 : index
    %812 = vector.load %arg30[%811, %c0_239, %c0_240] : memref<8x2x128xf32, #tpu.memory_space<vmem>>, vector<1x2x128xf32>
    %813 = vector.shape_cast %812 : vector<1x2x128xf32> to vector<2x128xf32>
    %cst_241 = arith.constant dense<0.000000e+00> : vector<2x128xf32>
    %814 = tpu.matmul %806, %762, %cst_241 {dimension_numbers = #tpu.dot_dimension_numbers<[1], [0], [0], [1], [0, 0, 1, 1], [], []>} : vector<2x32xf32>, vector<32x128xf32>, vector<2x128xf32> -> vector<2x128xf32>
    %815 = arith.addf %813, %814 : vector<2x128xf32>
    %816 = arith.negf %815 : vector<2x128xf32>
    %817 = math.exp %816 : vector<2x128xf32>
    %cst_242 = arith.constant 1.000000e+00 : f32
    %818 = vector.broadcast %cst_242 : f32 to vector<2x128xf32>
    %819 = arith.addf %818, %817 : vector<2x128xf32>
    %820 = arith.divf %818, %819 : vector<2x128xf32>
    %821 = math.tanh %815 : vector<2x128xf32>
    %822 = vector.extract_strided_slice %820 {offsets = [0, 0], sizes = [2, 32], strides = [1, 1]} : vector<2x128xf32> to vector<2x32xf32>
    %823 = vector.extract_strided_slice %820 {offsets = [0, 32], sizes = [2, 32], strides = [1, 1]} : vector<2x128xf32> to vector<2x32xf32>
    %824 = vector.extract_strided_slice %821 {offsets = [0, 64], sizes = [2, 32], strides = [1, 1]} : vector<2x128xf32> to vector<2x32xf32>
    %825 = vector.extract_strided_slice %820 {offsets = [0, 96], sizes = [2, 32], strides = [1, 1]} : vector<2x128xf32> to vector<2x32xf32>
    %826 = arith.mulf %823, %804 : vector<2x32xf32>
    %827 = arith.mulf %822, %824 : vector<2x32xf32>
    %828 = arith.addf %826, %827 : vector<2x32xf32>
    %829 = math.tanh %828 : vector<2x32xf32>
    %830 = arith.mulf %825, %829 : vector<2x32xf32>
    %831 = arith.index_cast %c2_i32_238 : i32 to index
    %c0_243 = arith.constant 0 : index
    %c0_244 = arith.constant 0 : index
    %832 = vector.load %arg29[%831, %c0_243, %c0_244] : memref<8x2x32xf32, #tpu.memory_space<vmem>>, vector<1x2x32xf32>
    %833 = vector.shape_cast %832 : vector<1x2x32xf32> to vector<2x32xf32>
    %834 = vector.shape_cast %830 : vector<2x32xf32> to vector<1x2x32xf32>
    tpu.vector_store %arg29[%831, %c0_243, %c0_244], %834 {strides = array<i32>} : memref<8x2x32xf32, #tpu.memory_space<vmem>>, vector<1x2x32xf32>,
    %c3_i32_245 = arith.constant 3 : i32
    %835 = arith.index_cast %c3_i32_245 : i32 to index
    %c0_246 = arith.constant 0 : index
    %c0_247 = arith.constant 0 : index
    %836 = vector.load %arg30[%835, %c0_246, %c0_247] : memref<8x2x128xf32, #tpu.memory_space<vmem>>, vector<1x2x128xf32>
    %837 = vector.shape_cast %836 : vector<1x2x128xf32> to vector<2x128xf32>
    %cst_248 = arith.constant dense<0.000000e+00> : vector<2x128xf32>
    %838 = tpu.matmul %830, %762, %cst_248 {dimension_numbers = #tpu.dot_dimension_numbers<[1], [0], [0], [1], [0, 0, 1, 1], [], []>} : vector<2x32xf32>, vector<32x128xf32>, vector<2x128xf32> -> vector<2x128xf32>
    %839 = arith.addf %837, %838 : vector<2x128xf32>
    %840 = arith.negf %839 : vector<2x128xf32>
    %841 = math.exp %840 : vector<2x128xf32>
    %cst_249 = arith.constant 1.000000e+00 : f32
    %842 = vector.broadcast %cst_249 : f32 to vector<2x128xf32>
    %843 = arith.addf %842, %841 : vector<2x128xf32>
    %844 = arith.divf %842, %843 : vector<2x128xf32>
    %845 = math.tanh %839 : vector<2x128xf32>
    %846 = vector.extract_strided_slice %844 {offsets = [0, 0], sizes = [2, 32], strides = [1, 1]} : vector<2x128xf32> to vector<2x32xf32>
    %847 = vector.extract_strided_slice %844 {offsets = [0, 32], sizes = [2, 32], strides = [1, 1]} : vector<2x128xf32> to vector<2x32xf32>
    %848 = vector.extract_strided_slice %845 {offsets = [0, 64], sizes = [2, 32], strides = [1, 1]} : vector<2x128xf32> to vector<2x32xf32>
    %849 = vector.extract_strided_slice %844 {offsets = [0, 96], sizes = [2, 32], strides = [1, 1]} : vector<2x128xf32> to vector<2x32xf32>
    %850 = arith.mulf %847, %828 : vector<2x32xf32>
    %851 = arith.mulf %846, %848 : vector<2x32xf32>
    %852 = arith.addf %850, %851 : vector<2x32xf32>
    %853 = math.tanh %852 : vector<2x32xf32>
    %854 = arith.mulf %849, %853 : vector<2x32xf32>
    %855 = arith.index_cast %c3_i32_245 : i32 to index
    %c0_250 = arith.constant 0 : index
    %c0_251 = arith.constant 0 : index
    %856 = vector.load %arg29[%855, %c0_250, %c0_251] : memref<8x2x32xf32, #tpu.memory_space<vmem>>, vector<1x2x32xf32>
    %857 = vector.shape_cast %856 : vector<1x2x32xf32> to vector<2x32xf32>
    %858 = vector.shape_cast %854 : vector<2x32xf32> to vector<1x2x32xf32>
    tpu.vector_store %arg29[%855, %c0_250, %c0_251], %858 {strides = array<i32>} : memref<8x2x32xf32, #tpu.memory_space<vmem>>, vector<1x2x32xf32>,
    %c4_i32_252 = arith.constant 4 : i32
    %859 = arith.index_cast %c4_i32_252 : i32 to index
    %c0_253 = arith.constant 0 : index
    %c0_254 = arith.constant 0 : index
    %860 = vector.load %arg30[%859, %c0_253, %c0_254] : memref<8x2x128xf32, #tpu.memory_space<vmem>>, vector<1x2x128xf32>
    %861 = vector.shape_cast %860 : vector<1x2x128xf32> to vector<2x128xf32>
    %cst_255 = arith.constant dense<0.000000e+00> : vector<2x128xf32>
    %862 = tpu.matmul %854, %762, %cst_255 {dimension_numbers = #tpu.dot_dimension_numbers<[1], [0], [0], [1], [0, 0, 1, 1], [], []>} : vector<2x32xf32>, vector<32x128xf32>, vector<2x128xf32> -> vector<2x128xf32>
    %863 = arith.addf %861, %862 : vector<2x128xf32>
    %864 = arith.negf %863 : vector<2x128xf32>
    %865 = math.exp %864 : vector<2x128xf32>
    %cst_256 = arith.constant 1.000000e+00 : f32
    %866 = vector.broadcast %cst_256 : f32 to vector<2x128xf32>
    %867 = arith.addf %866, %865 : vector<2x128xf32>
    %868 = arith.divf %866, %867 : vector<2x128xf32>
    %869 = math.tanh %863 : vector<2x128xf32>
    %870 = vector.extract_strided_slice %868 {offsets = [0, 0], sizes = [2, 32], strides = [1, 1]} : vector<2x128xf32> to vector<2x32xf32>
    %871 = vector.extract_strided_slice %868 {offsets = [0, 32], sizes = [2, 32], strides = [1, 1]} : vector<2x128xf32> to vector<2x32xf32>
    %872 = vector.extract_strided_slice %869 {offsets = [0, 64], sizes = [2, 32], strides = [1, 1]} : vector<2x128xf32> to vector<2x32xf32>
    %873 = vector.extract_strided_slice %868 {offsets = [0, 96], sizes = [2, 32], strides = [1, 1]} : vector<2x128xf32> to vector<2x32xf32>
    %874 = arith.mulf %871, %852 : vector<2x32xf32>
    %875 = arith.mulf %870, %872 : vector<2x32xf32>
    %876 = arith.addf %874, %875 : vector<2x32xf32>
    %877 = math.tanh %876 : vector<2x32xf32>
    %878 = arith.mulf %873, %877 : vector<2x32xf32>
    %879 = arith.index_cast %c4_i32_252 : i32 to index
    %c0_257 = arith.constant 0 : index
    %c0_258 = arith.constant 0 : index
    %880 = vector.load %arg29[%879, %c0_257, %c0_258] : memref<8x2x32xf32, #tpu.memory_space<vmem>>, vector<1x2x32xf32>
    %881 = vector.shape_cast %880 : vector<1x2x32xf32> to vector<2x32xf32>
    %882 = vector.shape_cast %878 : vector<2x32xf32> to vector<1x2x32xf32>
    tpu.vector_store %arg29[%879, %c0_257, %c0_258], %882 {strides = array<i32>} : memref<8x2x32xf32, #tpu.memory_space<vmem>>, vector<1x2x32xf32>,
    %c5_i32_259 = arith.constant 5 : i32
    %883 = arith.index_cast %c5_i32_259 : i32 to index
    %c0_260 = arith.constant 0 : index
    %c0_261 = arith.constant 0 : index
    %884 = vector.load %arg30[%883, %c0_260, %c0_261] : memref<8x2x128xf32, #tpu.memory_space<vmem>>, vector<1x2x128xf32>
    %885 = vector.shape_cast %884 : vector<1x2x128xf32> to vector<2x128xf32>
    %cst_262 = arith.constant dense<0.000000e+00> : vector<2x128xf32>
    %886 = tpu.matmul %878, %762, %cst_262 {dimension_numbers = #tpu.dot_dimension_numbers<[1], [0], [0], [1], [0, 0, 1, 1], [], []>} : vector<2x32xf32>, vector<32x128xf32>, vector<2x128xf32> -> vector<2x128xf32>
    %887 = arith.addf %885, %886 : vector<2x128xf32>
    %888 = arith.negf %887 : vector<2x128xf32>
    %889 = math.exp %888 : vector<2x128xf32>
    %cst_263 = arith.constant 1.000000e+00 : f32
    %890 = vector.broadcast %cst_263 : f32 to vector<2x128xf32>
    %891 = arith.addf %890, %889 : vector<2x128xf32>
    %892 = arith.divf %890, %891 : vector<2x128xf32>
    %893 = math.tanh %887 : vector<2x128xf32>
    %894 = vector.extract_strided_slice %892 {offsets = [0, 0], sizes = [2, 32], strides = [1, 1]} : vector<2x128xf32> to vector<2x32xf32>
    %895 = vector.extract_strided_slice %892 {offsets = [0, 32], sizes = [2, 32], strides = [1, 1]} : vector<2x128xf32> to vector<2x32xf32>
    %896 = vector.extract_strided_slice %893 {offsets = [0, 64], sizes = [2, 32], strides = [1, 1]} : vector<2x128xf32> to vector<2x32xf32>
    %897 = vector.extract_strided_slice %892 {offsets = [0, 96], sizes = [2, 32], strides = [1, 1]} : vector<2x128xf32> to vector<2x32xf32>
    %898 = arith.mulf %895, %876 : vector<2x32xf32>
    %899 = arith.mulf %894, %896 : vector<2x32xf32>
    %900 = arith.addf %898, %899 : vector<2x32xf32>
    %901 = math.tanh %900 : vector<2x32xf32>
    %902 = arith.mulf %897, %901 : vector<2x32xf32>
    %903 = arith.index_cast %c5_i32_259 : i32 to index
    %c0_264 = arith.constant 0 : index
    %c0_265 = arith.constant 0 : index
    %904 = vector.load %arg29[%903, %c0_264, %c0_265] : memref<8x2x32xf32, #tpu.memory_space<vmem>>, vector<1x2x32xf32>
    %905 = vector.shape_cast %904 : vector<1x2x32xf32> to vector<2x32xf32>
    %906 = vector.shape_cast %902 : vector<2x32xf32> to vector<1x2x32xf32>
    tpu.vector_store %arg29[%903, %c0_264, %c0_265], %906 {strides = array<i32>} : memref<8x2x32xf32, #tpu.memory_space<vmem>>, vector<1x2x32xf32>,
    %c6_i32_266 = arith.constant 6 : i32
    %907 = arith.index_cast %c6_i32_266 : i32 to index
    %c0_267 = arith.constant 0 : index
    %c0_268 = arith.constant 0 : index
    %908 = vector.load %arg30[%907, %c0_267, %c0_268] : memref<8x2x128xf32, #tpu.memory_space<vmem>>, vector<1x2x128xf32>
    %909 = vector.shape_cast %908 : vector<1x2x128xf32> to vector<2x128xf32>
    %cst_269 = arith.constant dense<0.000000e+00> : vector<2x128xf32>
    %910 = tpu.matmul %902, %762, %cst_269 {dimension_numbers = #tpu.dot_dimension_numbers<[1], [0], [0], [1], [0, 0, 1, 1], [], []>} : vector<2x32xf32>, vector<32x128xf32>, vector<2x128xf32> -> vector<2x128xf32>
    %911 = arith.addf %909, %910 : vector<2x128xf32>
    %912 = arith.negf %911 : vector<2x128xf32>
    %913 = math.exp %912 : vector<2x128xf32>
    %cst_270 = arith.constant 1.000000e+00 : f32
    %914 = vector.broadcast %cst_270 : f32 to vector<2x128xf32>
    %915 = arith.addf %914, %913 : vector<2x128xf32>
    %916 = arith.divf %914, %915 : vector<2x128xf32>
    %917 = math.tanh %911 : vector<2x128xf32>
    %918 = vector.extract_strided_slice %916 {offsets = [0, 0], sizes = [2, 32], strides = [1, 1]} : vector<2x128xf32> to vector<2x32xf32>
    %919 = vector.extract_strided_slice %916 {offsets = [0, 32], sizes = [2, 32], strides = [1, 1]} : vector<2x128xf32> to vector<2x32xf32>
    %920 = vector.extract_strided_slice %917 {offsets = [0, 64], sizes = [2, 32], strides = [1, 1]} : vector<2x128xf32> to vector<2x32xf32>
    %921 = vector.extract_strided_slice %916 {offsets = [0, 96], sizes = [2, 32], strides = [1, 1]} : vector<2x128xf32> to vector<2x32xf32>
    %922 = arith.mulf %919, %900 : vector<2x32xf32>
    %923 = arith.mulf %918, %920 : vector<2x32xf32>
    %924 = arith.addf %922, %923 : vector<2x32xf32>
    %925 = math.tanh %924 : vector<2x32xf32>
    %926 = arith.mulf %921, %925 : vector<2x32xf32>
    %927 = arith.index_cast %c6_i32_266 : i32 to index
    %c0_271 = arith.constant 0 : index
    %c0_272 = arith.constant 0 : index
    %928 = vector.load %arg29[%927, %c0_271, %c0_272] : memref<8x2x32xf32, #tpu.memory_space<vmem>>, vector<1x2x32xf32>
    %929 = vector.shape_cast %928 : vector<1x2x32xf32> to vector<2x32xf32>
    %930 = vector.shape_cast %926 : vector<2x32xf32> to vector<1x2x32xf32>
    tpu.vector_store %arg29[%927, %c0_271, %c0_272], %930 {strides = array<i32>} : memref<8x2x32xf32, #tpu.memory_space<vmem>>, vector<1x2x32xf32>,
    %c7_i32_273 = arith.constant 7 : i32
    %931 = arith.index_cast %c7_i32_273 : i32 to index
    %c0_274 = arith.constant 0 : index
    %c0_275 = arith.constant 0 : index
    %932 = vector.load %arg30[%931, %c0_274, %c0_275] : memref<8x2x128xf32, #tpu.memory_space<vmem>>, vector<1x2x128xf32>
    %933 = vector.shape_cast %932 : vector<1x2x128xf32> to vector<2x128xf32>
    %cst_276 = arith.constant dense<0.000000e+00> : vector<2x128xf32>
    %934 = tpu.matmul %926, %762, %cst_276 {dimension_numbers = #tpu.dot_dimension_numbers<[1], [0], [0], [1], [0, 0, 1, 1], [], []>} : vector<2x32xf32>, vector<32x128xf32>, vector<2x128xf32> -> vector<2x128xf32>
    %935 = arith.addf %933, %934 : vector<2x128xf32>
    %936 = arith.negf %935 : vector<2x128xf32>
    %937 = math.exp %936 : vector<2x128xf32>
    %cst_277 = arith.constant 1.000000e+00 : f32
    %938 = vector.broadcast %cst_277 : f32 to vector<2x128xf32>
    %939 = arith.addf %938, %937 : vector<2x128xf32>
    %940 = arith.divf %938, %939 : vector<2x128xf32>
    %941 = math.tanh %935 : vector<2x128xf32>
    %942 = vector.extract_strided_slice %940 {offsets = [0, 0], sizes = [2, 32], strides = [1, 1]} : vector<2x128xf32> to vector<2x32xf32>
    %943 = vector.extract_strided_slice %940 {offsets = [0, 32], sizes = [2, 32], strides = [1, 1]} : vector<2x128xf32> to vector<2x32xf32>
    %944 = vector.extract_strided_slice %941 {offsets = [0, 64], sizes = [2, 32], strides = [1, 1]} : vector<2x128xf32> to vector<2x32xf32>
    %945 = vector.extract_strided_slice %940 {offsets = [0, 96], sizes = [2, 32], strides = [1, 1]} : vector<2x128xf32> to vector<2x32xf32>
    %946 = arith.mulf %943, %924 : vector<2x32xf32>
    %947 = arith.mulf %942, %944 : vector<2x32xf32>
    %948 = arith.addf %946, %947 : vector<2x32xf32>
    %949 = math.tanh %948 : vector<2x32xf32>
    %950 = arith.mulf %945, %949 : vector<2x32xf32>
    %951 = arith.index_cast %c7_i32_273 : i32 to index
    %c0_278 = arith.constant 0 : index
    %c0_279 = arith.constant 0 : index
    %952 = vector.load %arg29[%951, %c0_278, %c0_279] : memref<8x2x32xf32, #tpu.memory_space<vmem>>, vector<1x2x32xf32>
    %953 = vector.shape_cast %952 : vector<1x2x32xf32> to vector<2x32xf32>
    %954 = vector.shape_cast %950 : vector<2x32xf32> to vector<1x2x32xf32>
    tpu.vector_store %arg29[%951, %c0_278, %c0_279], %954 {strides = array<i32>} : memref<8x2x32xf32, #tpu.memory_space<vmem>>, vector<1x2x32xf32>,
    %c8_i32_280 = arith.constant 8 : i32
    %c0_281 = arith.constant 0 : index
    %c0_282 = arith.constant 0 : index
    %c0_283 = arith.constant 0 : index
    %955 = vector.load %arg29[%c0_281, %c0_282, %c0_283] : memref<8x2x32xf32, #tpu.memory_space<vmem>>, vector<8x2x32xf32>
    %956 = vector.shape_cast %744 : vector<8x2x32xf32> to vector<16x32xf32>
    %c0_284 = arith.constant 0 : index
    %c0_285 = arith.constant 0 : index
    %957 = vector.load %arg17[%c0_284, %c0_285] : memref<32x32xf32, #tpu.memory_space<vmem>>, vector<32x32xf32>
    %cst_286 = arith.constant dense<0.000000e+00> : vector<16x32xf32>
    %958 = tpu.matmul %956, %957, %cst_286 {dimension_numbers = #tpu.dot_dimension_numbers<[1], [0], [0], [1], [0, 0, 1, 1], [], []>} : vector<16x32xf32>, vector<32x32xf32>, vector<16x32xf32> -> vector<16x32xf32>
    %959 = vector.shape_cast %958 : vector<16x32xf32> to vector<8x2x32xf32>
    "tpu.trace_start"() <{level = 10 : i32, message = "tbh,sbh->tbs"}> : () -> ()
    %cst_287 = arith.constant dense<0.000000e+00> : vector<2x8x8xf32>
    %960 = tpu.matmul %959, %955, %cst_287 {dimension_numbers = #tpu.dot_dimension_numbers<[2], [2], [0], [0], [0, 1, 0, 0, 1, 0], [1], [1]>} : vector<8x2x32xf32>, vector<8x2x32xf32>, vector<2x8x8xf32> -> vector<2x8x8xf32>
    %961 = tpu.transpose %960, [2, 0, 1] : vector<2x8x8xf32> -> vector<8x2x8xf32>
    "tpu.trace_stop"() : () -> ()
    %c0_288 = arith.constant 0 : index
    %c0_289 = arith.constant 0 : index
    %962 = vector.load %arg3[%c0_288, %c0_289] : memref<2x8xf32, #tpu.memory_space<vmem>>, vector<2x8xf32>
    %cst_290 = arith.constant 1.000000e+00 : f32
    %963 = vector.broadcast %cst_290 : f32 to vector<2x8xf32>
    %964 = arith.subf %962, %963 : vector<2x8xf32>
    %cst_291 = arith.constant 1.000000e+09 : f32
    %965 = vector.broadcast %cst_291 : f32 to vector<2x8xf32>
    %966 = arith.mulf %964, %965 : vector<2x8xf32>
    %967 = vector.shape_cast %966 : vector<2x8xf32> to vector<1x2x8xf32>
    %968 = vector.broadcast %967 : vector<1x2x8xf32> to vector<8x2x8xf32>
    %969 = arith.addf %961, %968 : vector<8x2x8xf32>
    %cst_292 = arith.constant dense<0xFF800000> : vector<8x2xf32>
    %970 = vector.multi_reduction <maximumf>, %969, %cst_292 [2] : vector<8x2x8xf32> to vector<8x2xf32>
    %971 = vector.shape_cast %970 : vector<8x2xf32> to vector<8x2x1xf32>
    %972 = vector.broadcast %971 : vector<8x2x1xf32> to vector<8x2x8xf32>
    %973 = arith.subf %969, %972 : vector<8x2x8xf32>
    %974 = math.exp %973 : vector<8x2x8xf32>
    %cst_293 = arith.constant dense<0.000000e+00> : vector<8x2xf32>
    %975 = vector.multi_reduction <add>, %974, %cst_293 [2] : vector<8x2x8xf32> to vector<8x2xf32>
    %976 = vector.shape_cast %975 : vector<8x2xf32> to vector<8x2x1xf32>
    %977 = vector.broadcast %976 : vector<8x2x1xf32> to vector<8x2x8xf32>
    %978 = arith.divf %974, %977 : vector<8x2x8xf32>
    "tpu.trace_start"() <{level = 10 : i32, message = "tbs,sbh->tbh"}> : () -> ()
    %cst_294 = arith.constant dense<0.000000e+00> : vector<2x32x8xf32>
    %979 = tpu.matmul %744, %978, %cst_294 {dimension_numbers = #tpu.dot_dimension_numbers<[0], [2], [2], [0], [0, 1, 0, 2, 1, 0], [1], [1]>} : vector<8x2x32xf32>, vector<8x2x8xf32>, vector<2x32x8xf32> -> vector<2x32x8xf32>
    %980 = tpu.transpose %979, [2, 0, 1] : vector<2x32x8xf32> -> vector<8x2x32xf32>
    "tpu.trace_stop"() : () -> ()
    %981 = vector.shape_cast %955 : vector<8x2x32xf32> to vector<16x32xf32>
    %c0_295 = arith.constant 0 : index
    %c0_296 = arith.constant 0 : index
    %982 = vector.load %arg21[%c0_295, %c0_296] : memref<32x128xf32, #tpu.memory_space<vmem>>, vector<32x128xf32>
    %cst_297 = arith.constant dense<0.000000e+00> : vector<16x128xf32>
    %983 = tpu.matmul %981, %982, %cst_297 {dimension_numbers = #tpu.dot_dimension_numbers<[1], [0], [0], [1], [0, 0, 1, 1], [], []>} : vector<16x32xf32>, vector<32x128xf32>, vector<16x128xf32> -> vector<16x128xf32>
    %984 = vector.shape_cast %980 : vector<8x2x32xf32> to vector<16x32xf32>
    %c0_298 = arith.constant 0 : index
    %c0_299 = arith.constant 0 : index
    %985 = vector.load %arg22[%c0_298, %c0_299] : memref<32x128xf32, #tpu.memory_space<vmem>>, vector<32x128xf32>
    %cst_300 = arith.constant dense<0.000000e+00> : vector<16x128xf32>
    %986 = tpu.matmul %984, %985, %cst_300 {dimension_numbers = #tpu.dot_dimension_numbers<[1], [0], [0], [1], [0, 0, 1, 1], [], []>} : vector<16x32xf32>, vector<32x128xf32>, vector<16x128xf32> -> vector<16x128xf32>
    %987 = arith.addf %983, %986 : vector<16x128xf32>
    %c0_301 = arith.constant 0 : index
    %c0_302 = arith.constant 0 : index
    %988 = vector.load %arg23[%c0_301, %c0_302] : memref<1x128xf32, #tpu.memory_space<vmem>>, vector<1x128xf32>
    %989 = vector.broadcast %988 : vector<1x128xf32> to vector<16x128xf32>
    %990 = arith.addf %987, %989 : vector<16x128xf32>
    %cst_303 = arith.constant dense<0xFF800000> : vector<16xf32>
    %991 = vector.multi_reduction <maximumf>, %990, %cst_303 [1] : vector<16x128xf32> to vector<16xf32>
    %992 = vector.shape_cast %991 : vector<16xf32> to vector<16x1xf32>
    %993 = vector.broadcast %992 : vector<16x1xf32> to vector<16x128xf32>
    %994 = arith.subf %990, %993 : vector<16x128xf32>
    %995 = math.exp %994 : vector<16x128xf32>
    %cst_304 = arith.constant dense<0.000000e+00> : vector<16xf32>
    %996 = vector.multi_reduction <add>, %995, %cst_304 [1] : vector<16x128xf32> to vector<16xf32>
    %997 = vector.shape_cast %996 : vector<16xf32> to vector<16x1xf32>
    %998 = math.log %997 : vector<16x1xf32>
    %999 = arith.addf %998, %992 : vector<16x1xf32>
    %1000 = vector.broadcast %999 : vector<16x1xf32> to vector<16x128xf32>
    %1001 = arith.subf %990, %1000 : vector<16x128xf32>
    %1002 = vector.shape_cast %1001 : vector<16x128xf32> to vector<8x2x128xf32>
    %c0_305 = arith.constant 0 : index
    %c0_306 = arith.constant 0 : index
    %c0_307 = arith.constant 0 : index
    %1003 = vector.load %arg24[%c0_305, %c0_306, %c0_307] : memref<8x2x128xf32, #tpu.memory_space<vmem>>, vector<8x2x128xf32>
    tpu.vector_store %arg24[%c0_305, %c0_306, %c0_307], %1002 {strides = array<i32>} : memref<8x2x128xf32, #tpu.memory_space<vmem>>, vector<8x2x128xf32>,
    %c0_308 = arith.constant 0 : index
    %c0_309 = arith.constant 0 : index
    %c0_310 = arith.constant 0 : index
    %1004 = vector.load %arg25[%c0_308, %c0_309, %c0_310] : memref<8x2x8xf32, #tpu.memory_space<vmem>>, vector<8x2x8xf32>
    tpu.vector_store %arg25[%c0_308, %c0_309, %c0_310], %978 {strides = array<i32>} : memref<8x2x8xf32, #tpu.memory_space<vmem>>, vector<8x2x8xf32>,
    return
  }
}

</mosaic_0001>

<bundles_post_ra>
// kernel: _lambda_.1
= control target key start
LH: loop header
LB: loop body
LE: loop exit
PB: predicated region body
PF: predicated region fallthrough
CT: control target
= control target key end

     0   :  { %s13096_s0 = inlined_call_operand.vmem [shape: f32[2,3], index: 0, kind: input, shape index: {}]   ;;  %s13097_s1 = inlined_call_operand.vmem [shape: f32[8,2,32], index: 1, kind: input, shape index: {}]   ;;  %s13098_s2 = inlined_call_operand.vmem [shape: f32[8,2,1], index: 2, kind: input, shape index: {}]   ;;  %s13099_s3 = inlined_call_operand.vmem [shape: f32[2,8], index: 3, kind: input, shape index: {}]   ;;  %s13100_s4 = inlined_call_operand.vmem [shape: f32[8,2,32], index: 4, kind: input, shape index: {}]   ;;  %s13101_s5 = inlined_call_operand.vmem [shape: f32[3,32], index: 5, kind: input, shape index: {}]   ;;  %s13102_s6 = inlined_call_operand.vmem [shape: f32[1,32], index: 6, kind: input, shape index: {}]   ;;  %s13103_s7 = inlined_call_operand.vmem [shape: f32[32,32], index: 7, kind: input, shape index: {}]   ;;  %s13104_s8 = inlined_call_operand.vmem [shape: f32[1,32], index: 8, kind: input, shape index: {}]   ;;  %s13105_s9 = inlined_call_operand.vmem [shape: f32[32,32], index: 9, kind: input, shape index: {}]   ;;  %s13106_s10 = inlined_call_operand.vmem [shape: f32[1,32], index: 10, kind: input, shape index: {}]   ;;  %s13107_s11 = inlined_call_operand.vmem [shape: f32[32,256], index: 11, kind: input, shape index: {}]   ;;  %s13108_s12 = inlined_call_operand.vmem [shape: f32[1,256], index: 12, kind: input, shape index: {}]   ;;  %s13109_s13 = inlined_call_operand.vmem [shape: f32[32,128], index: 13, kind: input, shape index: {}]   ;;  %s13110_s14 = inlined_call_operand.vmem [shape: f32[32,128], index: 14, kind: input, shape index: {}]   ;;  %s13111_s15 = inlined_call_operand.vmem [shape: f32[64,32], index: 15, kind: input, shape index: {}]   ;;  %s13112_s16 = inlined_call_operand.vmem [shape: f32[1,32], index: 16, kind: input, shape index: {}]   ;;  %s13113_s17 = inlined_call_operand.vmem [shape: f32[32,32], index: 17, kind: input, shape index: {}]   ;;  %s13114_s18 = inlined_call_operand.vmem [shape: f32[32,128], index: 18, kind: input, shape index: {}]   ;;  %s13115_s19 = inlined_call_operand.vmem [shape: f32[32,128], index: 19, kind: input, shape index: {}]   ;;  %s13116_s20 = inlined_call_operand.vmem [shape: f32[1,128], index: 20, kind: input, shape index: {}]   ;;  %s13117_s21 = inlined_call_operand.vmem [shape: f32[32,128], index: 21, kind: input, shape index: {}]   ;;  %s13118_s22 = inlined_call_operand.vmem [shape: f32[32,128], index: 22, kind: input, shape index: {}]   ;;  %s13119_s23 = inlined_call_operand.vmem [shape: f32[1,128], index: 23, kind: input, shape index: {}]   ;;  %s13120_s24 = inlined_call_operand.vmem [shape: f32[8,2,128], index: 24, kind: output, shape index: {0}]   ;;  %s13121_s25 = inlined_call_operand.hbm [shape: f32[8,2,8], index: 25, kind: output, shape index: {1}]  }
   0x1   :  { %13129 = sst [smem:[#allocation10_spill]] %s13096_s0 }
   0x2   :  { %13130 = sst [smem:[#allocation11_spill]] %s13097_s1 }
   0x3   :  { %13131 = sst [smem:[#allocation12_spill]] %s13098_s2 }
   0x4   :  { %13132 = sst [smem:[#allocation13_spill]] %s13099_s3 }
   0x5   :  { %13133 = sst [smem:[#allocation14_spill]] %s13100_s4 }
   0x6   :  { %13134 = sst [smem:[#allocation15_spill]] %s13101_s5 }
   0x7   :  { %13135 = sst [smem:[#allocation16_spill]] %s13102_s6 }
   0x8   :  { %13136 = sst [smem:[#allocation17_spill]] %s13103_s7 }
   0x9   :  { %13137 = sst [smem:[#allocation18_spill]] %s13104_s8 }
   0xa   :  { %13138 = sst [smem:[#allocation19_spill]] %s13105_s9 }
   0xb   :  { %s13139_s6 = sld [smem:[#allocation15_spill]]  ;;  %vm93_vm0 = vcmask 1042432   ;;  %vm89_vm1 = vcmask 23552   ;;  %v13127_v1 = vmov 0.0   ;;  %vm11153_vm2 = vmmov 0  }
   0xc   :  { %10476 = vmatprep.subr.mxu0 %v13127_v1  ;;  %10478 = vmatprep.mubr.msk.f32.mxu0 %vm11153_vm2, %v13127_v1  ;;  %s13140_s3 = sld [smem:[#allocation10_spill]] }
   0xd   :  { %s13141_s8 = sld [smem:[#allocation17_spill]]  ;;  %10481 = vmatprep.subr.mxu1 %v13127_v1 }
  0x11   :  { %v81_v0 = vld [vmem:[%s13139_s6] sm:$0x7] }
  0x12   :  { %v80_v2 = vld [vmem:[%s13140_s3] sm:$0x3]  ;;  %10477 = vmatpush3.msk.msra.mxu0 %vm93_vm0, %v81_v0 }
  0x13   :  { %v170_v3 = vld [vmem:[%s13141_s8 + $0x18] sm:$0xff]  ;;  %v169_v4 = vld [vmem:[%s13141_s8 + $0x10] sm:$0xff] }
  0x14   :  { %31 = vsyncpa [#allocation8], 0  ;;  %10479 = vmatmul.mubr.msk.f32.vlgmr.msra.gmra.mxu0 %vm89_vm1, %v80_v2  ;;  %10482 = vmatpush3.msra.mxu1 %v170_v3  ;;  %v168_v5 = vld [vmem:[%s13141_s8 + $0x8] sm:$0xff]  ;;  %v167_v6 = vld [vmem:[%s13141_s8] sm:$0xff]  ;;  %s13142_s7 = sld [smem:[#allocation19_spill]]  ;;  %v355_v10 = vlaneseq  ;;  %vm178_vm3 = vcmask 261120  }
  0x15   :  { %10483 = vmatprep.subr.mxu1 %v13127_v1  ;;  %10489 = vmatprep.mubr.msk.f32.mxu1 %vm11153_vm2, %v13127_v1  ;;  %v352_v7 = vld [vmem:[%s13107_s11 + $0x38] sm:$0xff]  ;;  %v11154_v11 = vmov 1983009808   ;;  %s13143_s27 = sld [smem:[#allocation11_spill]]  ;;  %v351_v29 = vld [vmem:[%s13107_s11 + $0x30] sm:$0xff]  ;;  %v350_v31 = vld [vmem:[%s13107_s11 + $0x28] sm:$0xff] }
  0x16   :  { %10484 = vmatpush3.msra.mxu1 %v169_v4  ;;  %10492 = vmatprep.subr.mxu0 %v13127_v1  ;;  %v376_v12 = vunpack.c.l.s4 %v11154_v11  ;;  %v11336_v14 = vshrl.u32 %v355_v10, 7  ;;  %s13144_s30 = sld [smem:[#allocation16_spill]]  ;;  %v349_v32 = vld [vmem:[%s13107_s11 + $0x20] sm:$0xff]  ;;  %v348_v37 = vld [vmem:[%s13107_s11 + $0x18] sm:$0xff]  ;;  %v347_v38 = vld [vmem:[%s13107_s11 + $0x10] sm:$0xff]  ;;  %s11156_s26 = smov 32  }
  0x17   :  { %10485 = vmatprep.subr.mxu1 %v13127_v1  ;;  %10500 = vmatprep.mubr.msk.f32.mxu0 %vm11153_vm2, %v13127_v1  ;;  %v346_v39 = vld [vmem:[%s13107_s11 + $0x8] sm:$0xff]  ;;  %v345_v40 = vld [vmem:[%s13107_s11] sm:$0xff]  ;;  %v11409_v47 = vld [vmem:[%s13110_s14 + $0x18] sm:$0xff]  ;;  %s13145_s9 = sld [smem:[#allocation18_spill]]  ;;  %s11158_s5 = smov 96   ;;  %vm771_vm4 = vcmask 254976  }
  0x18   :  { %10486 = vmatpush3.msra.mxu1 %v168_v5  ;;  %v377_v15 = vunpack.c.0.s8 %v376_v12  ;;  %v11416_v48 = vld [vmem:[%s13110_s14 + $0x10] sm:$0xff]  ;;  %v11423_v49 = vld [vmem:[%s13110_s14 + $0x8] sm:$0xff]  ;;  %v11430_v50 = vld [vmem:[%s13110_s14] sm:$0xff]  ;;  %v357_v54 = vsub.s32 0, %v11336_v14  ;;  %v361_v59 = vsub.s32 1, %v11336_v14  ;;  %s13146_s4 = sld [smem:[#allocation12_spill]] }
  0x19   :  { %10487 = vmatprep.subr.mxu1 %v13127_v1  ;;  %v353_v56 = vld [vmem:[%s13108_s12] sm:$0x3]  ;;  %v11455_v58 = vld [vmem:[%s13109_s13 + $0x18] sm:$0xff]  ;;  %v11462_v60 = vld [vmem:[%s13109_s13 + $0x10] sm:$0xff]  ;;  %vm3011_vm5 = vcmask 523264   ;;  %vm6688_vm6 = vcmask 58368  }
  0x1a   :  { %10488 = vmatpush3.msra.mxu1 %v167_v6  ;;  %v256_v8 = vld [vmem:[%s13142_s7 + $0x18] sm:$0xff]  ;;  %v255_v9 = vld [vmem:[%s13142_s7 + $0x10] sm:$0xff]  ;;  %v11351_v22 = vsub.s32 %v377_v15, %v11336_v14  ;;  %v254_v45 = vld [vmem:[%s13142_s7 + $0x8] sm:$0xff]  ;;  %v358_v61 = vrot.slane %v353_v56, %v357_v54  ;;  %v362_v63 = vrot.slane %v353_v56, %v361_v59  ;;  %vm9499_vm7 = vcmask 64512  }
  0x1b   :  { %435 = vmatprep.subr.mxu1 %v352_v7  ;;  %10493 = vmatpush3.msra.mxu0 %v256_v8  ;;  %v337_v13 = vld [vmem:[%s13143_s27] sm:$0x3]  ;;  %v338_v16 = vld [vmem:[%s13143_s27 + $0x2] sm:$0x3]  ;;  %v339_v17 = vld [vmem:[%s13143_s27 + $0x4] sm:$0x3] }
  0x1c   :  { %10494 = vmatprep.subr.mxu0 %v13127_v1  ;;  %v340_v18 = vld [vmem:[%s13143_s27 + $0x6] sm:$0x3]  ;;  %v10185_v19 = vld [vmem:[%s13144_s30] ss:$0 sm:$0xff]  ;;  %v373_v20 = vcombine.low %v337_v13, %v338_v16  ;;  %v341_v23 = vld [vmem:[%s13143_s27 + $0x8] sm:$0x3] }
  0x1d   :  { %10495 = vmatpush3.msra.mxu0 %v255_v9  ;;  %v374_v21 = vcombine.low %v339_v17, %v340_v18  ;;  %v342_v25 = vld [vmem:[%s13143_s27 + $0xa] sm:$0x3]  ;;  %v343_v26 = vld [vmem:[%s13143_s27 + $0xc] sm:$0x3]  ;;  %v344_v27 = vld [vmem:[%s13143_s27 + $0xe] sm:$0x3] }
  0x1e   :  { %10496 = vmatprep.subr.mxu0 %v13127_v1  ;;  %v381_v33 = vrot.slane %v373_v20, %v11351_v22  ;;  %v390_v35 = vcombine.low %v341_v23, %v342_v25  ;;  %v391_v36 = vcombine.low %v343_v26, %v344_v27  ;;  %v253_v46 = vld [vmem:[%s13142_s7] sm:$0xff]  ;;  %v11471_v62 = vld [vmem:[%s13109_s13 + $0x8] sm:$0xff]  ;;  %s11155_s7 = smov 64   ;;  %s13147_s30 = sld [smem:[#allocation14_spill]] }
  0x1f   :  { %v388_v34 = vrot.slane %v374_v21, %v11351_v22  ;;  %10497 = vmatpush3.msra.mxu0 %v254_v45  ;;  %v10188_v51 = vld [vmem:[%s13145_s9] ss:$0 sm:$0xff] }
  0x20   :  { %v398_v42 = vrot.slane %v390_v35, %v11351_v22  ;;  %v405_v43 = vrot.slane %v391_v36, %v11351_v22  ;;  %10498 = vmatprep.subr.mxu0 %v13127_v1  ;;  %v11478_v2 = vld [vmem:[%s13109_s13] sm:$0xff] }
  0x21   :  { %v389_v41 = vcombine.low %v381_v33, %v388_v34  ;;  %10499 = vmatpush3.msra.mxu0 %v253_v46 }
  0x22   :  { %v406_v44 = vcombine.low %v398_v42, %v405_v43  ;;  %10503 = vmatprep.subr.mxu0 %v13127_v1 }
  0xd4   :  { %v163_v24 = vpop.f32.mrf.mxu0 }
  0xd5   :  { %v164_v28 = vadd.f32 %v10185_v19, %v163_v24 }
  0xd6   :  { %v10480_v30 = vpop.f32.mrf.mxu0 }
  0xd7   :  { %10490 = vmatmul.mubr.msk.f32.vlgmr.msra.gmra.mxu1 %vm178_vm3, %v164_v28 }
  0xd8   :  { %436 = vmatpush1.msra.mxu1 %v351_v29  ;;  %475 = vmatprep.mubr.f32.mxu1 %v13127_v1 }
  0xd9   :  { %437 = vmatprep.subr.mxu1 %v350_v31 }
  0xda   :  { %438 = vmatpush1.msra.mxu1 %v349_v32 }
  0xdb   :  { %439 = vmatprep.subr.mxu1 %v348_v37 }
  0xdc   :  { %440 = vmatpush1.msra.mxu1 %v347_v38 }
  0xdd   :  { %441 = vmatprep.subr.mxu1 %v346_v39 }
  0xde   :  { %442 = vmatpush1.msra.mxu1 %v345_v40 }
  0xdf   :  { %10192 = vmatmul.mubr.msk.f32.vlgmr.msra.gmra.mxu1 %vm178_vm3, %v389_v41  ;;  %10514 = vmatprep.subr.mxu1 %v13127_v1 }
  0xe0   :  { %481 = vmatprep.mubr.f32.mxu1 %v13127_v1  ;;  %10515 = vmatpush3.msra.mxu1 %v11409_v47 }
  0xe1   :  { %10516 = vmatprep.subr.mxu1 %v13127_v1 }
  0xe2   :  { %10517 = vmatpush3.msra.mxu1 %v11416_v48 }
  0xe3   :  { %10193 = vmatmul.mubr.msk.f32.gmra.mxu1 %vm178_vm3, %v406_v44  ;;  %10518 = vmatprep.subr.mxu1 %v13127_v1 }
  0xe4   :  { %10522 = vmatprep.mubr.msk.f32.mxu1 %vm11153_vm2, %v13127_v1  ;;  %10519 = vmatpush3.msra.mxu1 %v11423_v49 }
  0xe5   :  { %10520 = vmatprep.subr.mxu1 %v13127_v1 }
  0xe6   :  { %10521 = vmatpush3.msra.mxu1 %v11430_v50 }
  0xe7   :  { %10523 = vmatmul.mubr.f32.vlgmr.msra.gmra.mxu1 %v13127_v1  ;;  %10536 = vmatprep.subr.mxu1 %v13127_v1 }
  0xe8   :  { %10537 = vmatpush3.msra.mxu1 %v11409_v47  ;;  %10544 = vmatprep.mubr.msk.f32.mxu1 %vm11153_vm2, %v13127_v1 }
  0xe9   :  { %10538 = vmatprep.subr.mxu1 %v13127_v1 }
  0xea   :  { %10539 = vmatpush3.msra.mxu1 %v11416_v48 }
  0xeb   :  { %10540 = vmatprep.subr.mxu1 %v13127_v1 }
  0xec   :  { %10541 = vmatpush3.msra.mxu1 %v11423_v49 }
  0xed   :  { %10542 = vmatprep.subr.mxu1 %v13127_v1 }
  0xee   :  { %10543 = vmatpush3.msra.mxu1 %v11430_v50 }
  0xef   :  { %10558 = vmatprep.subr.mxu1 %v13127_v1 }
 0x197   :  { %v248_v52 = vpop.f32.mrf.mxu1 }
 0x198   :  { %v249_v53 = vadd.f32 %v10188_v51, %v248_v52 }
 0x199   :  { %v10491_v55 = vpop.f32.mrf.mxu1 }
 0x19a   :  { %v252_v57 = vmax.f32 %v249_v53, 0.0  ;;  %v11157_v53 = vmov 0  }
 0x19b   :  { %10879 = vset.pattern.permute.xlu1 %v11157_v53  ;;  %10878 = vset.pattern.permute.xlu0 %v11157_v53 }
 0x19c   :  { %10501 = vmatmul.mubr.msk.f32.vlgmr.msra.gmra.mxu0 %vm178_vm3, %v252_v57 }
 0x19d   :  { %10504 = vmatpush3.msra.mxu0 %v11455_v58  ;;  %10511 = vmatprep.mubr.msk.f32.mxu0 %vm11153_vm2, %v13127_v1 }
 0x19e   :  { %10505 = vmatprep.subr.mxu0 %v13127_v1 }
 0x19f   :  { %10506 = vmatpush3.msra.mxu0 %v11462_v60  ;;  %v477_v0 = vpop.f32.mrf.mxu1 }
 0x1a0   :  { %10507 = vmatprep.subr.mxu0 %v13127_v1  ;;  %v478_v3 = vadd.f32 %v477_v0, %v358_v61  ;;  %v552_v0 = vld [vmem:[%s13146_s4] sm:$0x3] }
 0x1a1   :  { %10508 = vmatpush3.msra.mxu0 %v11471_v62  ;;  %v479_v4 = vpop.f32.mrf.mxu1 }
 0x1a2   :  { %10509 = vmatprep.subr.mxu0 %v13127_v1  ;;  %v480_v5 = vadd.f32 %v479_v4, %v362_v63  ;;  %v10198_v4 = vld [vmem:[%s13146_s4 + $0xe] sm:$0x3] }
 0x1a3   :  { %10510 = vmatpush3.msra.mxu0 %v11478_v2  ;;  %v483_v6 = vpop.f32.mrf.mxu1 }
 0x1a4   :  { %10512 = vmatmul.mubr.f32.vlgmr.msra.gmra.mxu0 %v13127_v1  ;;  %v492_v7 = vcombine.low %v478_v3, %v480_v5  ;;  %v493_v8 = vcombine.high %v478_v3, %v480_v5  ;;  %v484_v9 = vadd.f32 %v483_v6, %v358_v61  ;;  %10525 = vmatprep.subr.mxu0 %v13127_v1  ;;  %v813_v5 = vsub.f32 1.0, %v10198_v4 }
 0x1a5   :  { %v485_v10 = vpop.f32.mrf.mxu1  ;;  %10526 = vmatpush3.msra.mxu0 %v11455_v58  ;;  %10533 = vmatprep.mubr.msk.f32.mxu0 %vm11153_vm2, %v13127_v1  ;;  %v792_v6 = vsub.f32 1.0, %v552_v0 }
 0x1a6   :  { %v500_v11 = vrot.slane %v492_v7, %v11351_v22  ;;  %v507_v12 = vrot.slane %v493_v8, %v11351_v22  ;;  %10194 = vst.sshfl [vmem:[#allocation4] sm:$0x33 pattern:$0x76325410] %v492_v7  ;;  %v486_v13 = vadd.f32 %v485_v10, %v362_v63  ;;  %10527 = vmatprep.subr.mxu0 %v13127_v1 }
 0x1a7   :  { %10195 = vst.sshfl [vmem:[#allocation4 + $0x8] sm:$0x33 pattern:$0x76325410] %v493_v8  ;;  %10528 = vmatpush3.msra.mxu0 %v11462_v60  ;;  %v698_v24 = vpop.f32.mrf.mxu1 }
 0x1a8   :  { %v508_v15 = vcombine.high %v500_v11, %v500_v11  ;;  %v509_v16 = vcombine.high %v507_v12, %v507_v12  ;;  %v510_v17 = vcombine.low %v484_v9, %v486_v13  ;;  %v511_v18 = vcombine.high %v484_v9, %v486_v13  ;;  %10529 = vmatprep.subr.mxu0 %v13127_v1 }
 0x1a9   :  { %10530 = vmatpush3.msra.mxu0 %v11471_v62  ;;  %v10524_v25 = vpop.f32.mrf.mxu1 }
 0x1aa   :  { %537 = vst [vmem:[#allocation4 + $0x4] sm:$0xf] %v508_v15  ;;  %539 = vst [vmem:[#allocation4 + $0xc] sm:$0xf] %v509_v16  ;;  %v518_v19 = vrot.slane %v510_v17, %v11351_v22  ;;  %v525_v20 = vrot.slane %v511_v18, %v11351_v22  ;;  %10531 = vmatprep.subr.mxu0 %v13127_v1 }
 0x1ab   :  { %10196 = vst.sshfl [vmem:[#allocation4 + $0x10] sm:$0x33 pattern:$0x76325410] %v510_v17  ;;  %10532 = vmatpush3.msra.mxu0 %v11478_v2 }
 0x1ac   :  { %10197 = vst.sshfl [vmem:[#allocation4 + $0x18] sm:$0x33 pattern:$0x76325410] %v511_v18  ;;  %v526_v21 = vcombine.high %v518_v19, %v518_v19  ;;  %v527_v23 = vcombine.high %v525_v20, %v525_v20  ;;  %10547 = vmatprep.subr.mxu0 %v13127_v1 }
 0x1ad   :  { %v555_v30 = vld [vmem:[#allocation4] sm:$0xf] }
 0x1ae   :  { %541 = vst [vmem:[#allocation4 + $0x14] sm:$0xf] %v526_v21  ;;  %543 = vst [vmem:[#allocation4 + $0x1c] sm:$0xf] %v527_v23 }
 0x1b5   :  { %v557_v28 = vld [vmem:[#allocation4 + $0x1c] sm:$0xf] }
 0x1b6   :  { %v703_v29 = vrot.slane %v557_v28, 2 }
 0x1b8   :  { %v705_v34 = vadd.f32 %v703_v29, %v698_v24 }
 0x1ba   :  { %v10200_v38 = vmul.f32 -1.442695, %v705_v34 }
 0x25c   :  { %v11499_v26 = vpop.f32.mrf.mxu0 }
 0x25e   :  { %v10502_v27 = vpop.f32.mrf.mxu0 }
 0x264   :  { %v627_v31 = vpop.f32.mrf.mxu0 }
 0x265   :  { %v631_v32 = vadd.f32 %v627_v31, %v555_v30  ;;  %v839_v30 = vld [vmem:[#allocation4 + $0x4] sm:$0xf] }
 0x266   :  { %v10513_v33 = vpop.f32.mrf.mxu0 }
 0x267   :  { %10880 = vtanh.f32 %v631_v32  ;;  %v10199_v37 = vmul.f32 -1.442695, %v631_v32  ;;  %v841_v32 = vld [vmem:[#allocation4 + $0x18] sm:$0xf] }
 0x268   :  { %10882 = vtanh.f32 %v705_v34 }
 0x269   :  { %10884 = vpow2.f32 %v10199_v37 }
 0x26a   :  { %10886 = vpow2.f32 %v10200_v38 }
 0x274   :  { %v10881_v35 = vpop.eup %10880 }
 0x275   :  { %715 = vrot.lane.b32.xlu0 %v10881_v35, %s11155_s7  ;;  %v10883_v36 = vpop.eup %10882  ;;  %v990_v35 = vrot.slane %v841_v32, 2 }
 0x276   :  { %v10885_v39 = vpop.eup %10884 }
 0x277   :  { %v709_v40 = vadd.f32 1.0, %v10885_v39  ;;  %v10887_v41 = vpop.eup %10886 }
 0x278   :  { %v733_v42 = vadd.f32 1.0, %v10887_v41 }
 0x279   :  { %739 = vrot.lane.b32.xlu0 %v10883_v36, %s11155_s7  ;;  %10888 = vrcp.f32 %v709_v40 }
 0x27a   :  { %10890 = vrcp.f32 %v733_v42 }
 0x286   :  { %v10889_v43 = vpop.eup %10888 }
 0x287   :  { %v10891_v46 = vpop.eup %10890  ;;  %v713_v54 = vmul.f32 0.0, %v10889_v43 }
 0x288   :  { %v737_v57 = vmul.f32 0.0, %v10891_v46 }
 0x2e7   :  { %v716_v44 = vpop.permute.xlu0 %715 }
 0x2e8   :  { %v718_v45 = vmul.f32 %v10889_v43, %v716_v44 }
 0x2ea   :  { %720 = vrot.lane.b32.xlu1 %v718_v45, %s11156_s26 }
 0x2eb   :  { %v740_v51 = vpop.permute.xlu0 %739 }
 0x2ec   :  { %v742_v52 = vmul.f32 %v10891_v46, %v740_v51 }
 0x2ee   :  { %744 = vrot.lane.b32.xlu1 %v742_v52, %s11156_s26 }
 0x35c   :  { %v721_v55 = vpop.permute.xlu1 %720 }
 0x35d   :  { %v723_v56 = vadd.f32 %v721_v55, %v713_v54 }
 0x35f   :  { %10892 = vtanh.f32 %v723_v56  ;;  %v807_v12 = vrot.slane %v723_v56, %v11351_v22 }
 0x360   :  { %v745_v59 = vpop.permute.xlu1 %744 }
 0x361   :  { %v747_v61 = vadd.f32 %v745_v59, %v737_v57 }
 0x363   :  { %10894 = vtanh.f32 %v747_v61  ;;  %v828_v15 = vrot.slane %v747_v61, %v11351_v22 }
 0x36c   :  { %v10893_v63 = vpop.eup %10892 }
 0x36d   :  { %726 = vrot.lane.b32.xlu0 %v10893_v63, %s11155_s7 }
 0x370   :  { %v10895_v3 = vpop.eup %10894 }
 0x371   :  { %750 = vrot.lane.b32.xlu1 %v10895_v3, %s11155_s7  ;;  %756 = vperm.xlu0 %10878, %v552_v0  }
 0x375   :  { %775 = vperm.xlu1 %10879, %v10198_v4   ;;  %816 = vperm.xlu0 %10878, %v813_v5  }
 0x379   :  { %795 = vperm.xlu1 %10879, %v792_v6  }
 0x3df   :  { %v727_v7 = vpop.permute.xlu0 %726 }
 0x3e0   :  { %v729_v8 = vmul.f32 %v10889_v43, %v727_v7 }
 0x3e2   :  { %v766_v9 = vrot.slane %v729_v8, %v11351_v22 }
 0x3e3   :  { %v751_v10 = vpop.permute.xlu1 %750 }
 0x3e4   :  { %v753_v11 = vmul.f32 %v10891_v46, %v751_v10  ;;  %767 = vrot.lane.b32.xlu1 %v766_v9, %s11156_s26 }
 0x3e6   :  { %v785_v13 = vrot.slane %v753_v11, %v11351_v22 }
 0x3e8   :  { %786 = vrot.lane.b32.xlu0 %v785_v13, %s11156_s26  ;;  %808 = vrot.lane.b32.xlu1 %v807_v12, %s11158_s5 }
 0x3ec   :  { %829 = vrot.lane.b32.xlu0 %v828_v15, %s11158_s5  ;;  %v757_v17 = vpop.permute.xlu0 %756 }
 0x3f0   :  { %v776_v16 = vpop.permute.xlu1 %775  ;;  %v817_v19 = vpop.permute.xlu0 %816 }
 0x3f1   :  { %v819_v27 = vmul.f32 0.0, %v817_v19  ;;  %v10202_v19 = vld [vmem:[%s13146_s4 + $0xc] sm:$0x3] }
 0x3f4   :  { %v796_v18 = vpop.permute.xlu1 %795 }
 0x3f5   :  { %v798_v21 = vmul.f32 0.0, %v796_v18 }
 0x456   :  { %v768_v20 = vpop.permute.xlu1 %767 }
 0x457   :  { %v770_v23 = vmul.f32 %v768_v20, %v757_v17  ;;  %v1123_v20 = vsub.f32 1.0, %v10202_v19 }
 0x459   :  { %772 = vst.msk [vmem:[#allocation2] sm:$0x3] %vm771_vm4, %v770_v23  ;;  %v11522_v24 = vadd.f32 %v798_v21, %v770_v23 }
 0x45a   :  { %v787_v25 = vpop.permute.xlu0 %786  ;;  %v809_v39 = vpop.permute.xlu1 %808 }
 0x45b   :  { %v789_v28 = vmul.f32 %v787_v25, %v776_v16  ;;  %10534 = vmatmul.mubr.msk.f32.vlgmr.msra.gmra.mxu0 %vm178_vm3, %v11522_v24  ;;  %v811_v40 = vmul.f32 %v809_v39, %v757_v17 }
 0x45c   :  { %10548 = vmatpush3.msra.mxu0 %v11455_v58  ;;  %10555 = vmatprep.mubr.msk.f32.mxu0 %vm11153_vm2, %v13127_v1 }
 0x45d   :  { %791 = vst.msk [vmem:[#allocation3 + $0xe] sm:$0x3] %vm771_vm4, %v789_v28  ;;  %v11530_v29 = vadd.f32 %v819_v27, %v789_v28  ;;  %10549 = vmatprep.subr.mxu0 %v13127_v1  ;;  %v11551_v42 = vadd.f32 %v811_v40, %v798_v21 }
 0x45e   :  { %10550 = vmatpush3.msra.mxu0 %v11462_v60  ;;  %v830_v41 = vpop.permute.xlu0 %829 }
 0x45f   :  { %10545 = vmatmul.mubr.msk.f32.vlgmr.msra.gmra.mxu1 %vm178_vm3, %v11530_v29  ;;  %10551 = vmatprep.subr.mxu0 %v13127_v1  ;;  %v832_v43 = vmul.f32 %v830_v41, %v776_v16  ;;  %v1007_v46 = vrot.slane %v11551_v42, %v11351_v22  ;;  %v10201_v16 = vld [vmem:[%s13146_s4 + $0x2] sm:$0x3] }
 0x460   :  { %10552 = vmatpush3.msra.mxu0 %v11471_v62  ;;  %10559 = vmatpush3.msra.mxu1 %v11409_v47  ;;  %v1101_v18 = vsub.f32 1.0, %v10201_v16 }
 0x461   :  { %10553 = vmatprep.subr.mxu0 %v13127_v1  ;;  %10560 = vmatprep.subr.mxu1 %v13127_v1  ;;  %v11554_v45 = vadd.f32 %v832_v43, %v819_v27 }
 0x462   :  { %10554 = vmatpush3.msra.mxu0 %v11478_v2  ;;  %10561 = vmatpush3.msra.mxu1 %v11416_v48 }
 0x463   :  { %10562 = vmatprep.subr.mxu1 %v13127_v1  ;;  %10566 = vmatprep.mubr.msk.f32.mxu1 %vm11153_vm2, %v13127_v1  ;;  %v1042_v52 = vrot.slane %v11554_v45, %v11351_v22 }
 0x464   :  { %10563 = vmatpush3.msra.mxu1 %v11423_v49  ;;  %10569 = vmatprep.subr.mxu0 %v13127_v1 }
 0x465   :  { %10564 = vmatprep.subr.mxu1 %v13127_v1 }
 0x466   :  { %10565 = vmatpush3.msra.mxu1 %v11430_v50 }
 0x467   :  { %10580 = vmatprep.subr.mxu1 %v13127_v1 }
 0x51b   :  { %v911_v31 = vpop.f32.mrf.mxu0 }
 0x51c   :  { %v915_v33 = vadd.f32 %v911_v31, %v839_v30 }
 0x51d   :  { %v10535_v34 = vpop.f32.mrf.mxu0 }
 0x51e   :  { %10896 = vtanh.f32 %v915_v33  ;;  %v10205_v53 = vmul.f32 -1.442695, %v915_v33 }
 0x51f   :  { %v985_v36 = vpop.f32.mrf.mxu1 }
 0x520   :  { %v992_v37 = vadd.f32 %v990_v35, %v985_v36 }
 0x521   :  { %v10546_v38 = vpop.f32.mrf.mxu1 }
 0x522   :  { %10898 = vtanh.f32 %v992_v37  ;;  %v10206_v54 = vmul.f32 -1.442695, %v992_v37 }
 0x523   :  { %10900 = vpow2.f32 %v10205_v53 }
 0x524   :  { %10902 = vpow2.f32 %v10206_v54 }
 0x52b   :  { %v10897_v44 = vpop.eup %10896 }
 0x52c   :  { %1013 = vrot.lane.b32.xlu1 %v10897_v44, %s11155_s7 }
 0x52f   :  { %v10899_v51 = vpop.eup %10898 }
 0x530   :  { %1048 = vrot.lane.b32.xlu0 %v10899_v51, %s11155_s7  ;;  %1008 = vrot.lane.b32.xlu1 %v1007_v46, %s11156_s26  ;;  %v10901_v55 = vpop.eup %10900  ;;  %v1152_v51 = vld [vmem:[#allocation4 + $0x14] sm:$0xf] }
 0x531   :  { %v996_v56 = vadd.f32 1.0, %v10901_v55  ;;  %v10903_v57 = vpop.eup %10902  ;;  %v1301_v54 = vrot.slane %v1152_v51, 2 }
 0x532   :  { %v1031_v59 = vadd.f32 1.0, %v10903_v57 }
 0x533   :  { %10904 = vrcp.f32 %v996_v56 }
 0x534   :  { %1043 = vrot.lane.b32.xlu0 %v1042_v52, %s11156_s26  ;;  %10906 = vrcp.f32 %v1031_v59 }
 0x540   :  { %v10905_v61 = vpop.eup %10904 }
 0x541   :  { %v10907_v3 = vpop.eup %10906 }
 0x59e   :  { %v1014_v63 = vpop.permute.xlu1 %1013 }
 0x59f   :  { %v1016_v0 = vmul.f32 %v10905_v61, %v1014_v63 }
 0x5a1   :  { %1018 = vrot.lane.b32.xlu1 %v1016_v0, %s11156_s26 }
 0x5a2   :  { %v1049_v4 = vpop.permute.xlu0 %1048  ;;  %v1009_v6 = vpop.permute.xlu1 %1008 }
 0x5a3   :  { %v1051_v5 = vmul.f32 %v10907_v3, %v1049_v4  ;;  %v1011_v7 = vmul.f32 %v10905_v61, %v1009_v6 }
 0x5a5   :  { %1053 = vrot.lane.b32.xlu0 %v1051_v5, %s11156_s26 }
 0x5a6   :  { %v1044_v8 = vpop.permute.xlu0 %1043 }
 0x5a7   :  { %v1046_v11 = vmul.f32 %v10907_v3, %v1044_v8 }
 0x613   :  { %v1019_v9 = vpop.permute.xlu1 %1018 }
 0x614   :  { %v1021_v10 = vadd.f32 %v1019_v9, %v1011_v7 }
 0x616   :  { %10908 = vtanh.f32 %v1021_v10  ;;  %v1116_v30 = vrot.slane %v1021_v10, %v11351_v22 }
 0x617   :  { %v1054_v12 = vpop.permute.xlu0 %1053 }
 0x618   :  { %v1056_v13 = vadd.f32 %v1054_v12, %v1046_v11 }
 0x61a   :  { %10910 = vtanh.f32 %v1056_v13  ;;  %v1138_v32 = vrot.slane %v1056_v13, %v11351_v22 }
 0x623   :  { %v10909_v15 = vpop.eup %10908 }
 0x624   :  { %1024 = vrot.lane.b32.xlu1 %v10909_v15, %s11155_s7 }
 0x627   :  { %v10911_v17 = vpop.eup %10910 }
 0x628   :  { %1059 = vrot.lane.b32.xlu0 %v10911_v17, %s11155_s7  ;;  %1065 = vperm.xlu1 %10879, %v10201_v16  }
 0x62c   :  { %1084 = vperm.xlu0 %10878, %v10202_v19   ;;  %1104 = vperm.xlu1 %10879, %v1101_v18  }
 0x630   :  { %1126 = vperm.xlu0 %10878, %v1123_v20  }
 0x696   :  { %v1025_v21 = vpop.permute.xlu1 %1024 }
 0x697   :  { %v1027_v23 = vmul.f32 %v10905_v61, %v1025_v21 }
 0x699   :  { %v1075_v25 = vrot.slane %v1027_v23, %v11351_v22 }
 0x69a   :  { %v1060_v27 = vpop.permute.xlu0 %1059 }
 0x69b   :  { %v1062_v28 = vmul.f32 %v10907_v3, %v1060_v27  ;;  %1076 = vrot.lane.b32.xlu1 %v1075_v25, %s11156_s26 }
 0x69d   :  { %v1094_v31 = vrot.slane %v1062_v28, %v11351_v22 }
 0x69f   :  { %1095 = vrot.lane.b32.xlu0 %v1094_v31, %s11156_s26  ;;  %1117 = vrot.lane.b32.xlu1 %v1116_v30, %s11158_s5 }
 0x6a3   :  { %1139 = vrot.lane.b32.xlu0 %v1138_v32, %s11158_s5  ;;  %v1066_v33 = vpop.permute.xlu1 %1065 }
 0x6a7   :  { %v1085_v34 = vpop.permute.xlu0 %1084  ;;  %v1105_v35 = vpop.permute.xlu1 %1104 }
 0x6a8   :  { %v1107_v38 = vmul.f32 %v1105_v35, %v11522_v24  ;;  %v1121_v0 = vmul.f32 %v1105_v35, %v11551_v42  ;;  %v10207_v35 = vld [vmem:[%s13146_s4 + $0x4] sm:$0x3] }
 0x6ab   :  { %v1127_v36 = vpop.permute.xlu0 %1126 }
 0x6ac   :  { %v1129_v43 = vmul.f32 %v1127_v36, %v11530_v29  ;;  %v1150_v29 = vld [vmem:[#allocation4 + $0x8] sm:$0xf]  ;;  %v1143_v6 = vmul.f32 %v1127_v36, %v11554_v45 }
 0x70d   :  { %v1077_v37 = vpop.permute.xlu1 %1076 }
 0x70e   :  { %v1079_v39 = vmul.f32 %v1077_v37, %v1066_v33  ;;  %v1412_v37 = vsub.f32 1.0, %v10207_v35 }
 0x710   :  { %1081 = vst.msk [vmem:[#allocation2 + $0x2] sm:$0x3] %vm771_vm4, %v1079_v39  ;;  %v11583_v40 = vadd.f32 %v1107_v38, %v1079_v39  ;;  %v10208_v38 = vld [vmem:[%s13146_s4 + $0xa] sm:$0x3] }
 0x711   :  { %v1096_v41 = vpop.permute.xlu0 %1095  ;;  %v1118_v59 = vpop.permute.xlu1 %1117  ;;  %v1434_v39 = vsub.f32 1.0, %v10208_v38 }
 0x712   :  { %v1098_v44 = vmul.f32 %v1096_v41, %v1085_v34  ;;  %10556 = vmatmul.mubr.msk.f32.vlgmr.msra.gmra.mxu0 %vm178_vm3, %v11583_v40  ;;  %v1120_v61 = vmul.f32 %v1118_v59, %v1066_v33 }
 0x713   :  { %10570 = vmatpush3.msra.mxu0 %v11455_v58  ;;  %10577 = vmatprep.mubr.msk.f32.mxu0 %vm11153_vm2, %v13127_v1 }
 0x714   :  { %1100 = vst.msk [vmem:[#allocation3 + $0xc] sm:$0x3] %vm771_vm4, %v1098_v44  ;;  %v11592_v24 = vadd.f32 %v1129_v43, %v1098_v44  ;;  %10571 = vmatprep.subr.mxu0 %v13127_v1  ;;  %v11614_v3 = vadd.f32 %v1121_v0, %v1120_v61 }
 0x715   :  { %10572 = vmatpush3.msra.mxu0 %v11462_v60  ;;  %v1140_v63 = vpop.permute.xlu0 %1139 }
 0x716   :  { %10567 = vmatmul.mubr.msk.f32.vlgmr.msra.gmra.mxu1 %vm178_vm3, %v11592_v24  ;;  %10573 = vmatprep.subr.mxu0 %v13127_v1  ;;  %v1142_v4 = vmul.f32 %v1140_v63, %v1085_v34  ;;  %v1318_v8 = vrot.slane %v11614_v3, %v11351_v22 }
 0x717   :  { %10574 = vmatpush3.msra.mxu0 %v11471_v62  ;;  %10581 = vmatpush3.msra.mxu1 %v11409_v47 }
 0x718   :  { %10575 = vmatprep.subr.mxu0 %v13127_v1  ;;  %10582 = vmatprep.subr.mxu1 %v13127_v1  ;;  %v11618_v7 = vadd.f32 %v1143_v6, %v1142_v4 }
 0x719   :  { %10583 = vmatpush3.msra.mxu1 %v11416_v48  ;;  %10576 = vmatpush3.msra.mxu0 %v11478_v2 }
 0x71a   :  { %10584 = vmatprep.subr.mxu1 %v13127_v1  ;;  %10588 = vmatprep.mubr.msk.f32.mxu1 %vm11153_vm2, %v13127_v1  ;;  %v1353_v42 = vrot.slane %v11618_v7, %v11351_v22 }
 0x71b   :  { %10585 = vmatpush3.msra.mxu1 %v11423_v49  ;;  %10591 = vmatprep.subr.mxu0 %v13127_v1 }
 0x71c   :  { %10586 = vmatprep.subr.mxu1 %v13127_v1 }
 0x71d   :  { %10587 = vmatpush3.msra.mxu1 %v11430_v50 }
 0x71e   :  { %10602 = vmatprep.subr.mxu1 %v13127_v1 }
 0x7d2   :  { %v1222_v46 = vpop.f32.mrf.mxu0 }
 0x7d3   :  { %v1226_v52 = vadd.f32 %v1222_v46, %v1150_v29 }
 0x7d4   :  { %v10557_v53 = vpop.f32.mrf.mxu0 }
 0x7d5   :  { %10912 = vtanh.f32 %v1226_v52  ;;  %v10211_v10 = vmul.f32 -1.442695, %v1226_v52 }
 0x7d6   :  { %v1296_v55 = vpop.f32.mrf.mxu1 }
 0x7d7   :  { %v1303_v56 = vadd.f32 %v1301_v54, %v1296_v55 }
 0x7d8   :  { %v10568_v57 = vpop.f32.mrf.mxu1 }
 0x7d9   :  { %10914 = vtanh.f32 %v1303_v56  ;;  %v10212_v45 = vmul.f32 -1.442695, %v1303_v56 }
 0x7da   :  { %10916 = vpow2.f32 %v10211_v10 }
 0x7db   :  { %10918 = vpow2.f32 %v10212_v45 }
 0x7e2   :  { %v10913_v5 = vpop.eup %10912 }
 0x7e3   :  { %1324 = vrot.lane.b32.xlu1 %v10913_v5, %s11155_s7 }
 0x7e6   :  { %v10915_v9 = vpop.eup %10914 }
 0x7e7   :  { %1359 = vrot.lane.b32.xlu0 %v10915_v9, %s11155_s7  ;;  %1319 = vrot.lane.b32.xlu1 %v1318_v8, %s11156_s26  ;;  %v10917_v11 = vpop.eup %10916 }
 0x7e8   :  { %v1307_v12 = vadd.f32 1.0, %v10917_v11  ;;  %v10919_v13 = vpop.eup %10918 }
 0x7e9   :  { %v1342_v15 = vadd.f32 1.0, %v10919_v13 }
 0x7ea   :  { %10920 = vrcp.f32 %v1307_v12 }
 0x7eb   :  { %1354 = vrot.lane.b32.xlu0 %v1353_v42, %s11156_s26  ;;  %10922 = vrcp.f32 %v1342_v15 }
 0x7f7   :  { %v10921_v16 = vpop.eup %10920 }
 0x7f8   :  { %v10923_v19 = vpop.eup %10922 }
 0x855   :  { %v1325_v17 = vpop.permute.xlu1 %1324 }
 0x856   :  { %v1327_v18 = vmul.f32 %v10921_v16, %v1325_v17 }
 0x858   :  { %1329 = vrot.lane.b32.xlu1 %v1327_v18, %s11156_s26 }
 0x859   :  { %v1360_v20 = vpop.permute.xlu0 %1359  ;;  %v1320_v23 = vpop.permute.xlu1 %1319 }
 0x85a   :  { %v1362_v21 = vmul.f32 %v10923_v19, %v1360_v20  ;;  %v1322_v25 = vmul.f32 %v10921_v16, %v1320_v23 }
 0x85c   :  { %1364 = vrot.lane.b32.xlu0 %v1362_v21, %s11156_s26 }
 0x85d   :  { %v1355_v27 = vpop.permute.xlu0 %1354 }
 0x85e   :  { %v1357_v31 = vmul.f32 %v10923_v19, %v1355_v27 }
 0x8ca   :  { %v1330_v28 = vpop.permute.xlu1 %1329 }
 0x8cb   :  { %v1332_v30 = vadd.f32 %v1330_v28, %v1322_v25 }
 0x8cd   :  { %10924 = vtanh.f32 %v1332_v30  ;;  %v1427_v51 = vrot.slane %v1332_v30, %v11351_v22 }
 0x8ce   :  { %v1365_v32 = vpop.permute.xlu0 %1364 }
 0x8cf   :  { %v1367_v33 = vadd.f32 %v1365_v32, %v1357_v31 }
 0x8d1   :  { %10926 = vtanh.f32 %v1367_v33  ;;  %v1449_v53 = vrot.slane %v1367_v33, %v11351_v22 }
 0x8da   :  { %v10925_v34 = vpop.eup %10924 }
 0x8db   :  { %1335 = vrot.lane.b32.xlu1 %v10925_v34, %s11155_s7 }
 0x8de   :  { %v10927_v36 = vpop.eup %10926 }
 0x8df   :  { %1370 = vrot.lane.b32.xlu0 %v10927_v36, %s11155_s7  ;;  %1376 = vperm.xlu1 %10879, %v10207_v35  }
 0x8e3   :  { %1395 = vperm.xlu0 %10878, %v10208_v38   ;;  %1415 = vperm.xlu1 %10879, %v1412_v37  }
 0x8e7   :  { %1437 = vperm.xlu0 %10878, %v1434_v39  }
 0x94d   :  { %v1336_v41 = vpop.permute.xlu1 %1335 }
 0x94e   :  { %v1338_v43 = vmul.f32 %v10921_v16, %v1336_v41 }
 0x950   :  { %v1386_v44 = vrot.slane %v1338_v43, %v11351_v22 }
 0x951   :  { %v1371_v29 = vpop.permute.xlu0 %1370 }
 0x952   :  { %v1373_v46 = vmul.f32 %v10923_v19, %v1371_v29  ;;  %1387 = vrot.lane.b32.xlu1 %v1386_v44, %s11156_s26 }
 0x954   :  { %v1405_v52 = vrot.slane %v1373_v46, %v11351_v22 }
 0x956   :  { %1406 = vrot.lane.b32.xlu0 %v1405_v52, %s11156_s26  ;;  %1428 = vrot.lane.b32.xlu1 %v1427_v51, %s11158_s5  ;;  %v10213_v52 = vld [vmem:[%s13146_s4 + $0x6] sm:$0x3] }
 0x95a   :  { %1450 = vrot.lane.b32.xlu0 %v1449_v53, %s11158_s5  ;;  %v1377_v54 = vpop.permute.xlu1 %1376 }
 0x95e   :  { %v1396_v55 = vpop.permute.xlu0 %1395  ;;  %v1416_v56 = vpop.permute.xlu1 %1415 }
 0x95f   :  { %v1418_v61 = vmul.f32 %v1416_v56, %v11583_v40  ;;  %v1432_v15 = vmul.f32 %v1416_v56, %v11614_v3 }
 0x962   :  { %v1438_v57 = vpop.permute.xlu0 %1437 }
 0x963   :  { %v1440_v5 = vmul.f32 %v1438_v57, %v11592_v24  ;;  %v1454_v18 = vmul.f32 %v1438_v57, %v11618_v7 }
 0x9c4   :  { %v1388_v59 = vpop.permute.xlu1 %1387 }
 0x9c5   :  { %v1390_v63 = vmul.f32 %v1388_v59, %v1377_v54 }
 0x9c7   :  { %1392 = vst.msk [vmem:[#allocation2 + $0x4] sm:$0x3] %vm771_vm4, %v1390_v63  ;;  %v11647_v0 = vadd.f32 %v1418_v61, %v1390_v63 }
 0x9c8   :  { %v1407_v4 = vpop.permute.xlu0 %1406 }
 0x9c9   :  { %v1409_v6 = vmul.f32 %v1407_v4, %v1396_v55  ;;  %10578 = vmatmul.mubr.msk.f32.vlgmr.msra.gmra.mxu0 %vm178_vm3, %v11647_v0 }
 0x9ca   :  { %10592 = vmatpush3.msra.mxu0 %v11455_v58  ;;  %10599 = vmatprep.mubr.msk.f32.mxu0 %vm11153_vm2, %v13127_v1 }
 0x9cb   :  { %1411 = vst.msk [vmem:[#allocation3 + $0xa] sm:$0x3] %vm771_vm4, %v1409_v6  ;;  %v11656_v40 = vadd.f32 %v1440_v5, %v1409_v6  ;;  %10593 = vmatprep.subr.mxu0 %v13127_v1 }
 0x9cc   :  { %10594 = vmatpush3.msra.mxu0 %v11462_v60  ;;  %v1451_v13 = vpop.permute.xlu0 %1450 }
 0x9cd   :  { %10589 = vmatmul.mubr.msk.f32.vlgmr.msra.gmra.mxu1 %vm178_vm3, %v11656_v40  ;;  %10595 = vmatprep.subr.mxu0 %v13127_v1 }
 0x9ce   :  { %10596 = vmatpush3.msra.mxu0 %v11471_v62  ;;  %10603 = vmatpush3.msra.mxu1 %v11409_v47  ;;  %v1461_v47 = vld [vmem:[#allocation4 + $0xc] sm:$0xf] }
 0x9cf   :  { %10597 = vmatprep.subr.mxu0 %v13127_v1  ;;  %10604 = vmatprep.subr.mxu1 %v13127_v1 }
 0x9d0   :  { %10605 = vmatpush3.msra.mxu1 %v11416_v48  ;;  %10598 = vmatpush3.msra.mxu0 %v11478_v2  ;;  %v1463_v48 = vld [vmem:[#allocation4 + $0x10] sm:$0xf] }
 0x9d1   :  { %10606 = vmatprep.subr.mxu1 %v13127_v1  ;;  %10610 = vmatprep.mubr.msk.f32.mxu1 %vm11153_vm2, %v13127_v1  ;;  %v1612_v42 = vrot.slane %v1463_v48, 2 }
 0x9d2   :  { %10607 = vmatpush3.msra.mxu1 %v11423_v49  ;;  %10613 = vmatprep.subr.mxu0 %v13127_v1  ;;  %v1429_v49 = vpop.permute.xlu1 %1428 }
 0x9d3   :  { %10608 = vmatprep.subr.mxu1 %v13127_v1  ;;  %v1431_v12 = vmul.f32 %v1429_v49, %v1377_v54  ;;  %v1723_v54 = vsub.f32 1.0, %v10213_v52 }
 0x9d4   :  { %10609 = vmatpush3.msra.mxu1 %v11430_v50  ;;  %v1453_v50 = vmul.f32 %v1451_v13, %v1396_v55  ;;  %v10214_v55 = vld [vmem:[%s13146_s4 + $0x8] sm:$0x3] }
 0x9d5   :  { %10624 = vmatprep.subr.mxu1 %v13127_v1  ;;  %v11678_v16 = vadd.f32 %v1432_v15, %v1431_v12  ;;  %v1745_v56 = vsub.f32 1.0, %v10214_v55 }
 0x9d6   :  { %v11682_v19 = vadd.f32 %v1454_v18, %v1453_v50  ;;  %v1770_v50 = vld [vmem:[#allocation4 + $0xc] sm:$0xf] }
 0x9d7   :  { %v1629_v20 = vrot.slane %v11678_v16, %v11351_v22 }
 0x9d8   :  { %v1664_v3 = vrot.slane %v11682_v19, %v11351_v22 }
 0xa89   :  { %v1533_v24 = vpop.f32.mrf.mxu0 }
 0xa8a   :  { %v1537_v8 = vadd.f32 %v1533_v24, %v1461_v47 }
 0xa8b   :  { %v10579_v9 = vpop.f32.mrf.mxu0 }
 0xa8c   :  { %10928 = vtanh.f32 %v1537_v8  ;;  %v10217_v23 = vmul.f32 -1.442695, %v1537_v8 }
 0xa8d   :  { %v1607_v10 = vpop.f32.mrf.mxu1 }
 0xa8e   :  { %v1614_v45 = vadd.f32 %v1612_v42, %v1607_v10 }
 0xa8f   :  { %v10590_v11 = vpop.f32.mrf.mxu1 }
 0xa90   :  { %10930 = vtanh.f32 %v1614_v45  ;;  %v10218_v7 = vmul.f32 -1.442695, %v1614_v45 }
 0xa91   :  { %10932 = vpow2.f32 %v10217_v23 }
 0xa92   :  { %10934 = vpow2.f32 %v10218_v7 }
 0xa99   :  { %v10929_v17 = vpop.eup %10928 }
 0xa9a   :  { %1635 = vrot.lane.b32.xlu1 %v10929_v17, %s11155_s7 }
 0xa9d   :  { %v10931_v21 = vpop.eup %10930 }
 0xa9e   :  { %1670 = vrot.lane.b32.xlu0 %v10931_v21, %s11155_s7  ;;  %1630 = vrot.lane.b32.xlu1 %v1629_v20, %s11156_s26  ;;  %v10933_v25 = vpop.eup %10932  ;;  %v1919_v20 = vrot.slane %v1770_v50, 2 }
 0xa9f   :  { %v1618_v27 = vadd.f32 1.0, %v10933_v25  ;;  %v10935_v28 = vpop.eup %10934 }
 0xaa0   :  { %v1653_v30 = vadd.f32 1.0, %v10935_v28 }
 0xaa1   :  { %10936 = vrcp.f32 %v1618_v27 }
 0xaa2   :  { %1665 = vrot.lane.b32.xlu0 %v1664_v3, %s11156_s26  ;;  %10938 = vrcp.f32 %v1653_v30 }
 0xaae   :  { %v10937_v31 = vpop.eup %10936 }
 0xaaf   :  { %v10939_v34 = vpop.eup %10938 }
 0xb0c   :  { %v1636_v32 = vpop.permute.xlu1 %1635 }
 0xb0d   :  { %v1638_v33 = vmul.f32 %v10937_v31, %v1636_v32 }
 0xb0f   :  { %1640 = vrot.lane.b32.xlu1 %v1638_v33, %s11156_s26 }
 0xb10   :  { %v1671_v35 = vpop.permute.xlu0 %1670  ;;  %v1631_v37 = vpop.permute.xlu1 %1630 }
 0xb11   :  { %v1673_v36 = vmul.f32 %v10939_v34, %v1671_v35  ;;  %v1633_v38 = vmul.f32 %v10937_v31, %v1631_v37 }
 0xb13   :  { %1675 = vrot.lane.b32.xlu0 %v1673_v36, %s11156_s26 }
 0xb14   :  { %v1666_v39 = vpop.permute.xlu0 %1665 }
 0xb15   :  { %v1668_v44 = vmul.f32 %v10939_v34, %v1666_v39 }
 0xb81   :  { %v1641_v41 = vpop.permute.xlu1 %1640 }
 0xb82   :  { %v1643_v43 = vadd.f32 %v1641_v41, %v1633_v38 }
 0xb84   :  { %10940 = vtanh.f32 %v1643_v43  ;;  %v1738_v5 = vrot.slane %v1643_v43, %v11351_v22 }
 0xb85   :  { %v1676_v29 = vpop.permute.xlu0 %1675 }
 0xb86   :  { %v1678_v46 = vadd.f32 %v1676_v29, %v1668_v44 }
 0xb88   :  { %10942 = vtanh.f32 %v1678_v46  ;;  %v1760_v47 = vrot.slane %v1678_v46, %v11351_v22 }
 0xb91   :  { %v10941_v51 = vpop.eup %10940 }
 0xb92   :  { %1646 = vrot.lane.b32.xlu1 %v10941_v51, %s11155_s7 }
 0xb95   :  { %v10943_v53 = vpop.eup %10942 }
 0xb96   :  { %1681 = vrot.lane.b32.xlu0 %v10943_v53, %s11155_s7  ;;  %1687 = vperm.xlu1 %10879, %v10213_v52  }
 0xb9a   :  { %1706 = vperm.xlu0 %10878, %v10214_v55   ;;  %1726 = vperm.xlu1 %10879, %v1723_v54  }
 0xb9e   :  { %1748 = vperm.xlu0 %10878, %v1745_v56  }
 0xc04   :  { %v1647_v57 = vpop.permute.xlu1 %1646 }
 0xc05   :  { %v1649_v59 = vmul.f32 %v10937_v31, %v1647_v57 }
 0xc07   :  { %v1697_v61 = vrot.slane %v1649_v59, %v11351_v22 }
 0xc08   :  { %v1682_v63 = vpop.permute.xlu0 %1681 }
 0xc09   :  { %v1684_v4 = vmul.f32 %v10939_v34, %v1682_v63  ;;  %1698 = vrot.lane.b32.xlu1 %v1697_v61, %s11156_s26 }
 0xc0b   :  { %v1716_v6 = vrot.slane %v1684_v4, %v11351_v22 }
 0xc0d   :  { %1717 = vrot.lane.b32.xlu0 %v1716_v6, %s11156_s26  ;;  %1739 = vrot.lane.b32.xlu1 %v1738_v5, %s11158_s5  ;;  %v10219_v6 = vld [vmem:[%s13146_s4 + $0x8] sm:$0x3] }
 0xc11   :  { %1761 = vrot.lane.b32.xlu0 %v1760_v47, %s11158_s5  ;;  %v1688_v24 = vpop.permute.xlu1 %1687 }
 0xc15   :  { %v1707_v48 = vpop.permute.xlu0 %1706  ;;  %v1727_v8 = vpop.permute.xlu1 %1726 }
 0xc16   :  { %v1729_v10 = vmul.f32 %v1727_v8, %v11647_v0  ;;  %v1743_v28 = vmul.f32 %v1727_v8, %v11678_v16 }
 0xc19   :  { %v1749_v9 = vpop.permute.xlu0 %1748 }
 0xc1a   :  { %v1751_v12 = vmul.f32 %v1749_v9, %v11656_v40  ;;  %v1769_v40 = vld [vmem:[#allocation4 + $0x10] sm:$0xf]  ;;  %v1765_v33 = vmul.f32 %v1749_v9, %v11682_v19 }
 0xc7b   :  { %v1699_v42 = vpop.permute.xlu1 %1698 }
 0xc7c   :  { %v1701_v45 = vmul.f32 %v1699_v42, %v1688_v24 }
 0xc7e   :  { %1703 = vst.msk [vmem:[#allocation2 + $0x6] sm:$0x3] %vm771_vm4, %v1701_v45  ;;  %v11711_v11 = vadd.f32 %v1729_v10, %v1701_v45 }
 0xc7f   :  { %v1718_v49 = vpop.permute.xlu0 %1717  ;;  %v1740_v7 = vpop.permute.xlu1 %1739 }
 0xc80   :  { %v1720_v13 = vmul.f32 %v1718_v49, %v1707_v48  ;;  %10600 = vmatmul.mubr.msk.f32.vlgmr.msra.gmra.mxu0 %vm178_vm3, %v11711_v11  ;;  %v1742_v25 = vmul.f32 %v1740_v7, %v1688_v24  ;;  %v2030_v24 = vsub.f32 1.0, %v10219_v6 }
 0xc81   :  { %10614 = vmatpush3.msra.mxu0 %v11455_v58  ;;  %10621 = vmatprep.mubr.msk.f32.mxu0 %vm11153_vm2, %v13127_v1  ;;  %v11731_v58 = vld [vmem:[%s13110_s14 + $0x18] sm:$0xff] }
 0xc82   :  { %1722 = vst.msk [vmem:[#allocation3 + $0x8] sm:$0x3] %vm771_vm4, %v1720_v13  ;;  %v11720_v0 = vadd.f32 %v1751_v12, %v1720_v13  ;;  %10615 = vmatprep.subr.mxu0 %v13127_v1  ;;  %v11762_v30 = vadd.f32 %v1743_v28, %v1742_v25  ;;  %v11803_v28 = vld [vmem:[%s13109_s13 + $0x18] sm:$0xff] }
 0xc83   :  { %10616 = vmatpush3.msra.mxu0 %v11462_v60  ;;  %v11739_v60 = vld [vmem:[%s13110_s14 + $0x10] sm:$0xff]  ;;  %v1762_v27 = vpop.permute.xlu0 %1761 }
 0xc84   :  { %10611 = vmatmul.mubr.msk.f32.vlgmr.msra.gmra.mxu1 %vm178_vm3, %v11720_v0  ;;  %10617 = vmatprep.subr.mxu0 %v13127_v1  ;;  %v1764_v31 = vmul.f32 %v1762_v27, %v1707_v48  ;;  %v1936_v35 = vrot.slane %v11762_v30, %v11351_v22  ;;  %v10220_v48 = vld [vmem:[%s13146_s4 + $0x6] sm:$0x3] }
 0xc85   :  { %10618 = vmatpush3.msra.mxu0 %v11471_v62  ;;  %10625 = vmatpush3.msra.mxu1 %v11731_v58  ;;  %v11749_v62 = vld [vmem:[%s13110_s14 + $0x8] sm:$0xff]  ;;  %v2052_v8 = vsub.f32 1.0, %v10220_v48 }
 0xc86   :  { %10619 = vmatprep.subr.mxu0 %v13127_v1  ;;  %10626 = vmatprep.subr.mxu1 %v13127_v1  ;;  %v11766_v34 = vadd.f32 %v1765_v33, %v1764_v31  ;;  %v11824_v31 = vld [vmem:[%s13109_s13 + $0x8] sm:$0xff]  ;;  %v2076_v33 = vld [vmem:[#allocation4 + $0x14] sm:$0xf] }
 0xc87   :  { %10627 = vmatpush3.msra.mxu1 %v11739_v60  ;;  %10620 = vmatpush3.msra.mxu0 %v11478_v2  ;;  %v11757_v2 = vld [vmem:[%s13110_s14] sm:$0xff] }
 0xc88   :  { %10628 = vmatprep.subr.mxu1 %v13127_v1  ;;  %10632 = vmatprep.mubr.msk.f32.mxu1 %vm11153_vm2, %v13127_v1  ;;  %v1971_v16 = vrot.slane %v11766_v34, %v11351_v22 }
 0xc89   :  { %10629 = vmatpush3.msra.mxu1 %v11749_v62  ;;  %10635 = vmatprep.subr.mxu0 %v13127_v1 }
 0xc8a   :  { %10630 = vmatprep.subr.mxu1 %v13127_v1 }
 0xc8b   :  { %10631 = vmatpush3.msra.mxu1 %v11757_v2 }
 0xc8c   :  { %10646 = vmatprep.subr.mxu1 %v13127_v1 }
 0xd40   :  { %v1840_v15 = vpop.f32.mrf.mxu0 }
 0xd41   :  { %v1844_v17 = vadd.f32 %v1840_v15, %v1769_v40 }
 0xd42   :  { %v10601_v18 = vpop.f32.mrf.mxu0 }
 0xd43   :  { %10944 = vtanh.f32 %v1844_v17  ;;  %v10223_v37 = vmul.f32 -1.442695, %v1844_v17 }
 0xd44   :  { %v1914_v21 = vpop.f32.mrf.mxu1 }
 0xd45   :  { %v1921_v3 = vadd.f32 %v1919_v20, %v1914_v21 }
 0xd46   :  { %v10612_v23 = vpop.f32.mrf.mxu1 }
 0xd47   :  { %10946 = vtanh.f32 %v1921_v3  ;;  %v10224_v19 = vmul.f32 -1.442695, %v1921_v3 }
 0xd48   :  { %10948 = vpow2.f32 %v10223_v37 }
 0xd49   :  { %10950 = vpow2.f32 %v10224_v19 }
 0xd50   :  { %v10945_v32 = vpop.eup %10944 }
 0xd51   :  { %1942 = vrot.lane.b32.xlu1 %v10945_v32, %s11155_s7  ;;  %v11834_v32 = vld [vmem:[%s13109_s13] sm:$0xff] }
 0xd54   :  { %v10947_v36 = vpop.eup %10946 }
 0xd55   :  { %1977 = vrot.lane.b32.xlu0 %v10947_v36, %s11155_s7  ;;  %1937 = vrot.lane.b32.xlu1 %v1936_v35, %s11156_s26  ;;  %v10949_v38 = vpop.eup %10948  ;;  %v2077_v36 = vld [vmem:[#allocation4 + $0x8] sm:$0xf] }
 0xd56   :  { %v1925_v39 = vadd.f32 1.0, %v10949_v38  ;;  %v10951_v41 = vpop.eup %10950  ;;  %v2226_v19 = vrot.slane %v2077_v36, 2 }
 0xd57   :  { %v1960_v43 = vadd.f32 1.0, %v10951_v41 }
 0xd58   :  { %10952 = vrcp.f32 %v1925_v39 }
 0xd59   :  { %1972 = vrot.lane.b32.xlu0 %v1971_v16, %s11156_s26  ;;  %10954 = vrcp.f32 %v1960_v43 }
 0xd65   :  { %v10953_v44 = vpop.eup %10952 }
 0xd66   :  { %v10955_v51 = vpop.eup %10954 }
 0xdc3   :  { %v1943_v29 = vpop.permute.xlu1 %1942 }
 0xdc4   :  { %v1945_v46 = vmul.f32 %v10953_v44, %v1943_v29 }
 0xdc6   :  { %1947 = vrot.lane.b32.xlu1 %v1945_v46, %s11156_s26 }
 0xdc7   :  { %v1978_v52 = vpop.permute.xlu0 %1977  ;;  %v1938_v54 = vpop.permute.xlu1 %1937 }
 0xdc8   :  { %v1980_v53 = vmul.f32 %v10955_v51, %v1978_v52  ;;  %v1940_v55 = vmul.f32 %v10953_v44, %v1938_v54 }
 0xdca   :  { %1982 = vrot.lane.b32.xlu0 %v1980_v53, %s11156_s26 }
 0xdcb   :  { %v1973_v56 = vpop.permute.xlu0 %1972 }
 0xdcc   :  { %v1975_v61 = vmul.f32 %v10955_v51, %v1973_v56 }
 0xe38   :  { %v1948_v57 = vpop.permute.xlu1 %1947 }
 0xe39   :  { %v1950_v59 = vadd.f32 %v1948_v57, %v1940_v55 }
 0xe3b   :  { %10956 = vtanh.f32 %v1950_v59  ;;  %v2045_v12 = vrot.slane %v1950_v59, %v11351_v22 }
 0xe3c   :  { %v1983_v63 = vpop.permute.xlu0 %1982 }
 0xe3d   :  { %v1985_v4 = vadd.f32 %v1983_v63, %v1975_v61 }
 0xe3f   :  { %10958 = vtanh.f32 %v1985_v4  ;;  %v2067_v40 = vrot.slane %v1985_v4, %v11351_v22 }
 0xe48   :  { %v10957_v5 = vpop.eup %10956 }
 0xe49   :  { %1953 = vrot.lane.b32.xlu1 %v10957_v5, %s11155_s7 }
 0xe4c   :  { %v10959_v47 = vpop.eup %10958 }
 0xe4d   :  { %1988 = vrot.lane.b32.xlu0 %v10959_v47, %s11155_s7  ;;  %1994 = vperm.xlu1 %10879, %v10219_v6  }
 0xe51   :  { %2013 = vperm.xlu0 %10878, %v10220_v48   ;;  %2033 = vperm.xlu1 %10879, %v2030_v24  }
 0xe55   :  { %2055 = vperm.xlu0 %10878, %v2052_v8  }
 0xebb   :  { %v1954_v9 = vpop.permute.xlu1 %1953 }
 0xebc   :  { %v1956_v42 = vmul.f32 %v10953_v44, %v1954_v9 }
 0xebe   :  { %v2004_v10 = vrot.slane %v1956_v42, %v11351_v22 }
 0xebf   :  { %v1989_v45 = vpop.permute.xlu0 %1988 }
 0xec0   :  { %v1991_v49 = vmul.f32 %v10955_v51, %v1989_v45  ;;  %2005 = vrot.lane.b32.xlu1 %v2004_v10, %s11156_s26 }
 0xec2   :  { %v2023_v13 = vrot.slane %v1991_v49, %v11351_v22 }
 0xec4   :  { %2024 = vrot.lane.b32.xlu0 %v2023_v13, %s11156_s26  ;;  %2046 = vrot.lane.b32.xlu1 %v2045_v12, %s11158_s5 }
 0xec8   :  { %2068 = vrot.lane.b32.xlu0 %v2067_v40, %s11158_s5  ;;  %v1995_v15 = vpop.permute.xlu1 %1994 }
 0xecc   :  { %v2014_v50 = vpop.permute.xlu0 %2013  ;;  %v2034_v17 = vpop.permute.xlu1 %2033 }
 0xecd   :  { %v2036_v21 = vmul.f32 %v2034_v17, %v11711_v11  ;;  %v2050_v46 = vmul.f32 %v2034_v17, %v11762_v30  ;;  %v10225_v17 = vld [vmem:[%s13146_s4 + $0xa] sm:$0x3] }
 0xed0   :  { %v2056_v18 = vpop.permute.xlu0 %2055 }
 0xed1   :  { %v2058_v25 = vmul.f32 %v2056_v18, %v11720_v0  ;;  %v11815_v0 = vld [vmem:[%s13109_s13 + $0x10] sm:$0xff]  ;;  %v2072_v54 = vmul.f32 %v2056_v18, %v11766_v34  ;;  %s13148_s13 = sld [smem:[#allocation13_spill]] }
 0xf32   :  { %v2006_v20 = vpop.permute.xlu1 %2005 }
 0xf33   :  { %v2008_v3 = vmul.f32 %v2006_v20, %v1995_v15  ;;  %v2337_v20 = vsub.f32 1.0, %v10225_v17 }
 0xf35   :  { %2010 = vst.msk [vmem:[#allocation2 + $0x8] sm:$0x3] %vm771_vm4, %v2008_v3  ;;  %v11795_v23 = vadd.f32 %v2036_v21, %v2008_v3  ;;  %v10226_v21 = vld [vmem:[%s13146_s4 + $0x4] sm:$0x3] }
 0xf36   :  { %v2025_v7 = vpop.permute.xlu0 %2024  ;;  %v2047_v43 = vpop.permute.xlu1 %2046  ;;  %v2359_v3 = vsub.f32 1.0, %v10226_v21 }
 0xf37   :  { %v2027_v27 = vmul.f32 %v2025_v7, %v2014_v50  ;;  %10622 = vmatmul.mubr.msk.f32.vlgmr.msra.gmra.mxu0 %vm178_vm3, %v11795_v23  ;;  %v2049_v44 = vmul.f32 %v2047_v43, %v1995_v15 }
 0xf38   :  { %10636 = vmatpush3.msra.mxu0 %v11803_v28  ;;  %10643 = vmatprep.mubr.msk.f32.mxu0 %vm11153_vm2, %v13127_v1 }
 0xf39   :  { %2029 = vst.msk [vmem:[#allocation3 + $0x6] sm:$0x3] %vm771_vm4, %v2027_v27  ;;  %v11809_v11 = vadd.f32 %v2058_v25, %v2027_v27  ;;  %10637 = vmatprep.subr.mxu0 %v13127_v1  ;;  %v11846_v51 = vadd.f32 %v2050_v46, %v2049_v44 }
 0xf3a   :  { %10638 = vmatpush3.msra.mxu0 %v11815_v0  ;;  %v2069_v29 = vpop.permute.xlu0 %2068 }
 0xf3b   :  { %10633 = vmatmul.mubr.msk.f32.vlgmr.msra.gmra.mxu1 %vm178_vm3, %v11809_v11  ;;  %10639 = vmatprep.subr.mxu0 %v13127_v1  ;;  %v2071_v52 = vmul.f32 %v2069_v29, %v2014_v50  ;;  %v2243_v56 = vrot.slane %v11846_v51, %v11351_v22 }
 0xf3c   :  { %10640 = vmatpush3.msra.mxu0 %v11824_v31  ;;  %10647 = vmatpush3.msra.mxu1 %v11731_v58 }
 0xf3d   :  { %10641 = vmatprep.subr.mxu0 %v13127_v1  ;;  %10648 = vmatprep.subr.mxu1 %v13127_v1  ;;  %v11850_v55 = vadd.f32 %v2072_v54, %v2071_v52 }
 0xf3e   :  { %10649 = vmatpush3.msra.mxu1 %v11739_v60  ;;  %10642 = vmatpush3.msra.mxu0 %v11834_v32 }
 0xf3f   :  { %10650 = vmatprep.subr.mxu1 %v13127_v1  ;;  %10654 = vmatprep.mubr.msk.f32.mxu1 %vm11153_vm2, %v13127_v1  ;;  %v2278_v30 = vrot.slane %v11850_v55, %v11351_v22 }
 0xf40   :  { %10651 = vmatpush3.msra.mxu1 %v11749_v62  ;;  %10657 = vmatprep.subr.mxu0 %v13127_v1 }
 0xf41   :  { %10652 = vmatprep.subr.mxu1 %v13127_v1 }
 0xf42   :  { %10653 = vmatpush3.msra.mxu1 %v11757_v2 }
 0xf43   :  { %10668 = vmatprep.subr.mxu1 %v13127_v1 }
 0xff7   :  { %v2147_v35 = vpop.f32.mrf.mxu0 }
 0xff8   :  { %v2151_v16 = vadd.f32 %v2147_v35, %v2076_v33 }
 0xff9   :  { %v10623_v37 = vpop.f32.mrf.mxu0 }
 0xffa   :  { %10960 = vtanh.f32 %v2151_v16  ;;  %v10229_v59 = vmul.f32 -1.442695, %v2151_v16 }
 0xffb   :  { %v2221_v38 = vpop.f32.mrf.mxu1 }
 0xffc   :  { %v2228_v39 = vadd.f32 %v2226_v19, %v2221_v38 }
 0xffd   :  { %v10634_v41 = vpop.f32.mrf.mxu1 }
 0xffe   :  { %10962 = vtanh.f32 %v2228_v39  ;;  %v10230_v34 = vmul.f32 -1.442695, %v2228_v39 }
 0xfff   :  { %10964 = vpow2.f32 %v10229_v59 }
0x1000   :  { %10966 = vpow2.f32 %v10230_v34 }
0x1007   :  { %v10961_v53 = vpop.eup %10960 }
0x1008   :  { %2249 = vrot.lane.b32.xlu1 %v10961_v53, %s11155_s7 }
0x100b   :  { %v10963_v57 = vpop.eup %10962 }
0x100c   :  { %2284 = vrot.lane.b32.xlu0 %v10963_v57, %s11155_s7  ;;  %2244 = vrot.lane.b32.xlu1 %v2243_v56, %s11156_s26  ;;  %v10965_v61 = vpop.eup %10964 }
0x100d   :  { %v2232_v63 = vadd.f32 1.0, %v10965_v61  ;;  %v10967_v4 = vpop.eup %10966 }
0x100e   :  { %v2267_v5 = vadd.f32 1.0, %v10967_v4 }
0x100f   :  { %10968 = vrcp.f32 %v2232_v63 }
0x1010   :  { %2279 = vrot.lane.b32.xlu0 %v2278_v30, %s11156_s26  ;;  %10970 = vrcp.f32 %v2267_v5 }
0x101c   :  { %v10969_v6 = vpop.eup %10968 }
0x101d   :  { %v10971_v48 = vpop.eup %10970 }
0x107a   :  { %v2250_v47 = vpop.permute.xlu1 %2249 }
0x107b   :  { %v2252_v24 = vmul.f32 %v10969_v6, %v2250_v47 }
0x107d   :  { %2254 = vrot.lane.b32.xlu1 %v2252_v24, %s11156_s26 }
0x107e   :  { %v2285_v8 = vpop.permute.xlu0 %2284  ;;  %v2245_v42 = vpop.permute.xlu1 %2244 }
0x107f   :  { %v2287_v9 = vmul.f32 %v10971_v48, %v2285_v8  ;;  %v2247_v10 = vmul.f32 %v10969_v6, %v2245_v42 }
0x1081   :  { %2289 = vrot.lane.b32.xlu0 %v2287_v9, %s11156_s26 }
0x1082   :  { %v2280_v45 = vpop.permute.xlu0 %2279 }
0x1083   :  { %v2282_v13 = vmul.f32 %v10971_v48, %v2280_v45 }
0x10ef   :  { %v2255_v49 = vpop.permute.xlu1 %2254 }
0x10f0   :  { %v2257_v12 = vadd.f32 %v2255_v49, %v2247_v10 }
0x10f2   :  { %10972 = vtanh.f32 %v2257_v12  ;;  %v2352_v36 = vrot.slane %v2257_v12, %v11351_v22 }
0x10f3   :  { %v2290_v40 = vpop.permute.xlu0 %2289 }
0x10f4   :  { %v2292_v15 = vadd.f32 %v2290_v40, %v2282_v13 }
0x10f6   :  { %10974 = vtanh.f32 %v2292_v15  ;;  %v2374_v37 = vrot.slane %v2292_v15, %v11351_v22 }
0x10ff   :  { %v10973_v50 = vpop.eup %10972 }
0x1100   :  { %2260 = vrot.lane.b32.xlu1 %v10973_v50, %s11155_s7 }
0x1103   :  { %v10975_v18 = vpop.eup %10974 }
0x1104   :  { %2295 = vrot.lane.b32.xlu0 %v10975_v18, %s11155_s7  ;;  %2301 = vperm.xlu1 %10879, %v10225_v17  }
0x1108   :  { %2320 = vperm.xlu0 %10878, %v10226_v21   ;;  %2340 = vperm.xlu1 %10879, %v2337_v20  }
0x110c   :  { %2362 = vperm.xlu0 %10878, %v2359_v3  }
0x1172   :  { %v2261_v7 = vpop.permute.xlu1 %2260 }
0x1173   :  { %v2263_v25 = vmul.f32 %v10969_v6, %v2261_v7 }
0x1175   :  { %v2311_v27 = vrot.slane %v2263_v25, %v11351_v22 }
0x1176   :  { %v2296_v33 = vpop.permute.xlu0 %2295 }
0x1177   :  { %v2298_v35 = vmul.f32 %v10971_v48, %v2296_v33  ;;  %2312 = vrot.lane.b32.xlu1 %v2311_v27, %s11156_s26  ;;  %v10231_v27 = vld [vmem:[%s13146_s4 + $0xc] sm:$0x3] }
0x1179   :  { %v2330_v16 = vrot.slane %v2298_v35, %v11351_v22  ;;  %v2644_v35 = vsub.f32 1.0, %v10231_v27 }
0x117b   :  { %2331 = vrot.lane.b32.xlu0 %v2330_v16, %s11156_s26  ;;  %2353 = vrot.lane.b32.xlu1 %v2352_v36, %s11158_s5  ;;  %v10232_v36 = vld [vmem:[%s13146_s4 + $0x2] sm:$0x3] }
0x117c   :  { %v2666_v16 = vsub.f32 1.0, %v10232_v36 }
0x117f   :  { %2375 = vrot.lane.b32.xlu0 %v2374_v37, %s11158_s5  ;;  %v2302_v19 = vpop.permute.xlu1 %2301 }
0x1183   :  { %v2321_v38 = vpop.permute.xlu0 %2320  ;;  %v2341_v39 = vpop.permute.xlu1 %2340 }
0x1184   :  { %v2343_v44 = vmul.f32 %v2341_v39, %v11795_v23  ;;  %v2357_v34 = vmul.f32 %v2341_v39, %v11846_v51 }
0x1187   :  { %v2363_v41 = vpop.permute.xlu0 %2362 }
0x1188   :  { %v2365_v53 = vmul.f32 %v2363_v41, %v11809_v11  ;;  %v2384_v11 = vld [vmem:[#allocation4 + $0x4] sm:$0xf]  ;;  %v2379_v4 = vmul.f32 %v2363_v41, %v11850_v55 }
0x11e9   :  { %v2313_v43 = vpop.permute.xlu1 %2312 }
0x11ea   :  { %v2315_v29 = vmul.f32 %v2313_v43, %v2302_v19 }
0x11ec   :  { %2317 = vst.msk [vmem:[#allocation2 + $0xa] sm:$0x3] %vm771_vm4, %v2315_v29  ;;  %v11879_v46 = vadd.f32 %v2343_v44, %v2315_v29 }
0x11ed   :  { %v2332_v52 = vpop.permute.xlu0 %2331  ;;  %v2354_v30 = vpop.permute.xlu1 %2353 }
0x11ee   :  { %v2334_v54 = vmul.f32 %v2332_v52, %v2321_v38  ;;  %10644 = vmatmul.mubr.msk.f32.vlgmr.msra.gmra.mxu0 %vm178_vm3, %v11879_v46  ;;  %v2356_v59 = vmul.f32 %v2354_v30, %v2302_v19 }
0x11ef   :  { %10658 = vmatpush3.msra.mxu0 %v11803_v28  ;;  %10665 = vmatprep.mubr.msk.f32.mxu0 %vm11153_vm2, %v13127_v1 }
0x11f0   :  { %2336 = vst.msk [vmem:[#allocation3 + $0x4] sm:$0x3] %vm771_vm4, %v2334_v54  ;;  %v11888_v23 = vadd.f32 %v2365_v53, %v2334_v54  ;;  %10659 = vmatprep.subr.mxu0 %v13127_v1  ;;  %v11909_v61 = vadd.f32 %v2357_v34, %v2356_v59  ;;  %v2691_v59 = vld [vmem:[#allocation4] sm:$0xf] }
0x11f1   :  { %10660 = vmatpush3.msra.mxu0 %v11815_v0 }
0x11f2   :  { %10655 = vmatmul.mubr.msk.f32.vlgmr.msra.gmra.mxu1 %vm178_vm3, %v11888_v23  ;;  %10661 = vmatprep.subr.mxu0 %v13127_v1  ;;  %v2550_v6 = vrot.slane %v11909_v61, %v11351_v22 }
0x11f3   :  { %10662 = vmatpush3.msra.mxu0 %v11824_v31  ;;  %10669 = vmatpush3.msra.mxu1 %v11731_v58  ;;  %v2383_v58 = vld [vmem:[#allocation4 + $0x18] sm:$0xf]  ;;  %v2533_v31 = vrot.slane %v2384_v11, 2 }
0x11f4   :  { %10663 = vmatprep.subr.mxu0 %v13127_v1  ;;  %10670 = vmatprep.subr.mxu1 %v13127_v1 }
0x11f5   :  { %10671 = vmatpush3.msra.mxu1 %v11739_v60  ;;  %10664 = vmatpush3.msra.mxu0 %v11834_v32 }
0x11f6   :  { %10672 = vmatprep.subr.mxu1 %v13127_v1  ;;  %10676 = vmatprep.mubr.msk.f32.mxu1 %vm11153_vm2, %v13127_v1 }
0x11f7   :  { %10673 = vmatpush3.msra.mxu1 %v11749_v62  ;;  %10679 = vmatprep.subr.mxu0 %v13127_v1  ;;  %v2376_v62 = vpop.permute.xlu0 %2375 }
0x11f8   :  { %10674 = vmatprep.subr.mxu1 %v13127_v1  ;;  %v2378_v63 = vmul.f32 %v2376_v62, %v2321_v38 }
0x11f9   :  { %10675 = vmatpush3.msra.mxu1 %v11757_v2 }
0x11fa   :  { %v11913_v5 = vadd.f32 %v2379_v4, %v2378_v63 }
0x11fc   :  { %v2585_v51 = vrot.slane %v11913_v5, %v11351_v22 }
0x12ae   :  { %v2454_v28 = vpop.f32.mrf.mxu0 }
0x12af   :  { %v2458_v0 = vadd.f32 %v2454_v28, %v2383_v58 }
0x12b0   :  { %v10645_v60 = vpop.f32.mrf.mxu0 }
0x12b1   :  { %10976 = vtanh.f32 %v2458_v0  ;;  %v10235_v24 = vmul.f32 -1.442695, %v2458_v0 }
0x12b2   :  { %v2528_v32 = vpop.f32.mrf.mxu1 }
0x12b3   :  { %v2535_v56 = vadd.f32 %v2533_v31, %v2528_v32 }
0x12b4   :  { %v10656_v57 = vpop.f32.mrf.mxu1 }
0x12b5   :  { %10978 = vtanh.f32 %v2535_v56  ;;  %v10236_v55 = vmul.f32 -1.442695, %v2535_v56 }
0x12b6   :  { %10980 = vpow2.f32 %v10235_v24 }
0x12b7   :  { %10982 = vpow2.f32 %v10236_v55 }
0x12be   :  { %v10977_v2 = vpop.eup %10976 }
0x12bf   :  { %2556 = vrot.lane.b32.xlu1 %v10977_v2, %s11155_s7 }
0x12c2   :  { %v10979_v47 = vpop.eup %10978 }
0x12c3   :  { %2591 = vrot.lane.b32.xlu0 %v10979_v47, %s11155_s7  ;;  %2551 = vrot.lane.b32.xlu1 %v2550_v6, %s11156_s26  ;;  %v10981_v48 = vpop.eup %10980 }
0x12c4   :  { %v2539_v8 = vadd.f32 1.0, %v10981_v48  ;;  %v10983_v9 = vpop.eup %10982 }
0x12c5   :  { %v2574_v42 = vadd.f32 1.0, %v10983_v9 }
0x12c6   :  { %10984 = vrcp.f32 %v2539_v8 }
0x12c7   :  { %2586 = vrot.lane.b32.xlu0 %v2585_v51, %s11156_s26  ;;  %10986 = vrcp.f32 %v2574_v42 }
0x12d3   :  { %v10985_v10 = vpop.eup %10984 }
0x12d4   :  { %v10987_v12 = vpop.eup %10986 }
0x1331   :  { %v2557_v45 = vpop.permute.xlu1 %2556 }
0x1332   :  { %v2559_v49 = vmul.f32 %v10985_v10, %v2557_v45 }
0x1334   :  { %2561 = vrot.lane.b32.xlu1 %v2559_v49, %s11156_s26 }
0x1335   :  { %v2592_v13 = vpop.permute.xlu0 %2591  ;;  %v2552_v15 = vpop.permute.xlu1 %2551 }
0x1336   :  { %v2594_v40 = vmul.f32 %v10987_v12, %v2592_v13  ;;  %v2554_v50 = vmul.f32 %v10985_v10, %v2552_v15 }
0x1338   :  { %2596 = vrot.lane.b32.xlu0 %v2594_v40, %s11156_s26 }
0x1339   :  { %v2587_v17 = vpop.permute.xlu0 %2586 }
0x133a   :  { %v2589_v21 = vmul.f32 %v10987_v12, %v2587_v17 }
0x13a6   :  { %v2562_v18 = vpop.permute.xlu1 %2561 }
0x13a7   :  { %v2564_v20 = vadd.f32 %v2562_v18, %v2554_v50 }
0x13a9   :  { %10988 = vtanh.f32 %v2564_v20  ;;  %v2659_v43 = vrot.slane %v2564_v20, %v11351_v22 }
0x13aa   :  { %v2597_v3 = vpop.permute.xlu0 %2596 }
0x13ab   :  { %v2599_v7 = vadd.f32 %v2597_v3, %v2589_v21 }
0x13ad   :  { %10990 = vtanh.f32 %v2599_v7  ;;  %v2681_v29 = vrot.slane %v2599_v7, %v11351_v22 }
0x13b6   :  { %v10989_v25 = vpop.eup %10988 }
0x13b7   :  { %2567 = vrot.lane.b32.xlu1 %v10989_v25, %s11155_s7 }
0x13ba   :  { %v10991_v33 = vpop.eup %10990 }
0x13bb   :  { %2602 = vrot.lane.b32.xlu0 %v10991_v33, %s11155_s7  ;;  %2608 = vperm.xlu1 %10879, %v10231_v27  }
0x13bf   :  { %2627 = vperm.xlu0 %10878, %v10232_v36   ;;  %2647 = vperm.xlu1 %10879, %v2644_v35  }
0x13c3   :  { %2669 = vperm.xlu0 %10878, %v2666_v16  }
0x1429   :  { %v2568_v37 = vpop.permute.xlu1 %2567 }
0x142a   :  { %v2570_v19 = vmul.f32 %v10985_v10, %v2568_v37 }
0x142c   :  { %v2618_v38 = vrot.slane %v2570_v19, %v11351_v22 }
0x142d   :  { %v2603_v39 = vpop.permute.xlu0 %2602 }
0x142e   :  { %v2605_v41 = vmul.f32 %v10987_v12, %v2603_v39  ;;  %2619 = vrot.lane.b32.xlu1 %v2618_v38, %s11156_s26  ;;  %v10237_v38 = vld [vmem:[%s13146_s4 + $0xe] sm:$0x3] }
0x1430   :  { %v2637_v44 = vrot.slane %v2605_v41, %v11351_v22  ;;  %v2950_v41 = vsub.f32 1.0, %v10237_v38 }
0x1432   :  { %2638 = vrot.lane.b32.xlu0 %v2637_v44, %s11156_s26  ;;  %2660 = vrot.lane.b32.xlu1 %v2659_v43, %s11158_s5  ;;  %v2689_v43 = vld [vmem:[%s13146_s4] sm:$0x3] }
0x1433   :  { %v2958_v44 = vsub.f32 1.0, %v2689_v43 }
0x1436   :  { %2682 = vrot.lane.b32.xlu0 %v2681_v29, %s11158_s5  ;;  %v2609_v52 = vpop.permute.xlu1 %2608  ;;  %v3003_v29 = vld [vmem:[%s13111_s15 + $0x38] sm:$0xff] }
0x143a   :  { %v2628_v53 = vpop.permute.xlu0 %2627  ;;  %v2648_v54 = vpop.permute.xlu1 %2647 }
0x143b   :  { %v2650_v11 = vmul.f32 %v2648_v54, %v11879_v46  ;;  %v2690_v46 = vld [vmem:[#allocation4 + $0x1c] sm:$0xf]  ;;  %v2664_v24 = vmul.f32 %v2648_v54, %v11909_v61  ;;  %v3000_v54 = vld [vmem:[%s13111_s15 + $0x20] sm:$0xff] }
0x143e   :  { %v2670_v58 = vpop.permute.xlu0 %2669 }
0x143f   :  { %v2672_v32 = vmul.f32 %v2670_v58, %v11888_v23  ;;  %v2840_v23 = vrot.slane %v2691_v59, 2  ;;  %v2686_v9 = vmul.f32 %v2670_v58, %v11913_v5  ;;  %v2999_v58 = vld [vmem:[%s13111_s15 + $0x18] sm:$0xff]  ;;  %v10190_v59 = vld [vmem:[%s13106_s10] ss:$0 sm:$0xff] }
0x14a0   :  { %v2620_v28 = vpop.permute.xlu1 %2619 }
0x14a1   :  { %v2622_v0 = vmul.f32 %v2620_v28, %v2609_v52  ;;  %v2998_v28 = vld [vmem:[%s13111_s15 + $0x10] sm:$0xff] }
0x14a3   :  { %2624 = vst.msk [vmem:[#allocation2 + $0xc] sm:$0x3] %vm771_vm4, %v2622_v0  ;;  %v11942_v60 = vadd.f32 %v2650_v11, %v2622_v0  ;;  %v2997_v11 = vld [vmem:[%s13111_s15 + $0x8] sm:$0xff] }
0x14a4   :  { %v2639_v31 = vpop.permute.xlu0 %2638  ;;  %v2661_v6 = vpop.permute.xlu1 %2660 }
0x14a5   :  { %v2641_v56 = vmul.f32 %v2639_v31, %v2628_v53  ;;  %10666 = vmatmul.mubr.msk.f32.vlgmr.msra.gmra.mxu0 %vm178_vm3, %v11942_v60  ;;  %v2663_v47 = vmul.f32 %v2661_v6, %v2609_v52  ;;  %v3002_v52 = vld [vmem:[%s13111_s15 + $0x30] sm:$0xff] }
0x14a6   :  { %10695 = vmatprep.mubr.msk.f32.mxu0 %vm11153_vm2, %v13127_v1  ;;  %10680 = vmatpush3.msra.mxu0 %v3003_v29 }
0x14a7   :  { %2643 = vst.msk [vmem:[#allocation3 + $0x2] sm:$0x3] %vm771_vm4, %v2641_v56  ;;  %v11950_v57 = vadd.f32 %v2672_v32, %v2641_v56  ;;  %v2665_v55 = vadd.f32 %v2664_v24, %v2663_v47  ;;  %10681 = vmatprep.subr.mxu0 %v13127_v1  ;;  %v2996_v32 = vld [vmem:[%s13111_s15] sm:$0xff] }
0x14a8   :  { %v2683_v51 = vpop.permute.xlu0 %2682  ;;  %10682 = vmatpush3.msra.mxu0 %v3002_v52  ;;  %v10244_v52 = vld [vmem:[%s13116_s20] ss:$0 sm:$0xff] }
0x14a9   :  { %10677 = vmatmul.mubr.msk.f32.vlgmr.msra.gmra.mxu1 %vm178_vm3, %v11950_v57  ;;  %v2685_v48 = vmul.f32 %v2683_v51, %v2628_v53  ;;  %v2857_v42 = vrot.slane %v2665_v55, %v11351_v22  ;;  %10683 = vmatprep.subr.mxu0 %v13127_v1  ;;  %v3001_v53 = vld [vmem:[%s13111_s15 + $0x28] sm:$0xff] }
0x14aa   :  { %10684 = vmatpush3.msra.mxu0 %v3001_v53 }
0x14ab   :  { %v2687_v10 = vadd.f32 %v2686_v9, %v2685_v48  ;;  %10685 = vmatprep.subr.mxu0 %v13127_v1 }
0x14ac   :  { %10686 = vmatpush3.msra.mxu0 %v3000_v54 }
0x14ad   :  { %v2892_v49 = vrot.slane %v2687_v10, %v11351_v22  ;;  %10687 = vmatprep.subr.mxu0 %v13127_v1 }
0x14ae   :  { %10688 = vmatpush3.msra.mxu0 %v2999_v58 }
0x14af   :  { %10689 = vmatprep.subr.mxu0 %v13127_v1 }
0x14b0   :  { %10690 = vmatpush3.msra.mxu0 %v2998_v28 }
0x14b1   :  { %10691 = vmatprep.subr.mxu0 %v13127_v1 }
0x14b2   :  { %10692 = vmatpush3.msra.mxu0 %v2997_v11 }
0x14b3   :  { %10693 = vmatprep.subr.mxu0 %v13127_v1 }
0x14b4   :  { %10694 = vmatpush3.msra.mxu0 %v2996_v32 }
0x14b5   :  { %10720 = vmatprep.subr.mxu0 %v13127_v1 }
0x1565   :  { %v2761_v30 = vpop.f32.mrf.mxu0 }
0x1566   :  { %v2765_v62 = vadd.f32 %v2761_v30, %v2690_v46  ;;  %v3097_v46 = vld [vmem:[%s13114_s18 + $0x18] sm:$0xff]  ;;  %v3096_v30 = vld [vmem:[%s13114_s18 + $0x10] sm:$0xff] }
0x1567   :  { %v10667_v34 = vpop.f32.mrf.mxu0  ;;  %10698 = vmatprep.subr.mxu1 %v3097_v46 }
0x1568   :  { %10992 = vtanh.f32 %v2765_v62  ;;  %v10240_v61 = vmul.f32 -1.442695, %v2765_v62  ;;  %10699 = vmatpush3.msra.mxu1 %v3097_v46 }
0x1569   :  { %v2835_v63 = vpop.f32.mrf.mxu1  ;;  %10700 = vmatprep.subr.mxu1 %v3096_v30 }
0x156a   :  { %v2842_v2 = vadd.f32 %v2840_v23, %v2835_v63  ;;  %v3095_v23 = vld [vmem:[%s13114_s18 + $0x8] sm:$0xff]  ;;  %v334_v63 = vadd.f32 %v10190_v59, %v11499_v26  ;;  %10701 = vmatpush3.msra.mxu1 %v3096_v30 }
0x156b   :  { %v10678_v4 = vpop.f32.mrf.mxu1  ;;  %10702 = vmatprep.subr.mxu1 %v3095_v23 }
0x156c   :  { %10994 = vtanh.f32 %v2842_v2  ;;  %v10241_v12 = vmul.f32 -1.442695, %v2842_v2  ;;  %10703 = vmatpush3.msra.mxu1 %v3095_v23 }
0x156d   :  { %10996 = vpow2.f32 %v10240_v61 }
0x156e   :  { %10998 = vpow2.f32 %v10241_v12  ;;  %v3088_v12 = vld [vmem:[%s13147_s30 + $0x4] sm:$0x3] }
0x1575   :  { %v10993_v8 = vpop.eup %10992 }
0x1576   :  { %2863 = vrot.lane.b32.xlu1 %v10993_v8, %s11155_s7 }
0x1579   :  { %v10995_v45 = vpop.eup %10994 }
0x157a   :  { %2898 = vrot.lane.b32.xlu0 %v10995_v45, %s11155_s7  ;;  %2858 = vrot.lane.b32.xlu1 %v2857_v42, %s11156_s26  ;;  %v10997_v13 = vpop.eup %10996 }
0x157b   :  { %v2846_v5 = vadd.f32 1.0, %v10997_v13  ;;  %v10999_v40 = vpop.eup %10998  ;;  %v3089_v13 = vld [vmem:[%s13147_s30 + $0x6] sm:$0x3] }
0x157c   :  { %v2881_v15 = vadd.f32 1.0, %v10999_v40  ;;  %v3090_v40 = vld [vmem:[%s13147_s30 + $0x8] sm:$0x3] }
0x157d   :  { %11000 = vrcp.f32 %v2846_v5 }
0x157e   :  { %2893 = vrot.lane.b32.xlu0 %v2892_v49, %s11156_s26  ;;  %11002 = vrcp.f32 %v2881_v15  ;;  %v3091_v15 = vld [vmem:[%s13147_s30 + $0xa] sm:$0x3] }
0x158a   :  { %v11001_v50 = vpop.eup %11000 }
0x158b   :  { %v11003_v20 = vpop.eup %11002 }
0x15e8   :  { %v2864_v17 = vpop.permute.xlu1 %2863 }
0x15e9   :  { %v2866_v18 = vmul.f32 %v11001_v50, %v2864_v17  ;;  %v3092_v17 = vld [vmem:[%s13147_s30 + $0xc] sm:$0x3] }
0x15eb   :  { %2868 = vrot.lane.b32.xlu1 %v2866_v18, %s11156_s26  ;;  %v3093_v18 = vld [vmem:[%s13147_s30 + $0xe] sm:$0x3] }
0x15ec   :  { %v2899_v21 = vpop.permute.xlu0 %2898  ;;  %v2859_v7 = vpop.permute.xlu1 %2858 }
0x15ed   :  { %v2901_v3 = vmul.f32 %v11003_v20, %v2899_v21  ;;  %v2861_v25 = vmul.f32 %v11001_v50, %v2859_v7 }
0x15ef   :  { %2903 = vrot.lane.b32.xlu0 %v2901_v3, %s11156_s26  ;;  %v3131_v3 = vcombine.low %v3092_v17, %v3093_v18 }
0x15f0   :  { %v2894_v27 = vpop.permute.xlu0 %2893 }
0x15f1   :  { %v2896_v36 = vmul.f32 %v11003_v20, %v2894_v27  ;;  %v3094_v27 = vld [vmem:[%s13114_s18] sm:$0xff] }
0x15f2   :  { %10704 = vmatprep.subr.mxu1 %v3094_v27 }
0x15f3   :  { %10705 = vmatpush3.msra.mxu1 %v3094_v27 }
0x15f4   :  { %10709 = vmatprep.subr.mxu1 %v13127_v1 }
0x165d   :  { %v2869_v33 = vpop.permute.xlu1 %2868 }
0x165e   :  { %v2871_v35 = vadd.f32 %v2869_v33, %v2861_v25  ;;  %v3145_v33 = vrot.slane %v3131_v3, %v11351_v22 }
0x1660   :  { %11004 = vtanh.f32 %v2871_v35 }
0x1661   :  { %v2904_v16 = vpop.permute.xlu0 %2903 }
0x1662   :  { %v2906_v37 = vadd.f32 %v2904_v16, %v2896_v36  ;;  %v12065_v16 = vld [vmem:[%s13115_s19 + $0x18] sm:$0xff] }
0x1664   :  { %11006 = vtanh.f32 %v2906_v37  ;;  %v12071_v37 = vld [vmem:[%s13115_s19 + $0x10] sm:$0xff] }
0x166d   :  { %v11005_v19 = vpop.eup %11004 }
0x166e   :  { %2874 = vrot.lane.b32.xlu1 %v11005_v19, %s11155_s7  ;;  %v12081_v19 = vld [vmem:[%s13115_s19 + $0x8] sm:$0xff] }
0x1671   :  { %v11007_v39 = vpop.eup %11006 }
0x1672   :  { %2909 = vrot.lane.b32.xlu0 %v11007_v39, %s11155_s7  ;;  %2915 = vperm.xlu1 %10879, %v10237_v38   ;;  %v12090_v38 = vld [vmem:[%s13115_s19] sm:$0xff] }
0x1673   :  { %v10242_v39 = vld [vmem:[%s13112_s16] ss:$0 sm:$0xff] }
0x1676   :  { %2934 = vperm.xlu0 %10878, %v2689_v43   ;;  %2953 = vperm.xlu1 %10879, %v2950_v41  }
0x167a   :  { %2961 = vperm.xlu0 %10878, %v2958_v44  }
0x16e0   :  { %v2875_v0 = vpop.permute.xlu1 %2874 }
0x16e1   :  { %v2877_v31 = vmul.f32 %v11001_v50, %v2875_v0  ;;  %v3114_v50 = vcombine.low %v3088_v12, %v3089_v13 }
0x16e3   :  { %v2925_v56 = vrot.slane %v2877_v31, %v11351_v22  ;;  %v3128_v7 = vrot.slane %v3114_v50, %v11351_v22 }
0x16e4   :  { %v2910_v62 = vpop.permute.xlu0 %2909 }
0x16e5   :  { %v2912_v34 = vmul.f32 %v11003_v20, %v2910_v62  ;;  %2926 = vrot.lane.b32.xlu1 %v2925_v56, %s11156_s26  ;;  %v3130_v20 = vcombine.low %v3090_v40, %v3091_v15 }
0x16e7   :  { %v2944_v2 = vrot.slane %v2912_v34, %v11351_v22  ;;  %v3138_v25 = vrot.slane %v3130_v20, %v11351_v22 }
0x16e9   :  { %2945 = vrot.lane.b32.xlu0 %v2944_v2, %s11156_s26  ;;  %2992 = vrot.lane.b32.xlu1 %v334_v63, %s11156_s26  ;;  %v3146_v36 = vcombine.low %v3138_v25, %v3145_v33 }
0x16ed   :  { %v2916_v4 = vpop.permute.xlu1 %2915 }
0x16f1   :  { %v2935_v6 = vpop.permute.xlu0 %2934  ;;  %v2954_v47 = vpop.permute.xlu1 %2953 }
0x16f2   :  { %v2956_v26 = vmul.f32 %v2954_v47, %v11942_v60  ;;  %v3086_v60 = vld [vmem:[%s13147_s30] sm:$0x3] }
0x16f5   :  { %v2962_v51 = vpop.permute.xlu0 %2961 }
0x16f6   :  { %v2964_v8 = vmul.f32 %v2962_v51, %v11950_v57  ;;  %v3087_v57 = vld [vmem:[%s13147_s30 + $0x2] sm:$0x3] }
0x16f7   :  { %v3113_v5 = vcombine.low %v3086_v60, %v3087_v57 }
0x16f9   :  { %v3121_v21 = vrot.slane %v3113_v5, %v11351_v22 }
0x16fb   :  { %v3129_v35 = vcombine.low %v3121_v21, %v3128_v7 }
0x16fd   :  { %10706 = vmatprep.mubr.msk.f32.mxu1 %vm178_vm3, %v3129_v35 }
0x16fe   :  { %10707 = vmatmul.mubr.msk.f32.vlgmr.msra.gmra.mxu1 %vm178_vm3, %v3146_v36 }
0x16ff   :  { %10710 = vmatpush3.msra.mxu1 %v12065_v16  ;;  %10717 = vmatprep.mubr.msk.f32.mxu1 %vm11153_vm2, %v13127_v1 }
0x1700   :  { %10711 = vmatprep.subr.mxu1 %v13127_v1 }
0x1701   :  { %10712 = vmatpush3.msra.mxu1 %v12071_v37 }
0x1702   :  { %10713 = vmatprep.subr.mxu1 %v13127_v1 }
0x1703   :  { %10714 = vmatpush3.msra.mxu1 %v12081_v19 }
0x1704   :  { %10715 = vmatprep.subr.mxu1 %v13127_v1 }
0x1705   :  { %10716 = vmatpush3.msra.mxu1 %v12090_v38 }
0x1706   :  { %10731 = vmatprep.subr.mxu1 %v13127_v1 }
0x1757   :  { %v2927_v24 = vpop.permute.xlu1 %2926 }
0x1758   :  { %v2929_v55 = vmul.f32 %v2927_v24, %v2916_v4 }
0x175a   :  { %2931 = vst.msk [vmem:[#allocation2 + $0xe] sm:$0x3] %vm771_vm4, %v2929_v55  ;;  %v2957_v42 = vadd.f32 %v2956_v26, %v2929_v55 }
0x175b   :  { %v2946_v48 = vpop.permute.xlu0 %2945  ;;  %v2993_v49 = vpop.permute.xlu1 %2992 }
0x175c   :  { %v2948_v9 = vmul.f32 %v2946_v48, %v2935_v6 }
0x175e   :  { %2949 = vst.msk [vmem:[#allocation3] sm:$0x3] %vm771_vm4, %v2948_v9  ;;  %v2965_v10 = vadd.f32 %v2964_v8, %v2948_v9 }
0x1760   :  { %v2990_v45 = vadd.f32 %v2965_v10, %v2957_v42 }
0x1762   :  { %v2995_v61 = vsel %vm178_vm3, %v2990_v45, %v2993_v49 }
0x1763   :  { %10696 = vmatmul.mubr.msk.f32.vlgmr.msra.gmra.mxu0 %vm3011_vm5, %v2995_v61 }
0x1764   :  { %10728 = vmatprep.mubr.msk.f32.mxu0 %vm11153_vm2, %v13127_v1  ;;  %10721 = vmatpush3.msra.mxu0 %v12065_v16 }
0x1765   :  { %10722 = vmatprep.subr.mxu0 %v13127_v1 }
0x1766   :  { %10723 = vmatpush3.msra.mxu0 %v12071_v37 }
0x1767   :  { %10724 = vmatprep.subr.mxu0 %v13127_v1 }
0x1768   :  { %10725 = vmatpush3.msra.mxu0 %v12081_v19 }
0x1769   :  { %10726 = vmatprep.subr.mxu0 %v13127_v1 }
0x176a   :  { %10727 = vmatpush3.msra.mxu0 %v12090_v38 }
0x176b   :  { %10742 = vmatprep.subr.mxu0 %v13127_v1 }
0x17be   :  { %v10708_v53 = vpop.f32.mrf.mxu1 }
0x17bf   :  { %v3223_v54 = vadd.f32 %v10708_v53, %v10244_v52 }
0x17c0   :  { %v3217_v58 = vpop.f32.mrf.mxu1 }
0x17c1   :  { %v3245_v28 = vcombine.high %v3223_v54, %v3223_v54  ;;  %v3252_v11 = vrot.slane %v3223_v54, %v11351_v22  ;;  %10249 = vst.sshfl [vmem:[#allocation6 + $0x8] sm:$0x3 pattern:$0x76325410] %v3223_v54  ;;  %v3218_v0 = vadd.f32 %v10244_v52, %v3217_v58 }
0x17c3   :  { %v3259_v31 = vrot.slane %v3245_v28, %v11351_v22  ;;  %v3260_v32 = vcombine.high %v3252_v11, %v3252_v11  ;;  %10250 = vst.sshfl [vmem:[#allocation6 + $0xc] sm:$0x3 pattern:$0x76325410] %v3245_v28  ;;  %v3228_v56 = vcombine.high %v3218_v0, %v3218_v0  ;;  %v3235_v46 = vrot.slane %v3218_v0, %v11351_v22 }
0x17c4   :  { %10247 = vst.sshfl [vmem:[#allocation6] sm:$0x3 pattern:$0x76325410] %v3218_v0 }
0x17c5   :  { %v3261_v30 = vcombine.high %v3259_v31, %v3259_v31  ;;  %3275 = vst [vmem:[#allocation6 + $0xa] sm:$0x3] %v3260_v32  ;;  %v3242_v59 = vrot.slane %v3228_v56, %v11351_v22  ;;  %v3243_v62 = vcombine.high %v3235_v46, %v3235_v46  ;;  %10248 = vst.sshfl [vmem:[#allocation6 + $0x4] sm:$0x3 pattern:$0x76325410] %v3228_v56 }
0x17c7   :  { %3277 = vst [vmem:[#allocation6 + $0xe] sm:$0x3] %v3261_v30  ;;  %v3244_v34 = vcombine.high %v3242_v59, %v3242_v59  ;;  %3271 = vst [vmem:[#allocation6 + $0x2] sm:$0x3] %v3243_v62 }
0x17c9   :  { %3273 = vst [vmem:[#allocation6 + $0x6] sm:$0x3] %v3244_v34 }
0x17cb   :  { %v3282_v23 = vld [vmem:[#allocation6] sm:$0x3] }
0x17ce   :  { %v3390_v57 = vld [vmem:[#allocation6 + $0x2] sm:$0x3] }
0x17d0   :  { %v3600_v62 = vld [vmem:[#allocation6 + $0x6] sm:$0x3] }
0x1823   :  { %v3081_v41 = vpop.f32.mrf.mxu0 }
0x1824   :  { %v3082_v43 = vadd.f32 %v10242_v39, %v3081_v41  ;;  %v3495_v39 = vld [vmem:[#allocation6 + $0x4] sm:$0x3] }
0x1825   :  { %v10697_v44 = vpop.f32.mrf.mxu0 }
0x1826   :  { %11008 = vtanh.f32 %v3082_v43 }
0x1833   :  { %v11009_v29 = vpop.eup %11008 }
0x1834   :  { %3364 = vrot.lane.b32.xlu1 %v11009_v29, %s11156_s26  ;;  %10718 = vmatmul.mubr.msk.f32.vlgmr.msra.gmra.mxu1 %vm178_vm3, %v11009_v29 }
0x1835   :  { %10732 = vmatpush3.msra.mxu1 %v12065_v16  ;;  %10739 = vmatprep.mubr.msk.f32.mxu1 %vm11153_vm2, %v13127_v1 }
0x1836   :  { %10733 = vmatprep.subr.mxu1 %v13127_v1 }
0x1837   :  { %10734 = vmatpush3.msra.mxu1 %v12071_v37 }
0x1838   :  { %10735 = vmatprep.subr.mxu1 %v13127_v1 }
0x1839   :  { %10736 = vmatpush3.msra.mxu1 %v12081_v19 }
0x183a   :  { %10737 = vmatprep.subr.mxu1 %v13127_v1 }
0x183b   :  { %10738 = vmatpush3.msra.mxu1 %v12090_v38 }
0x183c   :  { %10753 = vmatprep.subr.mxu1 %v13127_v1 }
0x18a6   :  { %v3365_v8 = vpop.permute.xlu1 %3364 }
0x18f4   :  { %v3352_v63 = vpop.f32.mrf.mxu1 }
0x18f5   :  { %v3356_v2 = vadd.f32 %v3352_v63, %v3282_v23 }
0x18f6   :  { %v10719_v4 = vpop.f32.mrf.mxu1 }
0x18f7   :  { %11010 = vtanh.f32 %v3356_v2  ;;  %v10252_v47 = vmul.f32 -1.442695, %v3356_v2 }
0x18f9   :  { %11012 = vpow2.f32 %v10252_v47 }
0x1904   :  { %v11011_v6 = vpop.eup %11010 }
0x1905   :  { %3369 = vrot.lane.b32.xlu0 %v11011_v6, %s11155_s7 }
0x1906   :  { %v11013_v51 = vpop.eup %11012 }
0x1907   :  { %v3360_v24 = vadd.f32 1.0, %v11013_v51 }
0x1909   :  { %11014 = vrcp.f32 %v3360_v24 }
0x1916   :  { %v11015_v55 = vpop.eup %11014 }
0x1917   :  { %v3367_v9 = vmul.f32 %v11015_v55, %v3365_v8 }
0x1977   :  { %v3370_v48 = vpop.permute.xlu0 %3369 }
0x1978   :  { %v3372_v26 = vmul.f32 %v11015_v55, %v3370_v48 }
0x197a   :  { %3374 = vrot.lane.b32.xlu0 %v3372_v26, %s11156_s26 }
0x19ec   :  { %v3375_v42 = vpop.permute.xlu0 %3374 }
0x19ed   :  { %v3377_v10 = vadd.f32 %v3375_v42, %v3367_v9 }
0x19ef   :  { %11016 = vtanh.f32 %v3377_v10 }
0x19fc   :  { %v11017_v45 = vpop.eup %11016 }
0x19fd   :  { %3380 = vrot.lane.b32.xlu1 %v11017_v45, %s11155_s7 }
0x1a6f   :  { %v3381_v49 = vpop.permute.xlu1 %3380 }
0x1a70   :  { %v3383_v61 = vmul.f32 %v11015_v55, %v3381_v49  ;;  %v3705_v49 = vld [vmem:[#allocation6 + $0x8] sm:$0x3] }
0x1a72   :  { %3385 = vrot.lane.b32.xlu0 %v3383_v61, %s11156_s26 }
0x1ae4   :  { %v3386_v60 = vpop.permute.xlu0 %3385 }
0x1ae5   :  { %3388 = vst.msk [vmem:[#allocation5] sm:$0x3] %vm771_vm4, %v3386_v60  ;;  %10729 = vmatmul.mubr.msk.f32.vlgmr.msra.gmra.mxu0 %vm178_vm3, %v3386_v60 }
0x1ae6   :  { %10743 = vmatpush3.msra.mxu0 %v12065_v16  ;;  %10750 = vmatprep.mubr.msk.f32.mxu0 %vm11153_vm2, %v13127_v1 }
0x1ae7   :  { %10744 = vmatprep.subr.mxu0 %v13127_v1 }
0x1ae8   :  { %10745 = vmatpush3.msra.mxu0 %v12071_v37 }
0x1ae9   :  { %10746 = vmatprep.subr.mxu0 %v13127_v1 }
0x1aea   :  { %10747 = vmatpush3.msra.mxu0 %v12081_v19 }
0x1aeb   :  { %10748 = vmatprep.subr.mxu0 %v13127_v1 }
0x1aec   :  { %10749 = vmatpush3.msra.mxu0 %v12090_v38 }
0x1aed   :  { %10764 = vmatprep.subr.mxu0 %v13127_v1 }
0x1ba5   :  { %v3459_v12 = vpop.f32.mrf.mxu0 }
0x1ba6   :  { %v3463_v13 = vadd.f32 %v3459_v12, %v3390_v57 }
0x1ba7   :  { %v10730_v5 = vpop.f32.mrf.mxu0 }
0x1ba8   :  { %11018 = vtanh.f32 %v3463_v13  ;;  %v10254_v15 = vmul.f32 -1.442695, %v3463_v13 }
0x1baa   :  { %11020 = vpow2.f32 %v10254_v15 }
0x1bb5   :  { %v11019_v40 = vpop.eup %11018 }
0x1bb6   :  { %3473 = vrot.lane.b32.xlu1 %v11019_v40, %s11155_s7 }
0x1bb7   :  { %v11021_v50 = vpop.eup %11020 }
0x1bb8   :  { %v3467_v17 = vadd.f32 1.0, %v11021_v50 }
0x1bba   :  { %11022 = vrcp.f32 %v3467_v17 }
0x1bc7   :  { %v11023_v18 = vpop.eup %11022 }
0x1bc8   :  { %v3471_v3 = vmul.f32 %v11023_v18, %v3377_v10 }
0x1c28   :  { %v3474_v20 = vpop.permute.xlu1 %3473 }
0x1c29   :  { %v3476_v21 = vmul.f32 %v11023_v18, %v3474_v20 }
0x1c2b   :  { %3478 = vrot.lane.b32.xlu0 %v3476_v21, %s11156_s26 }
0x1c9d   :  { %v3479_v7 = vpop.permute.xlu0 %3478 }
0x1c9e   :  { %v3481_v25 = vadd.f32 %v3479_v7, %v3471_v3 }
0x1ca0   :  { %11024 = vtanh.f32 %v3481_v25 }
0x1cad   :  { %v11025_v27 = vpop.eup %11024 }
0x1cae   :  { %3484 = vrot.lane.b32.xlu1 %v11025_v27, %s11155_s7 }
0x1d20   :  { %v3485_v33 = vpop.permute.xlu1 %3484 }
0x1d21   :  { %v3487_v35 = vmul.f32 %v11023_v18, %v3485_v33  ;;  %v3810_v33 = vld [vmem:[#allocation6 + $0xa] sm:$0x3] }
0x1d23   :  { %3489 = vrot.lane.b32.xlu0 %v3487_v35, %s11156_s26 }
0x1d95   :  { %v3490_v36 = vpop.permute.xlu0 %3489 }
0x1d96   :  { %3493 = vst.msk [vmem:[#allocation5 + $0x2] sm:$0x3] %vm771_vm4, %v3490_v36  ;;  %10740 = vmatmul.mubr.msk.f32.vlgmr.msra.gmra.mxu1 %vm178_vm3, %v3490_v36 }
0x1d97   :  { %10754 = vmatpush3.msra.mxu1 %v12065_v16  ;;  %10761 = vmatprep.mubr.msk.f32.mxu1 %vm11153_vm2, %v13127_v1 }
0x1d98   :  { %10755 = vmatprep.subr.mxu1 %v13127_v1 }
0x1d99   :  { %10756 = vmatpush3.msra.mxu1 %v12071_v37 }
0x1d9a   :  { %10757 = vmatprep.subr.mxu1 %v13127_v1 }
0x1d9b   :  { %10758 = vmatpush3.msra.mxu1 %v12081_v19 }
0x1d9c   :  { %10759 = vmatprep.subr.mxu1 %v13127_v1 }
0x1d9d   :  { %10760 = vmatpush3.msra.mxu1 %v12090_v38 }
0x1d9e   :  { %10775 = vmatprep.subr.mxu1 %v13127_v1 }
0x1e56   :  { %v3564_v41 = vpop.f32.mrf.mxu1 }
0x1e57   :  { %v3568_v43 = vadd.f32 %v3564_v41, %v3495_v39 }
0x1e58   :  { %v10741_v44 = vpop.f32.mrf.mxu1 }
0x1e59   :  { %11026 = vtanh.f32 %v3568_v43  ;;  %v10256_v52 = vmul.f32 -1.442695, %v3568_v43 }
0x1e5b   :  { %11028 = vpow2.f32 %v10256_v52 }
0x1e66   :  { %v11027_v29 = vpop.eup %11026 }
0x1e67   :  { %3578 = vrot.lane.b32.xlu1 %v11027_v29, %s11155_s7 }
0x1e68   :  { %v11029_v53 = vpop.eup %11028 }
0x1e69   :  { %v3572_v54 = vadd.f32 1.0, %v11029_v53 }
0x1e6b   :  { %11030 = vrcp.f32 %v3572_v54  ;;  %v4135_v54 = vld [vmem:[%s13113_s17 + $0x18] sm:$0xff] }
0x1e78   :  { %v11031_v58 = vpop.eup %11030 }
0x1e79   :  { %v3576_v0 = vmul.f32 %v11031_v58, %v3481_v25 }
0x1ed9   :  { %v3579_v28 = vpop.permute.xlu1 %3578 }
0x1eda   :  { %v3581_v11 = vmul.f32 %v11031_v58, %v3579_v28 }
0x1edc   :  { %3583 = vrot.lane.b32.xlu0 %v3581_v11, %s11156_s26 }
0x1f4e   :  { %v3584_v31 = vpop.permute.xlu0 %3583 }
0x1f4f   :  { %v3586_v32 = vadd.f32 %v3584_v31, %v3576_v0  ;;  %v2974_v0 = vld [vmem:[#allocation3] sm:$0x3]  ;;  %v2966_v31 = vld [vmem:[#allocation2] sm:$0x3] }
0x1f51   :  { %11032 = vtanh.f32 %v3586_v32 }
0x1f5e   :  { %v11033_v56 = vpop.eup %11032 }
0x1f5f   :  { %3589 = vrot.lane.b32.xlu1 %v11033_v56, %s11155_s7  ;;  %v2976_v56 = vld [vmem:[#allocation3 + $0x4] sm:$0x3] }
0x1fd1   :  { %v3590_v46 = vpop.permute.xlu1 %3589 }
0x1fd2   :  { %v3592_v30 = vmul.f32 %v11031_v58, %v3590_v46  ;;  %v12212_v46 = vadd.f32 %v2974_v0, %v2966_v31 }
0x1fd4   :  { %3594 = vrot.lane.b32.xlu0 %v3592_v30, %s11156_s26  ;;  %v2967_v30 = vld [vmem:[#allocation2 + $0x2] sm:$0x3] }
0x2046   :  { %v3595_v59 = vpop.permute.xlu0 %3594 }
0x2047   :  { %3598 = vst.msk [vmem:[#allocation5 + $0x4] sm:$0x3] %vm771_vm4, %v3595_v59  ;;  %10751 = vmatmul.mubr.msk.f32.vlgmr.msra.gmra.mxu0 %vm178_vm3, %v3595_v59  ;;  %v2968_v59 = vld [vmem:[#allocation2 + $0x4] sm:$0x3] }
0x2048   :  { %10765 = vmatpush3.msra.mxu0 %v12065_v16  ;;  %10772 = vmatprep.mubr.msk.f32.mxu0 %vm11153_vm2, %v13127_v1 }
0x2049   :  { %10766 = vmatprep.subr.mxu0 %v13127_v1 }
0x204a   :  { %10767 = vmatpush3.msra.mxu0 %v12071_v37 }
0x204b   :  { %10768 = vmatprep.subr.mxu0 %v13127_v1 }
0x204c   :  { %10769 = vmatpush3.msra.mxu0 %v12081_v19 }
0x204d   :  { %10770 = vmatprep.subr.mxu0 %v13127_v1 }
0x204e   :  { %10771 = vmatpush3.msra.mxu0 %v12090_v38 }
0x204f   :  { %10786 = vmatprep.subr.mxu0 %v13127_v1 }
0x2107   :  { %v3669_v34 = vpop.f32.mrf.mxu0 }
0x2108   :  { %v3673_v23 = vadd.f32 %v3669_v34, %v3600_v62  ;;  %v2977_v62 = vld [vmem:[#allocation3 + $0x6] sm:$0x3] }
0x2109   :  { %v10752_v63 = vpop.f32.mrf.mxu0 }
0x210a   :  { %11034 = vtanh.f32 %v3673_v23  ;;  %v10258_v4 = vmul.f32 -1.442695, %v3673_v23  ;;  %v12216_v23 = vadd.f32 %v2976_v56, %v2968_v59  ;;  %v2969_v63 = vld [vmem:[#allocation2 + $0x6] sm:$0x3] }
0x210c   :  { %11036 = vpow2.f32 %v10258_v4 }
0x2117   :  { %v11035_v2 = vpop.eup %11034 }
0x2118   :  { %3683 = vrot.lane.b32.xlu1 %v11035_v2, %s11155_s7  ;;  %v12218_v2 = vadd.f32 %v2977_v62, %v2969_v63  ;;  %v4125_v62 = vld [vmem:[#allocation5 + $0x2] sm:$0x3] }
0x2119   :  { %v11037_v6 = vpop.eup %11036 }
0x211a   :  { %v3677_v47 = vadd.f32 1.0, %v11037_v6  ;;  %v2973_v6 = vld [vmem:[#allocation2 + $0xe] sm:$0x3] }
0x211c   :  { %11038 = vrcp.f32 %v3677_v47  ;;  %v4145_v47 = vcombine.low %v12216_v23, %v12218_v2 }
0x2129   :  { %v11039_v51 = vpop.eup %11038 }
0x212a   :  { %v3681_v48 = vmul.f32 %v11039_v51, %v3586_v32  ;;  %v2975_v32 = vld [vmem:[#allocation3 + $0x2] sm:$0x3] }
0x212b   :  { %v12214_v34 = vadd.f32 %v2975_v32, %v2967_v30 }
0x212d   :  { %v4144_v4 = vcombine.low %v12212_v46, %v12214_v34 }
0x218a   :  { %v3684_v24 = vpop.permute.xlu1 %3683 }
0x218b   :  { %v3686_v55 = vmul.f32 %v11039_v51, %v3684_v24  ;;  %v2972_v24 = vld [vmem:[#allocation2 + $0xc] sm:$0x3] }
0x218d   :  { %3688 = vrot.lane.b32.xlu0 %v3686_v55, %s11156_s26  ;;  %v2981_v55 = vld [vmem:[#allocation3 + $0xe] sm:$0x3] }
0x21ff   :  { %v3689_v26 = vpop.permute.xlu0 %3688 }
0x2200   :  { %v3691_v8 = vadd.f32 %v3689_v26, %v3681_v48  ;;  %v12224_v48 = vadd.f32 %v2981_v55, %v2973_v6  ;;  %v4152_v26 = vrot.slane %v4144_v4, %v11351_v22 }
0x2202   :  { %11040 = vtanh.f32 %v3691_v8 }
0x220f   :  { %v11041_v9 = vpop.eup %11040 }
0x2210   :  { %3694 = vrot.lane.b32.xlu1 %v11041_v9, %s11155_s7  ;;  %v2979_v9 = vld [vmem:[#allocation3 + $0xa] sm:$0x3] }
0x2282   :  { %v3695_v42 = vpop.permute.xlu1 %3694 }
0x2283   :  { %v3697_v10 = vmul.f32 %v11039_v51, %v3695_v42  ;;  %v2971_v51 = vld [vmem:[#allocation2 + $0xa] sm:$0x3]  ;;  %v2980_v42 = vld [vmem:[#allocation3 + $0xc] sm:$0x3] }
0x2285   :  { %3699 = vrot.lane.b32.xlu0 %v3697_v10, %s11156_s26  ;;  %v12227_v10 = vadd.f32 %v2979_v9, %v2971_v51  ;;  %v4124_v51 = vld [vmem:[#allocation5] sm:$0x3]  ;;  %v4126_v9 = vld [vmem:[#allocation5 + $0x4] sm:$0x3] }
0x22f7   :  { %v3700_v45 = vpop.permute.xlu0 %3699 }
0x22f8   :  { %3703 = vst.msk [vmem:[#allocation5 + $0x6] sm:$0x3] %vm771_vm4, %v3700_v45  ;;  %10762 = vmatmul.mubr.msk.f32.vlgmr.msra.gmra.mxu1 %vm178_vm3, %v3700_v45  ;;  %v12229_v45 = vadd.f32 %v2980_v42, %v2972_v24 }
0x22f9   :  { %10776 = vmatpush3.msra.mxu1 %v12065_v16  ;;  %10783 = vmatprep.mubr.msk.f32.mxu1 %vm11153_vm2, %v13127_v1 }
0x22fa   :  { %10777 = vmatprep.subr.mxu1 %v13127_v1 }
0x22fb   :  { %10778 = vmatpush3.msra.mxu1 %v12071_v37 }
0x22fc   :  { %10779 = vmatprep.subr.mxu1 %v13127_v1 }
0x22fd   :  { %10780 = vmatpush3.msra.mxu1 %v12081_v19 }
0x22fe   :  { %10781 = vmatprep.subr.mxu1 %v13127_v1 }
0x22ff   :  { %10782 = vmatpush3.msra.mxu1 %v12090_v38  ;;  %v4127_v24 = vld [vmem:[#allocation5 + $0x6] sm:$0x3] }
0x2300   :  { %10797 = vmatprep.subr.mxu1 %v4135_v54 }
0x23b8   :  { %v3774_v61 = vpop.f32.mrf.mxu1 }
0x23b9   :  { %v3778_v60 = vadd.f32 %v3774_v61, %v3705_v49  ;;  %v4159_v49 = vrot.slane %v4145_v47, %v11351_v22  ;;  %v2978_v61 = vld [vmem:[#allocation3 + $0x8] sm:$0x3] }
0x23ba   :  { %v10763_v57 = vpop.f32.mrf.mxu1 }
0x23bb   :  { %11042 = vtanh.f32 %v3778_v60  ;;  %v10260_v13 = vmul.f32 -1.442695, %v3778_v60  ;;  %v4162_v57 = vcombine.low %v12229_v45, %v12224_v48 }
0x23bd   :  { %11044 = vpow2.f32 %v10260_v13  ;;  %v4134_v13 = vld [vmem:[%s13113_s17 + $0x10] sm:$0xff] }
0x23c8   :  { %v11043_v12 = vpop.eup %11042 }
0x23c9   :  { %3788 = vrot.lane.b32.xlu1 %v11043_v12, %s11155_s7 }
0x23ca   :  { %v11045_v5 = vpop.eup %11044 }
0x23cb   :  { %v3782_v40 = vadd.f32 1.0, %v11045_v5  ;;  %v4160_v5 = vcombine.low %v4152_v26, %v4159_v49 }
0x23cd   :  { %11046 = vrcp.f32 %v3782_v40 }
0x23da   :  { %v11047_v15 = vpop.eup %11046 }
0x23db   :  { %v3786_v18 = vmul.f32 %v11047_v15, %v3691_v8  ;;  %v2970_v8 = vld [vmem:[#allocation2 + $0x8] sm:$0x3] }
0x23dc   :  { %v12232_v60 = vadd.f32 %v2978_v61, %v2970_v8 }
0x23de   :  { %v4161_v40 = vcombine.low %v12232_v60, %v12227_v10 }
0x243b   :  { %v3789_v50 = vpop.permute.xlu1 %3788 }
0x243c   :  { %v3791_v17 = vmul.f32 %v11047_v15, %v3789_v50  ;;  %v4176_v50 = vrot.slane %v4162_v57, %v11351_v22 }
0x243e   :  { %3793 = vrot.lane.b32.xlu0 %v3791_v17, %s11156_s26  ;;  %v4132_v17 = vld [vmem:[%s13113_s17] sm:$0xff] }
0x24b0   :  { %v3794_v20 = vpop.permute.xlu0 %3793 }
0x24b1   :  { %v3796_v21 = vadd.f32 %v3794_v20, %v3786_v18  ;;  %v4169_v18 = vrot.slane %v4161_v40, %v11351_v22 }
0x24b3   :  { %11048 = vtanh.f32 %v3796_v21  ;;  %v4177_v20 = vcombine.low %v4169_v18, %v4176_v50 }
0x24c0   :  { %v11049_v3 = vpop.eup %11048 }
0x24c1   :  { %3799 = vrot.lane.b32.xlu1 %v11049_v3, %s11155_s7 }
0x2533   :  { %v3800_v7 = vpop.permute.xlu1 %3799 }
0x2534   :  { %v3802_v25 = vmul.f32 %v11047_v15, %v3800_v7  ;;  %v4133_v15 = vld [vmem:[%s13113_s17 + $0x8] sm:$0xff] }
0x2536   :  { %3804 = vrot.lane.b32.xlu0 %v3802_v25, %s11156_s26 }
0x25a8   :  { %v3805_v27 = vpop.permute.xlu0 %3804 }
0x25a9   :  { %3808 = vst.msk [vmem:[#allocation5 + $0x8] sm:$0x3] %vm771_vm4, %v3805_v27  ;;  %10773 = vmatmul.mubr.msk.f32.vlgmr.msra.gmra.mxu0 %vm178_vm3, %v3805_v27 }
0x25aa   :  { %10787 = vmatpush3.msra.mxu0 %v12065_v16  ;;  %10794 = vmatprep.mubr.msk.f32.mxu0 %vm11153_vm2, %v13127_v1 }
0x25ab   :  { %10788 = vmatprep.subr.mxu0 %v13127_v1 }
0x25ac   :  { %10789 = vmatpush3.msra.mxu0 %v12071_v37 }
0x25ad   :  { %10790 = vmatprep.subr.mxu0 %v13127_v1 }
0x25ae   :  { %10791 = vmatpush3.msra.mxu0 %v12081_v19 }
0x25af   :  { %10792 = vmatprep.subr.mxu0 %v13127_v1 }
0x25b0   :  { %10793 = vmatpush3.msra.mxu0 %v12090_v38  ;;  %v4128_v42 = vld [vmem:[#allocation5 + $0x8] sm:$0x3] }
0x25b1   :  { %10808 = vmatprep.subr.mxu0 %v13127_v1 }
0x2669   :  { %v3879_v35 = vpop.f32.mrf.mxu0 }
0x266a   :  { %v3883_v16 = vadd.f32 %v3879_v35, %v3810_v33 }
0x266b   :  { %v10774_v36 = vpop.f32.mrf.mxu0 }
0x266c   :  { %11050 = vtanh.f32 %v3883_v16  ;;  %v10262_v41 = vmul.f32 -1.442695, %v3883_v16 }
0x266e   :  { %11052 = vpow2.f32 %v10262_v41 }
0x2679   :  { %v11051_v39 = vpop.eup %11050 }
0x267a   :  { %3893 = vrot.lane.b32.xlu1 %v11051_v39, %s11155_s7 }
0x267b   :  { %v11053_v37 = vpop.eup %11052 }
0x267c   :  { %v3887_v43 = vadd.f32 1.0, %v11053_v37 }
0x267e   :  { %11054 = vrcp.f32 %v3887_v43 }
0x268b   :  { %v11055_v19 = vpop.eup %11054 }
0x268c   :  { %v3891_v38 = vmul.f32 %v11055_v19, %v3796_v21  ;;  %v3915_v21 = vld [vmem:[#allocation6 + $0xc] sm:$0x3] }
0x26ec   :  { %v3894_v44 = vpop.permute.xlu1 %3893 }
0x26ed   :  { %v3896_v29 = vmul.f32 %v11055_v19, %v3894_v44 }
0x26ef   :  { %3898 = vrot.lane.b32.xlu0 %v3896_v29, %s11156_s26 }
0x2761   :  { %v3899_v52 = vpop.permute.xlu0 %3898 }
0x2762   :  { %v12204_v53 = vadd.f32 %v3899_v52, %v3891_v38 }
0x2764   :  { %11056 = vtanh.f32 %v12204_v53 }
0x2771   :  { %v11057_v58 = vpop.eup %11056 }
0x2772   :  { %3904 = vrot.lane.b32.xlu1 %v11057_v58, %s11155_s7 }
0x27e4   :  { %v3905_v28 = vpop.permute.xlu1 %3904 }
0x27e5   :  { %v3907_v11 = vmul.f32 %v11055_v19, %v3905_v28 }
0x27e7   :  { %3909 = vrot.lane.b32.xlu0 %v3907_v11, %s11156_s26 }
0x2859   :  { %v3910_v12 = vpop.permute.xlu0 %3909 }
0x285a   :  { %3913 = vst.msk [vmem:[#allocation5 + $0xa] sm:$0x3] %vm771_vm4, %v3910_v12  ;;  %10784 = vmatmul.mubr.msk.f32.vlgmr.msra.gmra.mxu1 %vm178_vm3, %v3910_v12 }
0x285b   :  { %10798 = vmatpush3.msra.mxu1 %v4135_v54  ;;  %10805 = vmatprep.mubr.msk.f32.mxu1 %vm178_vm3, %v4160_v5  ;;  %v4020_v54 = vld [vmem:[#allocation6 + $0xe] sm:$0x3] }
0x285c   :  { %10799 = vmatprep.subr.mxu1 %v4134_v13 }
0x285d   :  { %10800 = vmatpush3.msra.mxu1 %v4134_v13 }
0x285e   :  { %10801 = vmatprep.subr.mxu1 %v4133_v15 }
0x285f   :  { %10802 = vmatpush3.msra.mxu1 %v4133_v15 }
0x2860   :  { %10803 = vmatprep.subr.mxu1 %v4132_v17 }
0x2861   :  { %10804 = vmatpush3.msra.mxu1 %v4132_v17  ;;  %v4129_v55 = vld [vmem:[#allocation5 + $0xa] sm:$0x3] }
0x2862   :  { %10806 = vmatmul.mubr.msk.f32.vlgmr.msra.gmra.mxu1 %vm178_vm3, %v4177_v20  ;;  %10819 = vmatprep.subr.mxu1 %v13127_v1 }
0x2863   :  { %10827 = vmatprep.mubr.msk.f32.mxu1 %vm11153_vm2, %v13127_v1 }
0x291a   :  { %v3984_v3 = vpop.f32.mrf.mxu1 }
0x291b   :  { %v3988_v7 = vadd.f32 %v3984_v3, %v3915_v21 }
0x291c   :  { %v10785_v25 = vpop.f32.mrf.mxu1 }
0x291d   :  { %11058 = vtanh.f32 %v3988_v7  ;;  %v10264_v33 = vmul.f32 -1.442695, %v3988_v7 }
0x291f   :  { %11060 = vpow2.f32 %v10264_v33 }
0x292a   :  { %v11059_v27 = vpop.eup %11058 }
0x292b   :  { %3998 = vrot.lane.b32.xlu1 %v11059_v27, %s11155_s7 }
0x292c   :  { %v11061_v35 = vpop.eup %11060 }
0x292d   :  { %v3992_v16 = vadd.f32 1.0, %v11061_v35 }
0x292f   :  { %11062 = vrcp.f32 %v3992_v16 }
0x293c   :  { %v11063_v36 = vpop.eup %11062 }
0x293d   :  { %v3996_v37 = vmul.f32 %v11063_v36, %v12204_v53 }
0x299d   :  { %v3999_v39 = vpop.permute.xlu1 %3998 }
0x299e   :  { %v4001_v41 = vmul.f32 %v11063_v36, %v3999_v39 }
0x29a0   :  { %4003 = vrot.lane.b32.xlu0 %v4001_v41, %s11156_s26 }
0x2a12   :  { %v4004_v43 = vpop.permute.xlu0 %4003 }
0x2a13   :  { %v4006_v19 = vadd.f32 %v4004_v43, %v3996_v37 }
0x2a15   :  { %11064 = vtanh.f32 %v4006_v19 }
0x2a22   :  { %v11065_v44 = vpop.eup %11064 }
0x2a23   :  { %4009 = vrot.lane.b32.xlu1 %v11065_v44, %s11155_s7 }
0x2a95   :  { %v4010_v29 = vpop.permute.xlu1 %4009 }
0x2a96   :  { %v4012_v38 = vmul.f32 %v11063_v36, %v4010_v29 }
0x2a98   :  { %4014 = vrot.lane.b32.xlu0 %v4012_v38, %s11156_s26 }
0x2b0a   :  { %v4015_v52 = vpop.permute.xlu0 %4014 }
0x2b0b   :  { %4018 = vst.msk [vmem:[#allocation5 + $0xc] sm:$0x3] %vm771_vm4, %v4015_v52  ;;  %10795 = vmatmul.mubr.msk.f32.vlgmr.msra.gmra.mxu0 %vm178_vm3, %v4015_v52  ;;  %v11159_v52 = vmov 1934713408  }
0x2b0c   :  { %10816 = vmatprep.mubr.msk.f32.mxu0 %vm11153_vm2, %v13127_v1 }
0x2b12   :  { %v4130_v49 = vld [vmem:[#allocation5 + $0xc] sm:$0x3] }
0x2bcb   :  { %v4089_v53 = vpop.f32.mrf.mxu0 }
0x2bcc   :  { %v4093_v58 = vadd.f32 %v4089_v53, %v4020_v54  ;;  %v4303_v54 = vunpack.c.l.s4 %v11159_v52 }
0x2bcd   :  { %v10796_v28 = vpop.f32.mrf.mxu0 }
0x2bce   :  { %11066 = vtanh.f32 %v4093_v58  ;;  %v10266_v0 = vmul.f32 -1.442695, %v4093_v58 }
0x2bd0   :  { %11068 = vpow2.f32 %v10266_v0  ;;  %v4304_v0 = vunpack.c.0.s8 %v4303_v54 }
0x2bdb   :  { %v11067_v11 = vpop.eup %11066 }
0x2bdc   :  { %4103 = vrot.lane.b32.xlu1 %v11067_v11, %s11155_s7 }
0x2bdd   :  { %v11069_v31 = vpop.eup %11068 }
0x2bde   :  { %v4097_v32 = vadd.f32 1.0, %v11069_v31 }
0x2be0   :  { %11070 = vrcp.f32 %v4097_v32 }
0x2bed   :  { %v11071_v56 = vpop.eup %11070 }
0x2bee   :  { %v4101_v63 = vmul.f32 %v11071_v56, %v4006_v19 }
0x2c4e   :  { %v4104_v30 = vpop.permute.xlu1 %4103 }
0x2c4f   :  { %v4106_v59 = vmul.f32 %v11071_v56, %v4104_v30 }
0x2c51   :  { %4108 = vrot.lane.b32.xlu0 %v4106_v59, %s11156_s26 }
0x2c6f   :  { %4369 = vxpose.xlu0.b32.start.end [1/1] (short) (narrow) %v4125_v62, 32 }
0x2cc3   :  { %v4109_v4 = vpop.permute.xlu0 %4108 }
0x2cc4   :  { %v4111_v6 = vadd.f32 %v4109_v4, %v4101_v63 }
0x2cc6   :  { %11072 = vtanh.f32 %v4111_v6 }
0x2cd3   :  { %v11073_v47 = vpop.eup %11072 }
0x2cd4   :  { %4114 = vrot.lane.b32.xlu1 %v11073_v47, %s11155_s7  ;;  %v12333_v47 = vsub.s32 %v4304_v0, %v11336_v14 }
0x2ceb   :  { %v12269_v61 = vpop.trf.xlu0 }
0x2cef   :  { %v12271_v57 = vpop.trf.xlu0 }
0x2cf3   :  { %v12273_v12 = vpop.trf.xlu0 }
0x2cf7   :  { %v12275_v13 = vpop.trf.xlu0 }
0x2cfd   :  { %4337 = vxpose.xlu1.b32.start.end [1/1] (short) (narrow) %v4124_v51, 32 }
0x2d0a   :  { %4433 = vxpose.xlu1.b32.start.end [1/1] (short) (narrow) %v4127_v24, 32 }
0x2d17   :  { %4497 = vxpose.xlu1.b32.start.end [1/1] (short) (narrow) %v4129_v55, 32 }
0x2d46   :  { %v4115_v26 = vpop.permute.xlu1 %4114 }
0x2d47   :  { %v4117_v8 = vmul.f32 %v11071_v56, %v4115_v26 }
0x2d49   :  { %4119 = vrot.lane.b32.xlu0 %v4117_v8, %s11156_s26 }
0x2d67   :  { %4401 = vxpose.xlu0.b32.start.end [1/1] (short) (narrow) %v4126_v9, 32 }
0x2d74   :  { %4465 = vxpose.xlu0.b32.start.end [1/1] (short) (narrow) %v4128_v42, 32 }
0x2d79   :  { %v12278_v15 = vpop.trf.xlu1 }
0x2d7d   :  { %v12280_v50 = vpop.trf.xlu1 }
0x2d81   :  { %4529 = vxpose.xlu0.b32.start.end [1/1] (short) (narrow) %v4130_v49, 32  ;;  %v12282_v17 = vpop.trf.xlu1 }
0x2d85   :  { %v12284_v18 = vpop.trf.xlu1 }
0x2d89   :  { %v12288_v21 = vpop.trf.xlu1 }
0x2d8a   :  { %v4609_v53 = vcombine.low %v12269_v61, %v12288_v21 }
0x2d8c   :  { %v4617_v31 = vrot.slane %v4609_v53, %v11351_v22 }
0x2d8d   :  { %v12292_v7 = vpop.trf.xlu1 }
0x2d8e   :  { %v4745_v51 = vcombine.low %v12271_v57, %v12292_v7 }
0x2d90   :  { %v4753_v14 = vrot.slane %v4745_v51, %v11351_v22 }
0x2d91   :  { %v12296_v27 = vpop.trf.xlu1 }
0x2d95   :  { %v12302_v16 = vpop.trf.xlu1 }
0x2d99   :  { %v12304_v36 = vpop.trf.xlu1 }
0x2d9d   :  { %v4514_v41 = vpop.trf.xlu1 }
0x2da1   :  { %v12308_v43 = vpop.trf.xlu1 }
0x2da5   :  { %v12312_v44 = vpop.trf.xlu1 }
0x2dbb   :  { %v4120_v5 = vpop.permute.xlu0 %4119 }
0x2dbc   :  { %4123 = vst.msk [vmem:[#allocation5 + $0xe] sm:$0x3] %vm771_vm4, %v4120_v5 }
0x2dc3   :  { %v4131_v40 = vld [vmem:[#allocation5 + $0xe] sm:$0x3] }
0x2dc4   :  { %4561 = vxpose.xlu1.b32.start.end [1/1] (short) (narrow) %v4131_v40, 32 }
0x2de3   :  { %v12286_v20 = vpop.trf.xlu0 }
0x2de4   :  { %v4593_v29 = vcombine.low %v12278_v15, %v12286_v20 }
0x2de6   :  { %v4601_v58 = vrot.slane %v4593_v29, %v11351_v22 }
0x2de7   :  { %v12290_v3 = vpop.trf.xlu0 }
0x2de8   :  { %v4657_v30 = vcombine.low %v4601_v58, %v4617_v31  ;;  %v4729_v59 = vcombine.low %v12280_v50, %v12290_v3  ;;  %v4658_v8 = vcombine.high %v4601_v58, %v4617_v31  ;;  %v4730_v58 = vcombine.high %v12280_v50, %v12290_v3 }
0x2dea   :  { %v4737_v9 = vrot.slane %v4729_v59, %v11351_v22  ;;  %v4665_v42 = vrot.slane %v4657_v30, %v12333_v47  ;;  %v4744_v50 = vrot.slane %v4730_v58, %v11351_v22 }
0x2deb   :  { %v12294_v25 = vpop.trf.xlu0 }
0x2dec   :  { %v4793_v0 = vcombine.low %v4737_v9, %v4753_v14  ;;  %v4794_v3 = vcombine.high %v4737_v9, %v4753_v14 }
0x2def   :  { %v12298_v33 = vpop.trf.xlu0 }
0x2df3   :  { %v12300_v35 = vpop.trf.xlu0 }
0x2df7   :  { %v4482_v39 = vpop.trf.xlu0 }
0x2dfb   :  { %v12306_v37 = vpop.trf.xlu0 }
0x2dff   :  { %v12310_v19 = vpop.trf.xlu0 }
0x2e03   :  { %v12316_v38 = vpop.trf.xlu0 }
0x2e04   :  { %v4625_v28 = vcombine.low %v12300_v35, %v12316_v38 }
0x2e06   :  { %v4633_v62 = vrot.slane %v4625_v28, %v11351_v22 }
0x2e07   :  { %v4546_v32 = vpop.trf.xlu0 }
0x2e08   :  { %v4761_v4 = vcombine.low %v4482_v39, %v4546_v32  ;;  %v4762_v31 = vcombine.high %v4482_v39, %v4546_v32  ;;  %v4801_v32 = vrot.slane %v4793_v0, %v12333_v47 }
0x2e0a   :  { %v4769_v5 = vrot.slane %v4761_v4, %v11351_v22  ;;  %v4776_v39 = vrot.slane %v4762_v31, %v11351_v22 }
0x2e40   :  { %v12323_v11 = vpop.trf.xlu1 }
0x2e41   :  { %v4641_v56 = vcombine.low %v12304_v36, %v12323_v11 }
0x2e43   :  { %v4649_v63 = vrot.slane %v4641_v56, %v11351_v22  ;;  %v4672_v56 = vrot.slane %v4658_v8, %v12333_v47 }
0x2e44   :  { %v4578_v6 = vpop.trf.xlu1 }
0x2e45   :  { %v4689_v24 = vcombine.low %v4633_v62, %v4649_v63  ;;  %v4690_v55 = vcombine.high %v4633_v62, %v4649_v63  ;;  %v4777_v26 = vcombine.low %v4514_v41, %v4578_v6  ;;  %v4778_v40 = vcombine.high %v4514_v41, %v4578_v6 }
0x2e46   :  { %v4746_v41 = vcombine.high %v12271_v57, %v12292_v7  ;;  %v4547_v57 = vpop.trf.xlu0 }
0x2e47   :  { %v4697_v49 = vrot.slane %v4689_v24, %v12333_v47  ;;  %v4785_v29 = vrot.slane %v4777_v26, %v11351_v22  ;;  %v4704_v53 = vrot.slane %v4690_v55, %v12333_v47  ;;  %v4792_v30 = vrot.slane %v4778_v40, %v11351_v22 }
0x2e48   :  { %v4579_v62 = vpop.trf.xlu1  ;;  %v4760_v51 = vrot.slane %v4746_v41, %v11351_v22  ;;  %v4881_v40 = vcombine.low %v12273_v12, %v12296_v27 }
0x2e49   :  { %v4722_v52 = vcombine.high %v4665_v42, %v4697_v49  ;;  %v4721_v54 = vcombine.low %v4665_v42, %v4697_v49  ;;  %v4825_v28 = vcombine.low %v4769_v5, %v4785_v29  ;;  %v4826_v59 = vcombine.high %v4769_v5, %v4785_v29 }
0x2e4a   :  { %v4724_v63 = vcombine.high %v4672_v56, %v4704_v53  ;;  %v4723_v4 = vcombine.low %v4672_v56, %v4704_v53  ;;  %v4913_v7 = vcombine.low %v12308_v43, %v4579_v62  ;;  %v4841_v24 = vcombine.low %v4776_v39, %v4792_v30 }
0x2e4b   :  { %5169 = vxpose.xlu0.b32.start.end [1/1] (short) (narrow) %v4722_v52, 8  ;;  %5137 = vxpose.xlu1.b32.start.end [1/1] (short) (narrow) %v4721_v54, 8  ;;  %v4833_v6 = vrot.slane %v4825_v28, %v12333_v47  ;;  %v4840_v8 = vrot.slane %v4826_v59, %v12333_v47  ;;  %v4865_v42 = vcombine.low %v12282_v17, %v12294_v25 }
0x2e4c   :  { %v4809_v9 = vcombine.low %v4744_v50, %v4760_v51  ;;  %v4897_v49 = vcombine.low %v12306_v37, %v4547_v57  ;;  %v4808_v5 = vrot.slane %v4794_v3, %v12333_v47  ;;  %v4842_v29 = vcombine.high %v4776_v39, %v4792_v30 }
0x2e4d   :  { %v4858_v55 = vcombine.high %v4801_v32, %v4833_v6  ;;  %v4857_v26 = vcombine.low %v4801_v32, %v4833_v6  ;;  %v4921_v14 = vrot.slane %v4913_v7, %v11351_v22  ;;  %v4849_v53 = vrot.slane %v4841_v24, %v12333_v47 }
0x2e4e   :  { %v4860_v52 = vcombine.high %v4808_v5, %v4840_v8  ;;  %v4859_v54 = vcombine.low %v4808_v5, %v4840_v8  ;;  %v4810_v58 = vcombine.high %v4744_v50, %v4760_v51  ;;  %v4873_v28 = vrot.slane %v4865_v42, %v11351_v22 }
0x2e4f   :  { %5233 = vxpose.xlu0.b32.start.end [1/1] (short) (narrow) %v4724_v63, 8  ;;  %5201 = vxpose.xlu1.b32.start.end [1/1] (short) (narrow) %v4723_v4, 8  ;;  %v4905_v0 = vrot.slane %v4897_v49, %v11351_v22  ;;  %v4817_v31 = vrot.slane %v4809_v9, %v12333_v47  ;;  %v4889_v56 = vrot.slane %v4881_v40, %v11351_v22 }
0x2e50   :  { %v4914_v41 = vcombine.high %v12308_v43, %v4579_v62  ;;  %v4856_v4 = vrot.slane %v4842_v29, %v12333_v47  ;;  %v4866_v6 = vcombine.high %v12282_v17, %v12294_v25  ;;  %v4898_v50 = vcombine.high %v12306_v37, %v4547_v57  ;;  %v4580_v25 = vpop.trf.xlu1 }
0x2e51   :  { %v4961_v30 = vcombine.low %v4905_v0, %v4921_v14  ;;  %v4862_v59 = vcombine.high %v4817_v31, %v4849_v53  ;;  %v4861_v63 = vcombine.low %v4817_v31, %v4849_v53  ;;  %v4929_v3 = vcombine.low %v4873_v28, %v4889_v56 }
0x2e52   :  { %v4824_v39 = vrot.slane %v4810_v58, %v12333_v47  ;;  %v4882_v32 = vcombine.high %v12273_v12, %v12296_v27  ;;  %v4928_v43 = vrot.slane %v4914_v41, %v11351_v22  ;;  %v4962_v62 = vcombine.high %v4905_v0, %v4921_v14  ;;  %v4548_v12 = vpop.trf.xlu0 }
0x2e53   :  { %5425 = vxpose.xlu0.b32.start.end [1/1] (short) (narrow) %v4858_v55, 8  ;;  %5393 = vxpose.xlu1.b32.start.end [1/1] (short) (narrow) %v4857_v26, 8  ;;  %v4969_v24 = vrot.slane %v4961_v30, %v12333_v47  ;;  %v4880_v55 = vrot.slane %v4866_v6, %v11351_v22  ;;  %v4912_v17 = vrot.slane %v4898_v50, %v11351_v22 }
0x2e54   :  { %v4864_v51 = vcombine.high %v4824_v39, %v4856_v4  ;;  %v4863_v7 = vcombine.low %v4824_v39, %v4856_v4  ;;  %v4930_v37 = vcombine.high %v4873_v28, %v4889_v56  ;;  %v4937_v57 = vrot.slane %v4929_v3, %v12333_v47 }
0x2e55   :  { %v4896_v26 = vrot.slane %v4882_v32, %v11351_v22  ;;  %v4977_v27 = vcombine.low %v4912_v17, %v4928_v43  ;;  %v5049_v8 = vcombine.low %v12312_v44, %v4580_v25  ;;  %v4976_v49 = vrot.slane %v4962_v62, %v12333_v47 }
0x2e56   :  { %v4994_v42 = vcombine.high %v4937_v57, %v4969_v24  ;;  %v4993_v9 = vcombine.low %v4937_v57, %v4969_v24  ;;  %v5001_v40 = vcombine.low %v12284_v18, %v12298_v33  ;;  %v5033_v29 = vcombine.low %v12310_v19, %v4548_v12 }
0x2e57   :  { %5489 = vxpose.xlu0.b32.start.end [1/1] (short) (narrow) %v4860_v52, 8  ;;  %5457 = vxpose.xlu1.b32.start.end [1/1] (short) (narrow) %v4859_v54, 8  ;;  %v4945_v5 = vcombine.low %v4880_v55, %v4896_v26  ;;  %v4944_v14 = vrot.slane %v4930_v37, %v12333_v47  ;;  %v5017_v52 = vcombine.low %v12275_v13, %v12302_v16 }
0x2e58   :  { %v4978_v54 = vcombine.high %v4912_v17, %v4928_v43  ;;  %v5050_v53 = vcombine.high %v12312_v44, %v4580_v25  ;;  %v5057_v58 = vrot.slane %v5049_v8, %v11351_v22  ;;  %v4985_v31 = vrot.slane %v4977_v27, %v12333_v47 }
0x2e59   :  { %v4996_v28 = vcombine.high %v4944_v14, %v4976_v49  ;;  %v4995_v0 = vcombine.low %v4944_v14, %v4976_v49  ;;  %v4946_v56 = vcombine.high %v4880_v55, %v4896_v26  ;;  %v5002_v41 = vcombine.high %v12284_v18, %v12298_v33 }
0x2e5a   :  { %v4953_v30 = vrot.slane %v4945_v5, %v12333_v47  ;;  %v5041_v4 = vrot.slane %v5033_v29, %v11351_v22  ;;  %v5018_v44 = vcombine.high %v12275_v13, %v12302_v16  ;;  %v5025_v6 = vrot.slane %v5017_v52, %v11351_v22 }
0x2e5b   :  { %5553 = vxpose.xlu0.b32.start.end [1/1] (short) (narrow) %v4862_v59, 8  ;;  %5521 = vxpose.xlu1.b32.start.end [1/1] (short) (narrow) %v4861_v63, 8  ;;  %v5009_v59 = vrot.slane %v5001_v40, %v11351_v22  ;;  %v5034_v63 = vcombine.high %v12310_v19, %v4548_v12  ;;  %v5064_v50 = vrot.slane %v5050_v53, %v11351_v22 }
0x2e5c   :  { %v5097_v3 = vcombine.low %v5041_v4, %v5057_v58  ;;  %v4998_v39 = vcombine.high %v4953_v30, %v4985_v31  ;;  %v4997_v18 = vcombine.low %v4953_v30, %v4985_v31  ;;  %v4992_v33 = vrot.slane %v4978_v54, %v12333_v47 }
0x2e5d   :  { %v4960_v32 = vrot.slane %v4946_v56, %v12333_v47  ;;  %v5016_v19 = vrot.slane %v5002_v41, %v11351_v22  ;;  %v5065_v43 = vcombine.low %v5009_v59, %v5025_v6  ;;  %v5048_v62 = vrot.slane %v5034_v63, %v11351_v22 }
0x2e5e   :  { %v5032_v13 = vrot.slane %v5018_v44, %v11351_v22  ;;  %v4642_v16 = vcombine.high %v12304_v36, %v12323_v11  ;;  %v5105_v17 = vrot.slane %v5097_v3, %v12333_v47  ;;  %v4594_v25 = vcombine.high %v12278_v15, %v12286_v20 }
0x2e5f   :  { %5617 = vxpose.xlu0.b32.start.end [1/1] (short) (narrow) %v4864_v51, 8  ;;  %5585 = vxpose.xlu1.b32.start.end [1/1] (short) (narrow) %v4863_v7, 8  ;;  %v5098_v51 = vcombine.high %v5041_v4, %v5057_v58  ;;  %v5113_v7 = vcombine.low %v5048_v62, %v5064_v50  ;;  %v5000_v24 = vcombine.high %v4960_v32, %v4992_v33 }
0x2e60   :  { %v4999_v55 = vcombine.low %v4960_v32, %v4992_v33  ;;  %v5066_v37 = vcombine.high %v5009_v59, %v5025_v6  ;;  %v5081_v57 = vcombine.low %v5016_v19, %v5032_v13  ;;  %v4626_v26 = vcombine.high %v12300_v35, %v12316_v38 }
0x2e61   :  { %v5073_v12 = vrot.slane %v5065_v43, %v12333_v47  ;;  %v4610_v36 = vcombine.high %v12269_v61, %v12288_v21  ;;  %v4656_v11 = vrot.slane %v4642_v16, %v11351_v22  ;;  %v5114_v27 = vcombine.high %v5048_v62, %v5064_v50 }
0x2e62   :  { %v5112_v15 = vrot.slane %v5098_v51, %v12333_v47  ;;  %v4608_v20 = vrot.slane %v4594_v25, %v11351_v22  ;;  %v5082_v49 = vcombine.high %v5016_v19, %v5032_v13  ;;  %v4640_v35 = vrot.slane %v4626_v26, %v11351_v22 }
0x2e63   :  { %5681 = vxpose.xlu0.b32.start.end [1/1] (short) (narrow) %v4994_v42, 8  ;;  %5649 = vxpose.xlu1.b32.start.end [1/1] (short) (narrow) %v4993_v9, 8  ;;  %v5130_v8 = vcombine.high %v5073_v12, %v5105_v17  ;;  %v5129_v42 = vcombine.low %v5073_v12, %v5105_v17  ;;  %v5121_v9 = vrot.slane %v5113_v7, %v12333_v47 }
0x2e64   :  { %v5089_v38 = vrot.slane %v5081_v57, %v12333_v47  ;;  %v5080_v61 = vrot.slane %v5066_v37, %v12333_v47  ;;  %v4624_v21 = vrot.slane %v4610_v36, %v11351_v22  ;;  %v4705_v5 = vcombine.low %v4640_v35, %v4656_v11 }
0x2e65   :  { %v5128_v14 = vrot.slane %v5114_v27, %v12333_v47  ;;  %v5096_v54 = vrot.slane %v5082_v49, %v12333_v47  ;;  %v4706_v53 = vcombine.high %v4640_v35, %v4656_v11 }
0x2e66   :  { %v5133_v40 = vcombine.low %v5089_v38, %v5121_v9  ;;  %v5131_v29 = vcombine.low %v5080_v61, %v5112_v15  ;;  %v4673_v52 = vcombine.low %v4608_v20, %v4624_v21  ;;  %v4674_v31 = vcombine.high %v4608_v20, %v4624_v21 }
0x2e67   :  { %5745 = vxpose.xlu0.b32.start.end [1/1] (short) (narrow) %v4996_v28, 8  ;;  %5713 = vxpose.xlu1.b32.start.end [1/1] (short) (narrow) %v4995_v0, 8  ;;  %v5135_v58 = vcombine.low %v5096_v54, %v5128_v14  ;;  %v5132_v28 = vcombine.high %v5080_v61, %v5112_v15  ;;  %v4713_v0 = vrot.slane %v4705_v5, %v12333_v47 }
0x2e68   :  { %v4681_v56 = vrot.slane %v4673_v52, %v12333_v47  ;;  %v5134_v30 = vcombine.high %v5089_v38, %v5121_v9  ;;  %v4720_v59 = vrot.slane %v4706_v53, %v12333_v47  ;;  %v4688_v63 = vrot.slane %v4674_v31, %v12333_v47 }
0x2e69   :  { %v5136_v44 = vcombine.high %v5096_v54, %v5128_v14 }
0x2e6a   :  { %v4725_v41 = vcombine.low %v4681_v56, %v4713_v0  ;;  %v4727_v4 = vcombine.low %v4688_v63, %v4720_v59  ;;  %v4726_v6 = vcombine.high %v4681_v56, %v4713_v0  ;;  %v4728_v50 = vcombine.high %v4688_v63, %v4720_v59 }
0x2e6b   :  { %5809 = vxpose.xlu0.b32.start.end [1/1] (short) (narrow) %v4998_v39, 8  ;;  %5777 = vxpose.xlu1.b32.start.end [1/1] (short) (narrow) %v4997_v18, 8 }
0x2e6f   :  { %5873 = vxpose.xlu0.b32.start.end [1/1] (short) (narrow) %v5000_v24, 8  ;;  %5841 = vxpose.xlu1.b32.start.end [1/1] (short) (narrow) %v4999_v55, 8  ;;  %v10807_v24 = vpop.f32.mrf.mxu1 }
0x2e70   :  { %v4276_v12 = vcombine.high %v10807_v24, %v10807_v24 }
0x2e71   :  { %v4248_v25 = vpop.f32.mrf.mxu1 }
0x2e72   :  { %v4259_v37 = vcombine.high %v4248_v25, %v4248_v25  ;;  %v4266_v36 = vrot.slane %v4248_v25, %v11351_v22  ;;  %v4290_v20 = vrot.slane %v4276_v12, %v11351_v22 }
0x2e73   :  { %5937 = vxpose.xlu1.b32.start.end [1/1] (short) (narrow) %v5130_v8, 8  ;;  %5905 = vxpose.xlu0.b32.start.end [1/1] (short) (narrow) %v5129_v42, 8  ;;  %v4283_v42 = vrot.slane %v10807_v24, %v11351_v22 }
0x2e74   :  { %v4273_v11 = vrot.slane %v4259_v37, %v11351_v22  ;;  %v4274_v49 = vcombine.high %v4266_v36, %v4266_v36  ;;  %v4292_v31 = vcombine.high %v4290_v20, %v4290_v20 }
0x2e76   :  { %v4275_v38 = vcombine.high %v4273_v11, %v4273_v11  ;;  %v4301_v56 = vcombine.low %v4266_v36, %v4274_v49 }
0x2e77   :  { %6033 = vxpose.xlu1.b32.start.end [1/1] (short) (narrow) %v5133_v40, 8  ;;  %5969 = vxpose.xlu0.b32.start.end [1/1] (short) (narrow) %v5131_v29, 8  ;;  %v4291_v40 = vcombine.high %v4283_v42, %v4283_v42 }
0x2e78   :  { %v4310_v59 = vcombine.low %v4273_v11, %v4275_v38 }
0x2e7b   :  { %6097 = vxpose.xlu1.b32.start.end [1/1] (short) (narrow) %v5135_v58, 8  ;;  %6001 = vxpose.xlu0.b32.start.end [1/1] (short) (narrow) %v5132_v28, 8 }
0x2e7f   :  { %5265 = vxpose.xlu1.b32.start.end [1/1] (short) (narrow) %v4725_v41, 8  ;;  %6065 = vxpose.xlu0.b32.start.end [1/1] (short) (narrow) %v5134_v30, 8 }
0x2e83   :  { %5329 = vxpose.xlu1.b32.start.end [1/1] (short) (narrow) %v4727_v4, 8  ;;  %6129 = vxpose.xlu0.b32.start.end [1/1] (short) (narrow) %v5136_v44, 8 }
0x2e87   :  { %6809 = vxpose.xlu1.b32.start.end [1/1] (short) (narrow) %v12214_v34, 32  ;;  %5297 = vxpose.xlu0.b32.start.end [1/1] (short) (narrow) %v4726_v6, 8 }
0x2e8b   :  { %5361 = vxpose.xlu0.b32.start.end [1/1] (short) (narrow) %v4728_v50, 8 }
0x2e8f   :  { %6777 = vxpose.xlu0.b32.start.end [1/1] (short) (narrow) %v12212_v46, 32 }
0x2e94   :  { %6873 = vxpose.xlu1.b32.start.end [1/1] (short) (narrow) %v12218_v2, 32 }
0x2e9c   :  { %6841 = vxpose.xlu0.b32.start.end [1/1] (short) (narrow) %v12216_v23, 32 }
0x2ea1   :  { %6937 = vxpose.xlu1.b32.start.end [1/1] (short) (narrow) %v12227_v10, 32 }
0x2ea9   :  { %6905 = vxpose.xlu0.b32.start.end [1/1] (short) (narrow) %v12232_v60, 32 }
0x2eae   :  { %7001 = vxpose.xlu1.b32.start.end [1/1] (short) (narrow) %v12224_v48, 32 }
0x2eb6   :  { %6969 = vxpose.xlu0.b32.start.end [1/1] (short) (narrow) %v12229_v45, 32 }
0x2ec7   :  { %v12441_v3 = vpop.trf.xlu0  ;;  %v12443_v34 = vpop.trf.xlu1 }
0x2ecb   :  { %v12445_v39 = vpop.trf.xlu0  ;;  %v12447_v18 = vpop.trf.xlu1 }
0x2ecc   :  { %v6169_v63 = vcombine.low %v12441_v3, %v12445_v39 }
0x2ecf   :  { %v5441_v46 = vpop.trf.xlu0  ;;  %v5409_v2 = vpop.trf.xlu1 }
0x2ed3   :  { %v5505_v33 = vpop.trf.xlu0  ;;  %v5473_v23 = vpop.trf.xlu1 }
0x2ed4   :  { %v6219_v54 = vcombine.low %v5441_v46, %v5505_v33  ;;  %v6211_v53 = vcombine.low %v5409_v2, %v5473_v23  ;;  %v6161_v23 = vcombine.low %v12443_v34, %v12447_v18 }
0x2ed6   :  { %v6168_v24 = vrot.slane %v6161_v23, %v11351_v22 }
0x2ed7   :  { %v5569_v32 = vpop.trf.xlu0  ;;  %v5537_v10 = vpop.trf.xlu1 }
0x2edb   :  { %v5633_v19 = vpop.trf.xlu0  ;;  %v5601_v60 = vpop.trf.xlu1 }
0x2edc   :  { %v6235_v29 = vcombine.low %v5569_v32, %v5633_v19  ;;  %v6227_v14 = vcombine.low %v5537_v10, %v5601_v60  ;;  %v6226_v32 = vrot.slane %v6219_v54, %v11351_v22  ;;  %v6218_v10 = vrot.slane %v6211_v53, %v11351_v22 }
0x2ede   :  { %v6242_v50 = vrot.slane %v6235_v29, %v11351_v22  ;;  %v6234_v46 = vrot.slane %v6227_v14, %v11351_v22 }
0x2edf   :  { %v5697_v43 = vpop.trf.xlu0  ;;  %v5665_v48 = vpop.trf.xlu1 }
0x2ee0   :  { %v6251_v34 = vcombine.low %v6234_v46, %v6242_v50 }
0x2ee3   :  { %v5761_v62 = vpop.trf.xlu0  ;;  %v5729_v45 = vpop.trf.xlu1 }
0x2ee4   :  { %v6269_v61 = vcombine.low %v5697_v43, %v5761_v62  ;;  %v6261_v21 = vcombine.low %v5665_v48, %v5729_v45  ;;  %v4319_v43 = vcombine.low %v4283_v42, %v4291_v40  ;;  %v4328_v48 = vcombine.low %v4290_v20, %v4292_v31 }
0x2ee5   :  { %v4317_v62 = vrot.slane %v4310_v59, %v12333_v47 }
0x2ee6   :  { %v6276_v4 = vrot.slane %v6269_v61, %v11351_v22  ;;  %v6268_v44 = vrot.slane %v6261_v21, %v11351_v22  ;;  %v4335_v12 = vrot.slane %v4328_v48, %v12333_v47 }
0x2ee7   :  { %v5825_v13 = vpop.trf.xlu0  ;;  %v5793_v16 = vpop.trf.xlu1 }
0x2ee8   :  { %v6293_v45 = vcombine.low %v6268_v44, %v6276_v4 }
0x2eea   :  { %v6300_v11 = vrot.slane %v6293_v45, %v12333_v47 }
0x2eeb   :  { %v5889_v51 = vpop.trf.xlu0  ;;  %v5857_v7 = vpop.trf.xlu1 }
0x2eec   :  { %v6285_v9 = vcombine.low %v5825_v13, %v5889_v51  ;;  %v6277_v15 = vcombine.low %v5793_v16, %v5857_v7  ;;  %v4308_v51 = vrot.slane %v4301_v56, %v12333_v47  ;;  %v6176_v7 = vrot.slane %v6169_v63, %v11351_v22 }
0x2eee   :  { %v6292_v58 = vrot.slane %v6285_v9, %v11351_v22  ;;  %v6284_v28 = vrot.slane %v6277_v15, %v11351_v22  ;;  %v6365_v36 = vcombine.low %v4308_v51, %v4317_v62  ;;  %v10270_v20 = vcombine.high %v4308_v51, %v4317_v62 }
0x2eef   :  { %v5921_v55 = vpop.trf.xlu0  ;;  %v5953_v17 = vpop.trf.xlu1  ;;  %v6193_v49 = vcombine.low %v6168_v24, %v6176_v7 }
0x2ef0   :  { %v6301_v3 = vcombine.low %v6284_v28, %v6292_v58  ;;  %v6373_v53 = vrot.slane %v6365_v36, %v11351_v22  ;;  %v6466_v58 = vrot.slane %v10270_v20, %v11351_v22 }
0x2ef1   :  { %v6200_v28 = vrot.slane %v6193_v49, %v12333_v47 }
0x2ef3   :  { %v5985_v57 = vpop.trf.xlu0  ;;  %v6049_v26 = vpop.trf.xlu1 }
0x2ef4   :  { %v6311_v52 = vcombine.low %v5921_v55, %v5985_v57  ;;  %v6243_v55 = vcombine.low %v6218_v10, %v6226_v32 }
0x2ef6   :  { %v6318_v2 = vrot.slane %v6311_v52, %v11351_v22 }
0x2ef7   :  { %v6017_v27 = vpop.trf.xlu0  ;;  %v6113_v8 = vpop.trf.xlu1 }
0x2ef8   :  { %v6319_v35 = vcombine.low %v5953_v17, %v6017_v27  ;;  %v6327_v30 = vcombine.low %v6049_v26, %v6113_v8  ;;  %v6308_v17 = vrot.slane %v6301_v3, %v12333_v47  ;;  %v4326_v26 = vrot.slane %v4319_v43, %v12333_v47 }
0x2ef9   :  { %v6258_v8 = vrot.slane %v6251_v34, %v12333_v47 }
0x2efa   :  { %v6326_v41 = vrot.slane %v6319_v35, %v11351_v22  ;;  %v6334_v19 = vrot.slane %v6327_v30, %v11351_v22  ;;  %v6250_v35 = vrot.slane %v6243_v55, %v12333_v47  ;;  %v6309_v38 = vcombine.low %v6300_v11, %v6308_v17 }
0x2efb   :  { %v6081_v5 = vpop.trf.xlu0  ;;  %v5281_v0 = vpop.trf.xlu1  ;;  %v6366_v40 = vcombine.low %v4326_v26, %v4335_v12  ;;  %v10271_v29 = vcombine.high %v4326_v26, %v4335_v12 }
0x2efc   :  { %v6343_v39 = vcombine.low %v6318_v2, %v6326_v41  ;;  %v6259_v52 = vcombine.low %v6250_v35, %v6258_v8  ;;  %v6260_v54 = vcombine.high %v6250_v35, %v6258_v8 }
0x2efd   :  { %v6380_v31 = vrot.slane %v6366_v40, %v11351_v22  ;;  %v6473_v56 = vrot.slane %v10271_v29, %v11351_v22 }
0x2efe   :  { %v6350_v25 = vrot.slane %v6343_v39, %v12333_v47 }
0x2eff   :  { %v6145_v6 = vpop.trf.xlu0  ;;  %v5345_v16 = vpop.trf.xlu1  ;;  %v6381_v59 = vcombine.low %v6373_v53, %v6380_v31  ;;  %v6474_v63 = vcombine.low %v6466_v58, %v6473_v56 }
0x2f00   :  { %v6335_v33 = vcombine.low %v6081_v5, %v6145_v6  ;;  %v6177_v57 = vcombine.low %v5281_v0, %v5345_v16  ;;  %v6310_v5 = vcombine.high %v6300_v11, %v6308_v17 }
0x2f02   :  { %v6342_v60 = vrot.slane %v6335_v33, %v11351_v22  ;;  %v6184_v61 = vrot.slane %v6177_v57, %v11351_v22 }
0x2f03   :  { %v5313_v13 = vpop.trf.xlu0  ;;  %v6825_v44 = vpop.trf.xlu1 }
0x2f04   :  { %v6351_v18 = vcombine.low %v6334_v19, %v6342_v60 }
0x2f06   :  { %v6358_v37 = vrot.slane %v6351_v18, %v12333_v47 }
0x2f07   :  { %v5377_v27 = vpop.trf.xlu0  ;;  %v6826_v50 = vpop.trf.xlu1 }
0x2f08   :  { %v6185_v42 = vcombine.low %v5313_v13, %v5377_v27  ;;  %v6359_v9 = vcombine.low %v6350_v25, %v6358_v37  ;;  %v6360_v15 = vcombine.high %v6350_v25, %v6358_v37 }
0x2f0a   :  { %v6192_v21 = vrot.slane %v6185_v42, %v11351_v22  ;;  %10809 = vmatpush3.msra.mxu0 %v6359_v9  ;;  %10820 = vmatpush3.msra.mxu1 %v6360_v15 }
0x2f0b   :  { %10810 = vmatprep.subr.mxu0 %v13127_v1  ;;  %10821 = vmatprep.subr.mxu1 %v13127_v1  ;;  %v6793_v4 = vpop.trf.xlu0  ;;  %v6827_v2 = vpop.trf.xlu1 }
0x2f0c   :  { %v6201_v14 = vcombine.low %v6184_v61, %v6192_v21  ;;  %10811 = vmatpush3.msra.mxu0 %v6309_v38  ;;  %10822 = vmatpush3.msra.mxu1 %v6310_v5 }
0x2f0d   :  { %10812 = vmatprep.subr.mxu0 %v13127_v1  ;;  %10823 = vmatprep.subr.mxu1 %v13127_v1 }
0x2f0e   :  { %v6208_v0 = vrot.slane %v6201_v14, %v12333_v47  ;;  %10813 = vmatpush3.msra.mxu0 %v6259_v52  ;;  %10824 = vmatpush3.msra.mxu1 %v6260_v54 }
0x2f0f   :  { %10814 = vmatprep.subr.mxu0 %v13127_v1  ;;  %10825 = vmatprep.subr.mxu1 %v13127_v1  ;;  %v6794_v6 = vpop.trf.xlu0  ;;  %v6828_v23 = vpop.trf.xlu1 }
0x2f10   :  { %v6209_v41 = vcombine.low %v6200_v28, %v6208_v0  ;;  %v6210_v30 = vcombine.high %v6200_v28, %v6208_v0 }
0x2f12   :  { %10815 = vmatpush3.msra.mxu0 %v6209_v41  ;;  %10826 = vmatpush3.msra.mxu1 %v6210_v30 }
0x2f13   :  { %10817 = vmatmul.mubr.msk.f32.vlgmr.msra.gmra.mxu0 %vm178_vm3, %v6381_v59  ;;  %10828 = vmatmul.mubr.msk.f32.vlgmr.msra.gmra.mxu1 %vm178_vm3, %v6474_v63  ;;  %v6795_v46 = vpop.trf.xlu0  ;;  %v6889_v10 = vpop.trf.xlu1 }
0x2f14   :  { %v7049_v19 = vcombine.low %v6825_v44, %v6889_v10  ;;  %v7050_v60 = vcombine.high %v6825_v44, %v6889_v10 }
0x2f16   :  { %v12504_v62 = vrot.slane %v7049_v19, %v11351_v22  ;;  %v12507_v45 = vrot.slane %v7050_v60, %v11351_v22 }
0x2f17   :  { %v6796_v33 = vpop.trf.xlu0  ;;  %v6890_v16 = vpop.trf.xlu1 }
0x2f18   :  { %v7185_v17 = vcombine.low %v6826_v50, %v6890_v16  ;;  %v7186_v25 = vcombine.high %v6826_v50, %v6890_v16 }
0x2f1a   :  { %v12524_v26 = vrot.slane %v7185_v17, %v11351_v22  ;;  %v12527_v12 = vrot.slane %v7186_v25, %v11351_v22 }
0x2f1b   :  { %v6857_v32 = vpop.trf.xlu0  ;;  %v6891_v11 = vpop.trf.xlu1 }
0x2f1c   :  { %v7033_v3 = vcombine.low %v6793_v4, %v6857_v32  ;;  %v7034_v39 = vcombine.high %v6793_v4, %v6857_v32  ;;  %v7321_v42 = vcombine.low %v6827_v2, %v6891_v11  ;;  %v7322_v9 = vcombine.high %v6827_v2, %v6891_v11 }
0x2f1e   :  { %v12498_v43 = vrot.slane %v7033_v3, %v11351_v22  ;;  %v12501_v48 = vrot.slane %v7034_v39, %v11351_v22  ;;  %v12544_v21 = vrot.slane %v7321_v42, %v11351_v22  ;;  %v12547_v5 = vrot.slane %v7322_v9, %v11351_v22 }
0x2f1f   :  { %v6858_v13 = vpop.trf.xlu0  ;;  %v6892_v29 = vpop.trf.xlu1 }
0x2f20   :  { %v7097_v51 = vcombine.low %v12498_v43, %v12504_v62  ;;  %v7098_v34 = vcombine.high %v12498_v43, %v12504_v62  ;;  %v7113_v18 = vcombine.low %v12501_v48, %v12507_v45  ;;  %v7114_v7 = vcombine.high %v12501_v48, %v12507_v45 }
0x2f21   :  { %v7169_v24 = vcombine.low %v6794_v6, %v6858_v13  ;;  %v7170_v55 = vcombine.high %v6794_v6, %v6858_v13  ;;  %v7457_v0 = vcombine.low %v6828_v23, %v6892_v29  ;;  %v7458_v31 = vcombine.high %v6828_v23, %v6892_v29 }
0x2f22   :  { %v12582_v25 = vrot.slane %v7097_v51, %v12333_v47 }
0x2f23   :  { %v12518_v37 = vrot.slane %v7169_v24, %v11351_v22  ;;  %v12521_v57 = vrot.slane %v7170_v55, %v11351_v22  ;;  %v6859_v36 = vpop.trf.xlu0  ;;  %v12564_v30 = vrot.slane %v7457_v0, %v11351_v22  ;;  %v12567_v59 = vrot.slane %v7458_v31, %v11351_v22  ;;  %v6953_v4 = vpop.trf.xlu1 }
0x2f24   :  { %v7305_v27 = vcombine.low %v6795_v46, %v6859_v36  ;;  %v7306_v8 = vcombine.high %v6795_v46, %v6859_v36  ;;  %v12585_v36 = vrot.slane %v7098_v34, %v12333_v47 }
0x2f25   :  { %v7233_v15 = vcombine.low %v12518_v37, %v12524_v26  ;;  %v7234_v20 = vcombine.high %v12518_v37, %v12524_v26  ;;  %v7249_v49 = vcombine.low %v12521_v57, %v12527_v12  ;;  %v7250_v35 = vcombine.high %v12521_v57, %v12527_v12 }
0x2f26   :  { %v12538_v38 = vrot.slane %v7305_v27, %v11351_v22  ;;  %v12541_v61 = vrot.slane %v7306_v8, %v11351_v22 }
0x2f27   :  { %v6860_v40 = vpop.trf.xlu0  ;;  %v12647_v48 = vrot.slane %v7249_v49, %v12333_v47 }
0x2f28   :  { %v7369_v14 = vcombine.low %v12538_v38, %v12544_v21  ;;  %v7370_v52 = vcombine.high %v12538_v38, %v12544_v21  ;;  %v7385_v54 = vcombine.low %v12541_v61, %v12547_v5  ;;  %v7386_v53 = vcombine.high %v12541_v61, %v12547_v5 }
0x2f29   :  { %v7441_v58 = vcombine.low %v6796_v33, %v6860_v40  ;;  %v7442_v28 = vcombine.high %v6796_v33, %v6860_v40  ;;  %v6954_v33 = vpop.trf.xlu1 }
0x2f2a   :  { %v12691_v57 = vrot.slane %v7385_v54, %v12333_v47  ;;  %v12697_v12 = vrot.slane %v7386_v53, %v12333_v47 }
0x2f2b   :  { %v12558_v56 = vrot.slane %v7441_v58, %v11351_v22  ;;  %v12561_v41 = vrot.slane %v7442_v28, %v11351_v22  ;;  %v6921_v63 = vpop.trf.xlu0 }
0x2f2d   :  { %v7505_v44 = vcombine.low %v12558_v56, %v12564_v30  ;;  %v7506_v6 = vcombine.high %v12558_v56, %v12564_v30  ;;  %v7521_v50 = vcombine.low %v12561_v41, %v12567_v59  ;;  %v7522_v46 = vcombine.high %v12561_v41, %v12567_v59  ;;  %v6955_v32 = vpop.trf.xlu1 }
0x2f2f   :  { %v6922_v2 = vpop.trf.xlu0 }
0x2f31   :  { %v6956_v3 = vpop.trf.xlu1 }
0x2f33   :  { %v6923_v23 = vpop.trf.xlu0 }
0x2f35   :  { %v7017_v19 = vpop.trf.xlu1 }
0x2f36   :  { %v7081_v62 = vcombine.low %v6953_v4, %v7017_v19  ;;  %v7082_v13 = vcombine.high %v6953_v4, %v7017_v19 }
0x2f37   :  { %v6924_v10 = vpop.trf.xlu0 }
0x2f38   :  { %v7089_v55 = vrot.slane %v7081_v62, %v11351_v22  ;;  %v7096_v17 = vrot.slane %v7082_v13, %v11351_v22 }
0x2f39   :  { %v7018_v27 = vpop.trf.xlu1 }
0x2f3a   :  { %v7217_v28 = vcombine.low %v6954_v33, %v7018_v27  ;;  %v7218_v0 = vcombine.high %v6954_v33, %v7018_v27 }
0x2f3b   :  { %v6985_v39 = vpop.trf.xlu0 }
0x2f3c   :  { %v7065_v60 = vcombine.low %v6921_v63, %v6985_v39  ;;  %v7066_v43 = vcombine.high %v6921_v63, %v6985_v39  ;;  %v7225_v4 = vrot.slane %v7217_v28, %v11351_v22  ;;  %v7232_v39 = vrot.slane %v7218_v0, %v11351_v22 }
0x2f3e   :  { %v7073_v16 = vrot.slane %v7065_v60, %v11351_v22  ;;  %v7080_v24 = vrot.slane %v7066_v43, %v11351_v22  ;;  %v7019_v60 = vpop.trf.xlu1 }
0x2f3f   :  { %v6986_v11 = vpop.trf.xlu0  ;;  %v7353_v27 = vcombine.low %v6955_v32, %v7019_v60 }
0x2f40   :  { %v7129_v8 = vcombine.low %v7073_v16, %v7089_v55  ;;  %v7130_v42 = vcombine.high %v7073_v16, %v7089_v55  ;;  %v7145_v9 = vcombine.low %v7080_v24, %v7096_v17  ;;  %v7146_v40 = vcombine.high %v7080_v24, %v7096_v17 }
0x2f41   :  { %v7201_v29 = vcombine.low %v6922_v2, %v6986_v11  ;;  %v7202_v58 = vcombine.high %v6922_v2, %v6986_v11  ;;  %v7361_v0 = vrot.slane %v7353_v27, %v11351_v22 }
0x2f42   :  { %v12588_v31 = vrot.slane %v7129_v8, %v12333_v47  ;;  %v12591_v63 = vrot.slane %v7130_v42, %v12333_v47  ;;  %v7354_v8 = vcombine.high %v6955_v32, %v7019_v60 }
0x2f43   :  { %v7209_v51 = vrot.slane %v7201_v29, %v11351_v22  ;;  %v7216_v34 = vrot.slane %v7202_v58, %v11351_v22  ;;  %v6987_v19 = vpop.trf.xlu0  ;;  %v7020_v29 = vpop.trf.xlu1 }
0x2f44   :  { %v7337_v17 = vcombine.low %v6923_v23, %v6987_v19  ;;  %v7338_v11 = vcombine.high %v6923_v23, %v6987_v19  ;;  %v7368_v43 = vrot.slane %v7354_v8, %v11351_v22  ;;  %v7489_v33 = vcombine.low %v6956_v3, %v7020_v29 }
0x2f45   :  { %v7265_v13 = vcombine.low %v7209_v51, %v7225_v4  ;;  %v7266_v16 = vcombine.high %v7209_v51, %v7225_v4  ;;  %v7281_v24 = vcombine.low %v7216_v34, %v7232_v39  ;;  %v7282_v55 = vcombine.high %v7216_v34, %v7232_v39 }
0x2f46   :  { %v7345_v58 = vrot.slane %v7337_v17, %v11351_v22  ;;  %v7352_v28 = vrot.slane %v7338_v11, %v11351_v22  ;;  %v7490_v51 = vcombine.high %v6956_v3, %v7020_v29  ;;  %v7497_v60 = vrot.slane %v7489_v33, %v11351_v22 }
0x2f47   :  { %v6988_v42 = vpop.trf.xlu0  ;;  %v12623_v3 = vrot.slane %v7114_v7, %v12333_v47  ;;  %v12629_v33 = vrot.slane %v7146_v40, %v12333_v47  ;;  %v12650_v45 = vrot.slane %v7265_v13, %v12333_v47  ;;  %v12653_v7 = vrot.slane %v7266_v16, %v12333_v47 }
0x2f48   :  { %v7473_v2 = vcombine.low %v6924_v10, %v6988_v42  ;;  %v7474_v62 = vcombine.high %v6924_v10, %v6988_v42  ;;  %v7401_v4 = vcombine.low %v7345_v58, %v7361_v0  ;;  %v7402_v34 = vcombine.high %v7345_v58, %v7361_v0 }
0x2f49   :  { %v7417_v39 = vcombine.low %v7352_v28, %v7368_v43  ;;  %v7418_v23 = vcombine.high %v7352_v28, %v7368_v43  ;;  %v7504_v17 = vrot.slane %v7490_v51, %v11351_v22  ;;  %v12617_v10 = vrot.slane %v7113_v18, %v12333_v47 }
0x2f4a   :  { %v7481_v32 = vrot.slane %v7473_v2, %v11351_v22  ;;  %v7488_v19 = vrot.slane %v7474_v62, %v11351_v22  ;;  %v12626_v2 = vrot.slane %v7145_v9, %v12333_v47  ;;  %v12635_v43 = vrot.slane %v7233_v15, %v12333_v47 }
0x2f4b   :  { %v12641_v18 = vrot.slane %v7234_v20, %v12333_v47  ;;  %v12656_v15 = vrot.slane %v7281_v24, %v12333_v47  ;;  %v7168_v26 = vcombine.high %v12623_v3, %v12629_v33  ;;  %v12670_v9 = vrot.slane %v7250_v35, %v12333_v47 }
0x2f4c   :  { %v7537_v11 = vcombine.low %v7481_v32, %v7497_v60  ;;  %v7538_v27 = vcombine.high %v7481_v32, %v7497_v60  ;;  %v7553_v1 = vcombine.low %v7488_v19, %v7504_v17  ;;  %v7554_v8 = vcombine.high %v7488_v19, %v7504_v17  ;;  %v6677_v32 = vld [vmem:[%s13148_s13] sm:$0x3] }
0x2f4d   :  { %v7166_v37 = vcombine.high %v12617_v10, %v12626_v2  ;;  %v7165_v20 = vcombine.low %v12617_v10, %v12626_v2  ;;  %v12673_v40 = vrot.slane %v7282_v55, %v12333_v47  ;;  %v12679_v62 = vrot.slane %v7369_v14, %v12333_v47 }
0x2f4e   :  { %v12685_v13 = vrot.slane %v7370_v52, %v12333_v47  ;;  %v12700_v35 = vrot.slane %v7401_v4, %v12333_v47  ;;  %v12703_v14 = vrot.slane %v7402_v34, %v12333_v47  ;;  %v12706_v38 = vrot.slane %v7417_v39, %v12333_v47 }
0x2f4f   :  { %v12709_v21 = vrot.slane %v7418_v23, %v12333_v47  ;;  %v7298_v52 = vcombine.high %v12635_v43, %v12650_v45  ;;  %v7300_v61 = vcombine.high %v12641_v18, %v12653_v7  ;;  %v12731_v42 = vrot.slane %v7505_v44, %v12333_v47 }
0x2f50   :  { %v12737_v29 = vrot.slane %v7506_v6, %v12333_v47  ;;  %v12743_v58 = vrot.slane %v7521_v50, %v12333_v47  ;;  %v12749_v28 = vrot.slane %v7522_v46, %v12333_v47  ;;  %v12752_v44 = vrot.slane %v7537_v11, %v12333_v47 }
0x2f51   :  { %v12755_v0 = vrot.slane %v7538_v27, %v12333_v47  ;;  %v12758_v56 = vrot.slane %v7553_v1, %v12333_v47  ;;  %v12761_v30 = vrot.slane %v7554_v8, %v12333_v47  ;;  %v10273_v19 = vadd.f32 -1.0, %v6677_v32 }
0x2f52   :  { %v13149_v60 = vmov 0.0   ;;  %v13157_v10 = vcombine.low %v12641_v18, %v12653_v7  ;;  %v13158_v2 = vcombine.low %v12647_v48, %v12656_v15 }
0x2f53   :  { %v6679_v46 = vmul.f32 1e+09, %v10273_v19 }
0x2fd3   :  { %v6450_v27 = vpop.f32.mrf.mxu0  ;;  %v6543_v8 = vpop.f32.mrf.mxu1 }
0x2fd4   :  { %6579 = vxpose.xlu0.b32.start.end [1/1] (short) (narrow) %v6543_v8, 8  ;;  %6547 = vxpose.xlu1.b32.start.end [1/1] (short) (narrow) %v6450_v27, 8 }
0x2fd5   :  { %v10818_v23 = vpop.f32.mrf.mxu0  ;;  %v10829_v39 = vpop.f32.mrf.mxu1 }
0x3050   :  { %v6595_v4 = vpop.trf.xlu0  ;;  %v6563_v34 = vpop.trf.xlu1 }
0x3051   :  { %v6626_v51 = vcombine.high %v6595_v4, %v13149_v60  ;;  %v6633_v17 = vrot.slane %v6595_v4, %v11351_v22  ;;  %v6611_v1 = vcombine.high %v6563_v34, %v13149_v60  ;;  %v6618_v11 = vrot.slane %v6563_v34, %v11351_v22 }
0x3053   :  { %v6640_v27 = vrot.slane %v6626_v51, %v11351_v22  ;;  %v6625_v39 = vrot.slane %v6611_v1, %v11351_v22  ;;  %v6641_v23 = vcombine.low %v6618_v11, %v6633_v17  ;;  %v6642_v8 = vcombine.high %v6618_v11, %v6633_v17 }
0x3055   :  { %v6657_v50 = vcombine.low %v6625_v39, %v6640_v27  ;;  %v6649_v32 = vrot.slane %v6641_v23, %v12333_v47  ;;  %v6656_v59 = vrot.slane %v6642_v8, %v12333_v47  ;;  %v6658_v41 = vcombine.high %v6625_v39, %v6640_v27 }
0x3057   :  { %v6680_v55 = vadd.f32 %v6679_v46, %v6649_v32  ;;  %v6673_v4 = vcombine.high %v6649_v32, %v13149_v60  ;;  %v6665_v6 = vrot.slane %v6657_v50, %v12333_v47  ;;  %v6682_v51 = vadd.f32 %v6679_v46, %v6656_v59 }
0x3058   :  { %v6674_v1 = vcombine.high %v6656_v59, %v13149_v60  ;;  %v6672_v23 = vrot.slane %v6658_v41, %v12333_v47 }
0x3059   :  { %v6689_v34 = vsel %vm6688_vm6, %v6680_v55, -inf  ;;  %v6681_v19 = vadd.f32 %v6679_v46, %v6673_v4  ;;  %v6684_v11 = vadd.f32 %v6679_v46, %v6665_v6  ;;  %v6695_v27 = vsel %vm6688_vm6, %v6682_v51, -inf }
0x305a   :  { %6690 = vmax.xlane.f32.xlu1 %v6689_v34  ;;  %v6683_v39 = vadd.f32 %v6679_v46, %v6674_v1  ;;  %v6675_v8 = vcombine.high %v6665_v6, %v13149_v60  ;;  %v6686_v32 = vadd.f32 %v6679_v46, %v6672_v23  ;;  %v6676_v34 = vcombine.high %v6672_v23, %v13149_v60 }
0x305b   :  { %v6692_v17 = vsel %vm6688_vm6, %v6681_v19, -inf  ;;  %v6701_v50 = vsel %vm6688_vm6, %v6684_v11, -inf  ;;  %v13150_v1 = vcombine.high %v12582_v25, %v12588_v31 }
0x305c   :  { %6693 = vmax.xlane.f32.xlu0 %v6692_v17  ;;  %v6698_v4 = vsel %vm6688_vm6, %v6683_v39, -inf  ;;  %v6685_v59 = vadd.f32 %v6679_v46, %v6675_v8  ;;  %v6707_v24 = vsel %vm6688_vm6, %v6686_v32, -inf  ;;  %v6687_v17 = vadd.f32 %v6679_v46, %v6676_v34 }
0x305e   :  { %6696 = vmax.xlane.f32.xlu1 %v6695_v27  ;;  %v6704_v41 = vsel %vm6688_vm6, %v6685_v59, -inf  ;;  %v6710_v6 = vsel %vm6688_vm6, %v6687_v17, -inf  ;;  %v13151_v27 = vcombine.low %v12582_v25, %v12588_v31 }
0x3060   :  { %6702 = vmax.xlane.f32.xlu0 %v6701_v50 }
0x3062   :  { %6699 = vmax.xlane.f32.xlu1 %v6698_v4 }
0x3064   :  { %6708 = vmax.xlane.f32.xlu0 %v6707_v24 }
0x3066   :  { %6705 = vmax.xlane.f32.xlu1 %v6704_v41 }
0x306a   :  { %6711 = vmax.xlane.f32.xlu1 %v6710_v6 }
0x3091   :  { %7609 = vxpose.xlu0.b32.start.end [1/1] (short) (narrow) %v13150_v1, 8 }
0x309d   :  { %7577 = vxpose.xlu1.b32.start.end [1/1] (short) (narrow) %v13151_v27, 8 }
0x30e3   :  { %v6691_v23 = vpop.xlane.xlu1 %6690 }
0x30e4   :  { %v6713_v8 = vsub.f32 %v6680_v55, %v6691_v23 }
0x30e5   :  { %v6694_v50 = vpop.xlane.xlu0 %6693 }
0x30e6   :  { %v6721_v4 = vmul.f32 1.442695, %v6713_v8  ;;  %v6714_v24 = vsub.f32 %v6681_v19, %v6694_v50 }
0x30e7   :  { %v6697_v16 = vpop.xlane.xlu1 %6696 }
0x30e8   :  { %11074 = vpow2.f32 %v6721_v4  ;;  %v6723_v46 = vmul.f32 1.442695, %v6714_v24  ;;  %v6715_v34 = vsub.f32 %v6682_v51, %v6697_v16 }
0x30e9   :  { %v6703_v41 = vpop.xlane.xlu0 %6702 }
0x30ea   :  { %11076 = vpow2.f32 %v6723_v46  ;;  %v6725_v6 = vmul.f32 1.442695, %v6715_v34  ;;  %v6717_v53 = vsub.f32 %v6684_v11, %v6703_v41 }
0x30eb   :  { %v6700_v54 = vpop.xlane.xlu1 %6699 }
0x30ec   :  { %11078 = vpow2.f32 %v6725_v6  ;;  %v6729_v1 = vmul.f32 1.442695, %v6717_v53  ;;  %v6716_v5 = vsub.f32 %v6683_v39, %v6700_v54 }
0x30ed   :  { %v6709_v49 = vpop.xlane.xlu0 %6708 }
0x30ee   :  { %11080 = vpow2.f32 %v6729_v1  ;;  %v6727_v25 = vmul.f32 1.442695, %v6716_v5  ;;  %v6719_v31 = vsub.f32 %v6686_v32, %v6709_v49  ;;  %v13152_v1 = vcombine.high %v12585_v36, %v12591_v63 }
0x30ef   :  { %v6706_v55 = vpop.xlane.xlu1 %6705 }
0x30f0   :  { %11082 = vpow2.f32 %v6727_v25  ;;  %v6733_v27 = vmul.f32 1.442695, %v6719_v31  ;;  %v6718_v19 = vsub.f32 %v6685_v59, %v6706_v55  ;;  %v13153_v25 = vcombine.low %v12585_v36, %v12591_v63 }
0x30f1   :  { %v13155_v36 = vcombine.high %v12647_v48, %v12656_v15  ;;  %v13156_v63 = vcombine.low %v12635_v43, %v12650_v45 }
0x30f2   :  { %11084 = vpow2.f32 %v6733_v27  ;;  %v6731_v23 = vmul.f32 1.442695, %v6718_v19 }
0x30f3   :  { %v6712_v8 = vpop.xlane.xlu1 %6711 }
0x30f4   :  { %11086 = vpow2.f32 %v6731_v23  ;;  %v6720_v16 = vsub.f32 %v6687_v17, %v6712_v8 }
0x30f5   :  { %v11075_v51 = vpop.eup %11074 }
0x30f6   :  { %v6735_v50 = vmul.f32 1.442695, %v6720_v16  ;;  %v6737_v11 = vsel %vm6688_vm6, %v11075_v51, 0.0 }
0x30f7   :  { %v11077_v4 = vpop.eup %11076  ;;  %6738 = vadd.xlane.f32.xlu0 %v6737_v11 }
0x30f8   :  { %11088 = vpow2.f32 %v6735_v50  ;;  %v6740_v54 = vsel %vm6688_vm6, %v11077_v4, 0.0 }
0x30f9   :  { %v11079_v5 = vpop.eup %11078  ;;  %6741 = vadd.xlane.f32.xlu1 %v6740_v54 }
0x30fa   :  { %v6743_v49 = vsel %vm6688_vm6, %v11079_v5, 0.0 }
0x30fb   :  { %v11081_v53 = vpop.eup %11080  ;;  %6744 = vadd.xlane.f32.xlu0 %v6743_v49 }
0x30fc   :  { %v6749_v32 = vsel %vm6688_vm6, %v11081_v53, 0.0 }
0x30fd   :  { %v11083_v39 = vpop.eup %11082 }
0x30fe   :  { %v6746_v59 = vsel %vm6688_vm6, %v11083_v39, 0.0 }
0x30ff   :  { %v12831_v17 = vpop.eup %11084  ;;  %6750 = vadd.xlane.f32.xlu0 %v6749_v32  ;;  %6747 = vadd.xlane.f32.xlu1 %v6746_v59  ;;  %v13161_v32 = vcombine.high %v12670_v9, %v12673_v40  ;;  %v13162_v59 = vcombine.low %v12685_v13, %v12703_v14 }
0x3100   :  { %v6755_v46 = vsel %vm6688_vm6, %v12831_v17, 0.0 }
0x3101   :  { %v11087_v24 = vpop.eup %11086 }
0x3102   :  { %v6752_v34 = vsel %vm6688_vm6, %v11087_v24, 0.0 }
0x3103   :  { %6756 = vadd.xlane.f32.xlu0 %v6755_v46  ;;  %6753 = vadd.xlane.f32.xlu1 %v6752_v34  ;;  %v13164_v46 = vcombine.low %v12691_v57, %v12706_v38  ;;  %v13165_v34 = vcombine.high %v12685_v13, %v12703_v14  ;;  %v13169_v13 = vcombine.high %v12697_v12, %v12709_v21 }
0x3105   :  { %v11089_v41 = vpop.eup %11088 }
0x3106   :  { %v6758_v6 = vsel %vm6688_vm6, %v11089_v41, 0.0 }
0x3107   :  { %6759 = vadd.xlane.f32.xlu1 %v6758_v6  ;;  %v13168_v6 = vcombine.low %v12731_v42, %v12752_v44 }
0x3130   :  { %7673 = vxpose.xlu0.b32.start.end [1/1] (short) (narrow) %v13152_v1, 8 }
0x3134   :  { %7737 = vxpose.xlu0.b32.start.end [1/1] (short) (narrow) %v7166_v37, 8  ;;  %v13154_v37 = vcombine.low %v12623_v3, %v12629_v33  ;;  %v12875_v3 = vpop.trf.xlu1 }
0x3138   :  { %7801 = vxpose.xlu0.b32.start.end [1/1] (short) (narrow) %v7168_v26, 8  ;;  %v12873_v26 = vpop.trf.xlu0 }
0x313a   :  { %7641 = vxpose.xlu1.b32.start.end [1/1] (short) (narrow) %v13153_v25, 8 }
0x313c   :  { %7865 = vxpose.xlu0.b32.start.end [1/1] (short) (narrow) %v7298_v52, 8 }
0x313e   :  { %7705 = vxpose.xlu1.b32.start.end [1/1] (short) (narrow) %v7165_v20, 8 }
0x3140   :  { %7929 = vxpose.xlu0.b32.start.end [1/1] (short) (narrow) %v7300_v61, 8 }
0x3142   :  { %7769 = vxpose.xlu1.b32.start.end [1/1] (short) (narrow) %v13154_v37, 8 }
0x3144   :  { %7993 = vxpose.xlu0.b32.start.end [1/1] (short) (narrow) %v13155_v36, 8  ;;  %v13171_v36 = vcombine.high %v12731_v42, %v12752_v44 }
0x3146   :  { %7833 = vxpose.xlu1.b32.start.end [1/1] (short) (narrow) %v13156_v63, 8 }
0x314a   :  { %7897 = vxpose.xlu1.b32.start.end [1/1] (short) (narrow) %v13157_v10, 8 }
0x314e   :  { %7961 = vxpose.xlu1.b32.start.end [1/1] (short) (narrow) %v13158_v2, 8 }
0x3180   :  { %v6739_v33 = vpop.xlane.xlu0 %6738 }
0x3181   :  { %11090 = vrcp.f32 %v6739_v33 }
0x3182   :  { %v6742_v20 = vpop.xlane.xlu1 %6741 }
0x3183   :  { %11092 = vrcp.f32 %v6742_v20 }
0x3184   :  { %v6745_v52 = vpop.xlane.xlu0 %6744 }
0x3185   :  { %11094 = vrcp.f32 %v6745_v52 }
0x3188   :  { %v6751_v43 = vpop.xlane.xlu0 %6750  ;;  %v6748_v45 = vpop.xlane.xlu1 %6747 }
0x3189   :  { %11096 = vrcp.f32 %v6751_v43 }
0x318a   :  { %11098 = vrcp.f32 %v6748_v45 }
0x318c   :  { %v6757_v18 = vpop.xlane.xlu0 %6756  ;;  %v6754_v7 = vpop.xlane.xlu1 %6753 }
0x318d   :  { %11100 = vrcp.f32 %v6757_v18 }
0x318e   :  { %v11091_v61 = vpop.eup %11090  ;;  %11102 = vrcp.f32 %v6754_v7 }
0x318f   :  { %v6762_v48 = vmul.f32 %v11091_v61, %v11075_v51 }
0x3190   :  { %v11093_v15 = vpop.eup %11092  ;;  %v6760_v31 = vpop.xlane.xlu1 %6759 }
0x3191   :  { %11104 = vrcp.f32 %v6760_v31  ;;  %8801 = vxpose.xlu0.b32.start.end [1/1] (short) (narrow) %v6762_v48, 8  ;;  %10157 = vst.msk [vmem:[#allocation7] sm:$0x3] %vm6688_vm6, %v6762_v48  ;;  %v6764_v55 = vmul.f32 %v11093_v15, %v11077_v4 }
0x3192   :  { %v11095_v27 = vpop.eup %11094 }
0x3193   :  { %8833 = vxpose.xlu1.b32.start.end [1/1] (short) (narrow) %v6764_v55, 8  ;;  %10158 = vst.msk [vmem:[#allocation7 + $0x2] sm:$0x3] %vm6688_vm6, %v6764_v55  ;;  %v6766_v19 = vmul.f32 %v11095_v27, %v11079_v5 }
0x3195   :  { %8865 = vxpose.xlu0.b32.start.end [1/1] (short) (narrow) %v6766_v19, 8  ;;  %10159 = vst.msk [vmem:[#allocation7 + $0x4] sm:$0x3] %vm6688_vm6, %v6766_v19 }
0x3196   :  { %v11097_v23 = vpop.eup %11096 }
0x3197   :  { %v11099_v8 = vpop.eup %11098  ;;  %v6770_v16 = vmul.f32 %v11097_v23, %v11081_v53  ;;  %v13159_v53 = vcombine.low %v12670_v9, %v12673_v40  ;;  %v13166_v9 = vcombine.low %v12697_v12, %v12709_v21  ;;  %v13167_v40 = vcombine.high %v12691_v57, %v12706_v38 }
0x3198   :  { %v6768_v50 = vmul.f32 %v11099_v8, %v11083_v39  ;;  %v13160_v39 = vcombine.low %v12679_v62, %v12700_v35  ;;  %v13170_v38 = vcombine.low %v12737_v29, %v12755_v0 }
0x3199   :  { %10161 = vst.msk [vmem:[#allocation7 + $0x8] sm:$0x3] %vm6688_vm6, %v6770_v16  ;;  %8929 = vxpose.xlu1.b32.start.end [1/1] (short) (narrow) %v6770_v16, 8 }
0x319a   :  { %v11101_v51 = vpop.eup %11100  ;;  %8897 = vxpose.xlu0.b32.start.end [1/1] (short) (narrow) %v6768_v50, 8  ;;  %10160 = vst.msk [vmem:[#allocation7 + $0x6] sm:$0x3] %vm6688_vm6, %v6768_v50 }
0x319b   :  { %v11103_v11 = vpop.eup %11102  ;;  %v6774_v4 = vmul.f32 %v11101_v51, %v12831_v17  ;;  %v13163_v17 = vcombine.high %v12679_v62, %v12700_v35 }
0x319c   :  { %v6772_v54 = vmul.f32 %v11103_v11, %v11087_v24 }
0x319d   :  { %10163 = vst.msk [vmem:[#allocation7 + $0xc] sm:$0x3] %vm6688_vm6, %v6774_v4  ;;  %8993 = vxpose.xlu1.b32.start.end [1/1] (short) (narrow) %v6774_v4, 8 }
0x319e   :  { %v11105_v5 = vpop.eup %11104  ;;  %8961 = vxpose.xlu0.b32.start.end [1/1] (short) (narrow) %v6772_v54, 8  ;;  %10162 = vst.msk [vmem:[#allocation7 + $0xa] sm:$0x3] %vm6688_vm6, %v6772_v54 }
0x319f   :  { %v6776_v49 = vmul.f32 %v11105_v5, %v11089_v41 }
0x31a1   :  { %8025 = vxpose.xlu1.b32.start.end [1/1] (short) (narrow) %v13159_v53, 8  ;;  %10164 = vst.msk [vmem:[#allocation7 + $0xe] sm:$0x3] %vm6688_vm6, %v6776_v49 }
0x31a2   :  { %9025 = vxpose.xlu0.b32.start.end [1/1] (short) (narrow) %v6776_v49, 8 }
0x31a5   :  { %8089 = vxpose.xlu1.b32.start.end [1/1] (short) (narrow) %v13160_v39, 8 }
0x31a6   :  { %8057 = vxpose.xlu0.b32.start.end [1/1] (short) (narrow) %v13161_v32, 8 }
0x31a9   :  { %8153 = vxpose.xlu1.b32.start.end [1/1] (short) (narrow) %v13162_v59, 8 }
0x31aa   :  { %8121 = vxpose.xlu0.b32.start.end [1/1] (short) (narrow) %v13163_v17, 8 }
0x31ac   :  { %v7689_v24 = vpop.trf.xlu0 }
0x31ad   :  { %8217 = vxpose.xlu1.b32.start.end [1/1] (short) (narrow) %v13164_v46, 8  ;;  %v8609_v35 = vcombine.low %v12873_v26, %v7689_v24  ;;  %v13172_v26 = vcombine.high %v12737_v29, %v12755_v0 }
0x31ae   :  { %8185 = vxpose.xlu0.b32.start.end [1/1] (short) (narrow) %v13165_v34, 8 }
0x31af   :  { %v8616_v37 = vrot.slane %v8609_v35, %v11351_v22 }
0x31b0   :  { %v7753_v41 = vpop.trf.xlu0 }
0x31b1   :  { %8281 = vxpose.xlu1.b32.start.end [1/1] (short) (narrow) %v13166_v9, 8 }
0x31b2   :  { %8249 = vxpose.xlu0.b32.start.end [1/1] (short) (narrow) %v13167_v40, 8 }
0x31b4   :  { %v7817_v62 = vpop.trf.xlu0 }
0x31b5   :  { %8345 = vxpose.xlu1.b32.start.end [1/1] (short) (narrow) %v13168_v6, 8  ;;  %v8625_v12 = vcombine.low %v7753_v41, %v7817_v62 }
0x31b6   :  { %8313 = vxpose.xlu0.b32.start.end [1/1] (short) (narrow) %v13169_v13, 8  ;;  %v7657_v14 = vpop.trf.xlu1 }
0x31b7   :  { %v8601_v1 = vcombine.low %v12875_v3, %v7657_v14  ;;  %v8632_v33 = vrot.slane %v8625_v12, %v11351_v22 }
0x31b8   :  { %v7881_v25 = vpop.trf.xlu0 }
0x31b9   :  { %v8608_v57 = vrot.slane %v8601_v1, %v11351_v22  ;;  %8409 = vxpose.xlu1.b32.start.end [1/1] (short) (narrow) %v13170_v38, 8 }
0x31ba   :  { %8377 = vxpose.xlu0.b32.start.end [1/1] (short) (narrow) %v13171_v36, 8  ;;  %v7721_v63 = vpop.trf.xlu1 }
0x31bb   :  { %v8633_v10 = vcombine.low %v8608_v57, %v8616_v37 }
0x31bc   :  { %v7945_v21 = vpop.trf.xlu0 }
0x31bd   :  { %v8659_v2 = vcombine.low %v7881_v25, %v7945_v21  ;;  %v8640_v42 = vrot.slane %v8633_v10, %v12333_v47 }
0x31be   :  { %8441 = vxpose.xlu0.b32.start.end [1/1] (short) (narrow) %v13172_v26, 8  ;;  %v7785_v3 = vpop.trf.xlu1 }
0x31bf   :  { %v8617_v20 = vcombine.low %v7721_v63, %v7785_v3  ;;  %v8666_v48 = vrot.slane %v8659_v2, %v11351_v22 }
0x31c0   :  { %v8009_v31 = vpop.trf.xlu0 }
0x31c1   :  { %v8624_v52 = vrot.slane %v8617_v20, %v11351_v22 }
0x31c2   :  { %v7849_v43 = vpop.trf.xlu1 }
0x31c3   :  { %v8641_v45 = vcombine.low %v8624_v52, %v8632_v33 }
0x31c5   :  { %v8648_v44 = vrot.slane %v8641_v45, %v12333_v47 }
0x31c6   :  { %v7913_v18 = vpop.trf.xlu1 }
0x31c7   :  { %v8649_v7 = vcombine.low %v8640_v42, %v8648_v44  ;;  %v8650_v61 = vcombine.high %v8640_v42, %v8648_v44  ;;  %v8651_v29 = vcombine.low %v7849_v43, %v7913_v18 }
0x31c9   :  { %10832 = vmatprep.mubr.msk.f32.mxu0 %vm9499_vm7, %v8649_v7  ;;  %10840 = vmatprep.mubr.msk.f32.mxu1 %vm9499_vm7, %v8650_v61  ;;  %v8658_v0 = vrot.slane %v8651_v29, %v11351_v22 }
0x31ca   :  { %v7977_v55 = vpop.trf.xlu1 }
0x31cb   :  { %v8683_v15 = vcombine.low %v8658_v0, %v8666_v48 }
0x31cd   :  { %v12955_v52 = vrot.slane %v8683_v15, %v12333_v47 }
0x320d   :  { %v8817_v27 = vpop.trf.xlu0 }
0x320f   :  { %v8849_v19 = vpop.trf.xlu1 }
0x3211   :  { %v8881_v23 = vpop.trf.xlu0 }
0x3212   :  { %v9057_v4 = vcombine.low %v8817_v27, %v8881_v23  ;;  %v9058_v9 = vcombine.high %v8817_v27, %v8881_v23  ;;  %v13173_v23 = vcombine.high %v12743_v58, %v12758_v56 }
0x3214   :  { %v9065_v53 = vrot.slane %v9057_v4, %v11351_v22  ;;  %v9072_v36 = vrot.slane %v9058_v9, %v11351_v22 }
0x3215   :  { %v8945_v8 = vpop.trf.xlu1 }
0x3216   :  { %v8913_v16 = vpop.trf.xlu0 }
0x3217   :  { %v9073_v50 = vcombine.low %v8849_v19, %v8913_v16  ;;  %v9074_v17 = vcombine.high %v8849_v19, %v8913_v16  ;;  %v13175_v16 = vcombine.high %v12749_v28, %v12761_v30 }
0x3219   :  { %v9009_v51 = vpop.trf.xlu1  ;;  %v9081_v54 = vrot.slane %v9073_v50, %v11351_v22  ;;  %v9088_v14 = vrot.slane %v9074_v17, %v11351_v22  ;;  %v13176_v50 = vcombine.low %v12749_v28, %v12761_v30 }
0x321a   :  { %v8977_v11 = vpop.trf.xlu0  ;;  %v9089_v5 = vcombine.low %v8945_v8, %v9009_v51  ;;  %v9090_v46 = vcombine.high %v8945_v8, %v9009_v51  ;;  %v13174_v8 = vcombine.low %v12743_v58, %v12758_v56 }
0x321b   :  { %v9121_v24 = vcombine.low %v9065_v53, %v9081_v54  ;;  %v9122_v25 = vcombine.high %v9065_v53, %v9081_v54  ;;  %v9137_v20 = vcombine.low %v9072_v36, %v9088_v14  ;;  %v9138_v48 = vcombine.high %v9072_v36, %v9088_v14 }
0x321c   :  { %v9097_v34 = vrot.slane %v9089_v5, %v11351_v22  ;;  %v9104_v57 = vrot.slane %v9090_v46, %v11351_v22 }
0x321d   :  { %v8041_v59 = vpop.trf.xlu1  ;;  %v9129_v37 = vrot.slane %v9121_v24, %v12333_v47  ;;  %v9136_v33 = vrot.slane %v9122_v25, %v12333_v47  ;;  %v9145_v29 = vrot.slane %v9137_v20, %v12333_v47 }
0x321e   :  { %v9041_v49 = vpop.trf.xlu0  ;;  %v8667_v40 = vcombine.low %v7977_v55, %v8041_v59  ;;  %v9152_v55 = vrot.slane %v9138_v48, %v12333_v47 }
0x321f   :  { %v9105_v39 = vcombine.low %v8977_v11, %v9041_v49  ;;  %v9106_v32 = vcombine.high %v8977_v11, %v9041_v49 }
0x3220   :  { %v8674_v63 = vrot.slane %v8667_v40, %v11351_v22 }
0x3221   :  { %v9113_v41 = vrot.slane %v9105_v39, %v11351_v22  ;;  %v9120_v35 = vrot.slane %v9106_v32, %v11351_v22  ;;  %v8105_v11 = vpop.trf.xlu1 }
0x3222   :  { %v8073_v62 = vpop.trf.xlu0 }
0x3223   :  { %v9153_v6 = vcombine.low %v9097_v34, %v9113_v41  ;;  %v9154_v13 = vcombine.high %v9097_v34, %v9113_v41  ;;  %v8675_v1 = vcombine.low %v8009_v31, %v8073_v62  ;;  %v9169_v21 = vcombine.low %v9104_v57, %v9120_v35 }
0x3224   :  { %v9170_v45 = vcombine.high %v9104_v57, %v9120_v35 }
0x3225   :  { %v9161_v38 = vrot.slane %v9153_v6, %v12333_v47  ;;  %v8682_v10 = vrot.slane %v8675_v1, %v11351_v22  ;;  %v9168_v12 = vrot.slane %v9154_v13, %v12333_v47  ;;  %v9177_v42 = vrot.slane %v9169_v21, %v12333_v47  ;;  %v8169_v54 = vpop.trf.xlu1 }
0x3226   :  { %v9184_v0 = vrot.slane %v9170_v45, %v12333_v47  ;;  %v8137_v51 = vpop.trf.xlu0  ;;  %v8701_v30 = vcombine.low %v8105_v11, %v8169_v54 }
0x3227   :  { %v9186_v2 = vcombine.high %v9129_v37, %v9161_v38  ;;  %v9185_v26 = vcombine.low %v9129_v37, %v9161_v38  ;;  %v8691_v3 = vcombine.low %v8674_v63, %v8682_v10  ;;  %v9188_v44 = vcombine.high %v9136_v33, %v9168_v12 }
0x3228   :  { %v9187_v18 = vcombine.low %v9136_v33, %v9168_v12  ;;  %v9190_v15 = vcombine.high %v9145_v29, %v9177_v42  ;;  %v9189_v31 = vcombine.low %v9145_v29, %v9177_v42  ;;  %v9192_v27 = vcombine.high %v9152_v55, %v9184_v0 }
0x3229   :  { %9225 = vxpose.xlu0.b32.start.end [1/1] (short) (narrow) %v9186_v2, 8  ;;  %9193 = vxpose.xlu1.b32.start.end [1/1] (short) (narrow) %v9185_v26, 8  ;;  %v12958_v43 = vrot.slane %v8691_v3, %v12333_v47  ;;  %v9191_v19 = vcombine.low %v9152_v55, %v9184_v0  ;;  %v8233_v49 = vpop.trf.xlu1  ;;  %v8708_v25 = vrot.slane %v8701_v30, %v11351_v22 }
0x322a   :  { %v8201_v4 = vpop.trf.xlu0 }
0x322b   :  { %v8699_v7 = vcombine.low %v12955_v52, %v12958_v43  ;;  %v8700_v61 = vcombine.high %v12955_v52, %v12958_v43  ;;  %v8709_v28 = vcombine.low %v8137_v51, %v8201_v4  ;;  %v11123_v51 = vld [vmem:[#allocation5 + $0x4] sm:$0x3]  ;;  %v11128_v43 = vld [vmem:[#allocation5 + $0xa] sm:$0x3] }
0x322d   :  { %9289 = vxpose.xlu0.b32.start.end [1/1] (short) (narrow) %v9188_v44, 8  ;;  %9257 = vxpose.xlu1.b32.start.end [1/1] (short) (narrow) %v9187_v18, 8  ;;  %v8297_v39 = vpop.trf.xlu1  ;;  %v8716_v1 = vrot.slane %v8709_v28, %v11351_v22 }
0x322e   :  { %v8265_v5 = vpop.trf.xlu0  ;;  %v8717_v62 = vcombine.low %v8233_v49, %v8297_v39  ;;  %v11124_v49 = vld [vmem:[#allocation5 + $0x2] sm:$0x3] }
0x322f   :  { %v8733_v33 = vcombine.low %v8708_v25, %v8716_v1 }
0x3230   :  { %v8724_v57 = vrot.slane %v8717_v62, %v11351_v22  ;;  %v9825_v62 = vld [vmem:[%s13117_s21 + $0x8] sm:$0xff] }
0x3231   :  { %9353 = vxpose.xlu0.b32.start.end [1/1] (short) (narrow) %v9190_v15, 8  ;;  %9321 = vxpose.xlu1.b32.start.end [1/1] (short) (narrow) %v9189_v31, 8  ;;  %v8361_v59 = vpop.trf.xlu1  ;;  %v8740_v15 = vrot.slane %v8733_v33, %v12333_v47 }
0x3232   :  { %v8329_v53 = vpop.trf.xlu0 }
0x3233   :  { %v8725_v40 = vcombine.low %v8265_v5, %v8329_v53  ;;  %v11125_v53 = vld [vmem:[#allocation5] sm:$0x3] }
0x3234   :  { %v9961_v39 = vcombine.low %v11125_v53, %v11124_v49 }
0x3235   :  { %9417 = vxpose.xlu0.b32.start.end [1/1] (short) (narrow) %v9192_v27, 8  ;;  %9385 = vxpose.xlu1.b32.start.end [1/1] (short) (narrow) %v9191_v19, 8  ;;  %v8425_v56 = vpop.trf.xlu1  ;;  %v8732_v37 = vrot.slane %v8725_v40, %v11351_v22 }
0x3236   :  { %v8393_v32 = vpop.trf.xlu0  ;;  %v8751_v12 = vcombine.low %v8361_v59, %v8425_v56  ;;  %v9969_v52 = vrot.slane %v9961_v39, %v11351_v22 }
0x3237   :  { %v8741_v20 = vcombine.low %v8724_v57, %v8732_v37 }
0x3238   :  { %v8758_v48 = vrot.slane %v8751_v12, %v11351_v22 }
0x3239   :  { %8505 = vxpose.xlu0.b32.start.end [1/1] (short) (narrow) %v13173_v23, 8  ;;  %8473 = vxpose.xlu1.b32.start.end [1/1] (short) (narrow) %v13174_v8, 8  ;;  %v8748_v31 = vrot.slane %v8741_v20, %v12333_v47 }
0x323a   :  { %v8457_v58 = vpop.trf.xlu0 }
0x323b   :  { %v8759_v21 = vcombine.low %v8393_v32, %v8457_v58  ;;  %v8749_v32 = vcombine.low %v8740_v15, %v8748_v31  ;;  %v8750_v59 = vcombine.high %v8740_v15, %v8748_v31  ;;  %v9827_v58 = vld [vmem:[%s13117_s21 + $0x18] sm:$0xff] }
0x323d   :  { %8569 = vxpose.xlu0.b32.start.end [1/1] (short) (narrow) %v13175_v16, 8  ;;  %8537 = vxpose.xlu1.b32.start.end [1/1] (short) (narrow) %v13176_v50, 8  ;;  %v8766_v18 = vrot.slane %v8759_v21, %v11351_v22  ;;  %v11122_v50 = vld [vmem:[#allocation5 + $0x6] sm:$0x3]  ;;  %v9831_v21 = vld [vmem:[%s13118_s22 + $0x18] sm:$0xff] }
0x323e   :  { %v9962_v11 = vcombine.low %v11123_v51, %v11122_v50 }
0x323f   :  { %v8783_v4 = vcombine.low %v8758_v48, %v8766_v18 }
0x32a5   :  { %v9241_v17 = vpop.trf.xlu0  ;;  %v9209_v24 = vpop.trf.xlu1 }
0x32a9   :  { %v9305_v46 = vpop.trf.xlu0  ;;  %v9273_v34 = vpop.trf.xlu1 }
0x32aa   :  { %v9457_v41 = vcombine.low %v9241_v17, %v9305_v46  ;;  %v9449_v9 = vcombine.low %v9209_v24, %v9273_v34  ;;  %v9976_v17 = vrot.slane %v9962_v11, %v11351_v22  ;;  %v11126_v24 = vld [vmem:[#allocation5 + $0xc] sm:$0x3]  ;;  %v11127_v46 = vld [vmem:[#allocation5 + $0xe] sm:$0x3] }
0x32ab   :  { %v9979_v34 = vcombine.low %v11126_v24, %v11127_v46 }
0x32ac   :  { %v9464_v13 = vrot.slane %v9457_v41, %v11351_v22  ;;  %v9456_v14 = vrot.slane %v9449_v9, %v11351_v22  ;;  %v9826_v41 = vld [vmem:[%s13117_s21 + $0x10] sm:$0xff] }
0x32ad   :  { %v9369_v35 = vpop.trf.xlu0  ;;  %v9337_v6 = vpop.trf.xlu1 }
0x32ae   :  { %v9481_v2 = vcombine.low %v9456_v14, %v9464_v13  ;;  %v9824_v13 = vld [vmem:[%s13117_s21] sm:$0xff] }
0x32b0   :  { %v9488_v29 = vrot.slane %v9481_v2, %v12333_v47  ;;  %v9830_v2 = vld [vmem:[%s13118_s22 + $0x10] sm:$0xff] }
0x32b1   :  { %v9433_v38 = vpop.trf.xlu0  ;;  %v9401_v36 = vpop.trf.xlu1 }
0x32b2   :  { %v9473_v63 = vcombine.low %v9369_v35, %v9433_v38  ;;  %v9465_v10 = vcombine.low %v9337_v6, %v9401_v36  ;;  %v9993_v35 = vrot.slane %v9979_v34, %v11351_v22  ;;  %v9977_v6 = vcombine.low %v9969_v52, %v9976_v17  ;;  %v10286_v17 = vld [vmem:[%s13119_s23] ss:$0 sm:$0xff]  ;;  %s11160_s23 = smov [#allocation7]  }
0x32b3   :  { %s10172_s9 = sshll.u32 %s11160_s23, 4  ;;  %s10173_s9 = int_to_ptr.vmem [resolvable:$true] %s10172_s9 }
0x32b4   :  { %v9480_v26 = vrot.slane %v9473_v63, %v11351_v22  ;;  %v9472_v3 = vrot.slane %v9465_v10, %v11351_v22  ;;  %s11130_s11 = scalar_lea.vmem %s10173_s9, 256  ;;  %p11135_p1 = scmp.lt.s32.totalorder %s10173_s9, %s10173_s9 }
0x32b5   :  { %v8521_v45 = vpop.trf.xlu0  ;;  %v8489_v42 = vpop.trf.xlu1  ;;  %p11131_p0 = scmp.ne.s32.totalorder %s10173_s9, %s11130_s11  ;;  %p11136_p2 = scmp.lt.s32.totalorder %s11130_s11, %s11130_s11 }
0x32b6   :  { %v9489_v44 = vcombine.low %v9472_v3, %v9480_v26  ;;  %v9829_v26 = vld [vmem:[%s13118_s22 + $0x8] sm:$0xff]  ;;  %v9828_v3 = vld [vmem:[%s13118_s22] sm:$0xff] }
0x32b7   :  { %p11137_p3 = por %p11136_p2, %p11135_p1 }
0x32b8   :  { %v9496_v0 = vrot.slane %v9489_v44, %v12333_v47 }
0x32b9   :  { %v8585_v55 = vpop.trf.xlu0  ;;  %v8553_v27 = vpop.trf.xlu1  ;;  %p11138_p4 = pnand %p11137_p3, %p11131_p0 }
0x32ba   :  { %v8775_v19 = vcombine.low %v8521_v45, %v8585_v55  ;;  %v8767_v23 = vcombine.low %v8489_v42, %v8553_v27  ;;  %v9497_v8 = vcombine.low %v9488_v29, %v9496_v0  ;;  %v9498_v16 = vcombine.high %v9488_v29, %v9496_v0 }
0x32bc   :  { %v8782_v54 = vrot.slane %v8775_v19, %v11351_v22  ;;  %v8774_v5 = vrot.slane %v8767_v23, %v11351_v22  ;;  %10830 = vmatprep.subr.mxu0 %v9497_v8  ;;  %10838 = vmatprep.subr.mxu1 %v9498_v16 }
0x32bd   :  { %10831 = vmatpush3.msra.mxu0 %v9497_v8  ;;  %10839 = vmatpush3.msra.mxu1 %v9498_v16 }
0x32be   :  { %v8791_v56 = vcombine.low %v8774_v5, %v8782_v54  ;;  %10833 = vmatmul.mubr.msk.f32.vlgmr.msra.gmra.mxu0 %vm9499_vm7, %v8699_v7  ;;  %10841 = vmatmul.mubr.msk.f32.vlgmr.msra.gmra.mxu1 %vm9499_vm7, %v8700_v61  ;;  %v8790_v7 = vrot.slane %v8783_v4, %v12333_v47  ;;  %v11129_v61 = vld [vmem:[#allocation5 + $0x8] sm:$0x3] }
0x32bf   :  { %10835 = vmatprep.mubr.msk.f32.mxu0 %vm9499_vm7, %v8749_v32  ;;  %10843 = vmatprep.mubr.msk.f32.mxu1 %vm9499_vm7, %v8750_v59  ;;  %v9978_v28 = vcombine.low %v11129_v61, %v11128_v43 }
0x32c0   :  { %v8798_v9 = vrot.slane %v8791_v56, %v12333_v47  ;;  %10857 = vmatprep.subr.mxu1 %v9827_v58  ;;  %10846 = vmatprep.subr.mxu0 %v9831_v21 }
0x32c1   :  { %10858 = vmatpush3.msra.mxu1 %v9827_v58  ;;  %v9986_v14 = vrot.slane %v9978_v28, %v11351_v22  ;;  %10847 = vmatpush3.msra.mxu0 %v9831_v21 }
0x32c2   :  { %10859 = vmatprep.subr.mxu1 %v9826_v41  ;;  %v8799_v30 = vcombine.low %v8790_v7, %v8798_v9  ;;  %v8800_v40 = vcombine.high %v8790_v7, %v8798_v9  ;;  %10848 = vmatprep.subr.mxu0 %v9830_v2 }
0x32c3   :  { %10860 = vmatpush3.msra.mxu1 %v9826_v41  ;;  %v9994_v1 = vcombine.low %v9986_v14, %v9993_v35  ;;  %10849 = vmatpush3.msra.mxu0 %v9830_v2 }
0x32c4   :  { %10836 = vmatmul.mubr.msk.f32.gmra.mxu0 %vm9499_vm7, %v8799_v30  ;;  %10844 = vmatmul.mubr.msk.f32.gmra.mxu1 %vm9499_vm7, %v8800_v40 }
0x32c5   :  { %10861 = vmatprep.subr.mxu1 %v9825_v62  ;;  %10865 = vmatprep.mubr.msk.f32.mxu1 %vm178_vm3, %v9977_v6 }
0x32c6   :  { %10862 = vmatpush3.msra.mxu1 %v9825_v62  ;;  %10850 = vmatprep.subr.mxu0 %v9829_v26 }
0x32c7   :  { %10863 = vmatprep.subr.mxu1 %v9824_v13  ;;  %10851 = vmatpush3.msra.mxu0 %v9829_v26 }
0x32c8   :  { %10864 = vmatpush3.msra.mxu1 %v9824_v13  ;;  %10852 = vmatprep.subr.mxu0 %v9828_v3 }
0x32c9   :  { %10866 = vmatmul.mubr.msk.f32.vlgmr.msra.gmra.mxu1 %vm178_vm3, %v9994_v1  ;;  %10853 = vmatpush3.msra.mxu0 %v9828_v3 }
0x337e   :  { %v10834_v25 = vpop.f32.mrf.mxu0  ;;  %v10842_v37 = vpop.f32.mrf.mxu1 }
0x3380   :  { %v9578_v57 = vpop.f32.mrf.mxu0  ;;  %v9675_v38 = vpop.f32.mrf.mxu1 }
0x3381   :  { %9726 = vxpose.xlu0.b32.start [1/4] (short) (narrow) %v9675_v38, 8  ;;  %9694 = vxpose.xlu1.b32.start [1/4] (short) (narrow) %v9578_v57, 8 }
0x3384   :  { %v10837_v36 = vpop.f32.mrf.mxu0  ;;  %v10845_v63 = vpop.f32.mrf.mxu1 }
0x3385   :  { %9727 = vxpose.xlu0.b32.cont [2/4] (short) (narrow) %v10842_v37, 8  ;;  %9695 = vxpose.xlu1.b32.cont [2/4] (short) (narrow) %v10834_v25, 8 }
0x3386   :  { %v9588_v10 = vpop.f32.mrf.mxu0  ;;  %v9685_v12 = vpop.f32.mrf.mxu1 }
0x3389   :  { %9728 = vxpose.xlu0.b32.cont [3/4] (short) (narrow) %v9685_v12, 8  ;;  %9696 = vxpose.xlu1.b32.cont [3/4] (short) (narrow) %v9588_v10, 8  ;;  %v10867_v56 = vpop.f32.mrf.mxu1 }
0x338b   :  { %v10065_v46 = vpop.f32.mrf.mxu1 }
0x338d   :  { %9729 = vxpose.xlu0.b32.end [4/4] (short) (narrow) %v10845_v63, 8  ;;  %9697 = vxpose.xlu1.b32.end [4/4] (short) (narrow) %v10837_v36, 8 }
0x33fd   :  { %v9742_v33 = vpop.trf.xlu0  ;;  %v9710_v20 = vpop.trf.xlu1 }
0x33fe   :  { %v9773_v45 = vcombine.high %v9742_v33, %v13149_v60  ;;  %v9780_v42 = vrot.slane %v9742_v33, %v11351_v22  ;;  %v9758_v44 = vcombine.high %v9710_v20, %v13149_v60  ;;  %v9765_v18 = vrot.slane %v9710_v20, %v11351_v22 }
0x3400   :  { %v9787_v48 = vrot.slane %v9773_v45, %v11351_v22  ;;  %v9772_v29 = vrot.slane %v9758_v44, %v11351_v22  ;;  %v9788_v0 = vcombine.low %v9765_v18, %v9780_v42  ;;  %v9789_v15 = vcombine.high %v9765_v18, %v9780_v42 }
0x3402   :  { %v9796_v31 = vrot.slane %v9788_v0, %v12333_v47  ;;  %v9803_v55 = vrot.slane %v9789_v15, %v12333_v47  ;;  %v9804_v27 = vcombine.low %v9772_v29, %v9787_v48  ;;  %v9805_v19 = vcombine.high %v9772_v29, %v9787_v48 }
0x3404   :  { %v9812_v23 = vrot.slane %v9804_v27, %v12333_v47  ;;  %v9819_v8 = vrot.slane %v9805_v19, %v12333_v47  ;;  %v9820_v16 = vcombine.high %v9796_v31, %v13149_v60  ;;  %v9821_v50 = vcombine.high %v9803_v55, %v13149_v60 }
0x3406   :  { %v9822_v51 = vcombine.high %v9812_v23, %v13149_v60  ;;  %v9823_v11 = vcombine.high %v9819_v8, %v13149_v60  ;;  %v9840_v4 = vcombine.low %v9796_v31, %v9820_v16  ;;  %v9841_v54 = vcombine.low %v9803_v55, %v9821_v50 }
0x3408   :  { %v9857_v5 = vcombine.low %v9812_v23, %v9822_v51  ;;  %v9858_v49 = vcombine.low %v9819_v8, %v9823_v11  ;;  %v9848_v53 = vrot.slane %v9840_v4, %v11351_v22  ;;  %v9855_v39 = vrot.slane %v9841_v54, %v11351_v22 }
0x340a   :  { %v9865_v32 = vrot.slane %v9857_v5, %v11351_v22  ;;  %v9872_v47 = vrot.slane %v9858_v49, %v11351_v22  ;;  %v9856_v59 = vcombine.low %v9848_v53, %v9855_v39 }
0x340c   :  { %v9873_v58 = vcombine.low %v9865_v32, %v9872_v47  ;;  %10854 = vmatprep.mubr.msk.f32.mxu0 %vm178_vm3, %v9856_v59 }
0x340e   :  { %10855 = vmatmul.mubr.msk.f32.vlgmr.msra.gmra.mxu0 %vm178_vm3, %v9873_v58 }
0x34ce   :  { %v10856_v60 = vpop.f32.mrf.mxu0 }
0x34cf   :  { %v10071_v24 = vadd.f32 %v10867_v56, %v10856_v60 }
0x34d0   :  { %v9944_v34 = vpop.f32.mrf.mxu0 }
0x34d1   :  { %v10082_v41 = vadd.f32 %v10286_v17, %v10071_v24  ;;  %v10066_v7 = vadd.f32 %v10065_v46, %v9944_v34 }
0x34d3   :  { %v10081_v9 = vadd.f32 %v10286_v17, %v10066_v7  ;;  %10085 = vmax.xlane.f32.xlu0 %v10082_v41 }
0x34d5   :  { %10083 = vmax.xlane.f32.xlu1 %v10081_v9 }
0x355c   :  { %v10086_v52 = vpop.xlane.xlu0 %10085 }
0x355d   :  { %v10088_v61 = vsub.f32 %v10082_v41, %v10086_v52 }
0x355e   :  { %v10084_v43 = vpop.xlane.xlu1 %10083 }
0x355f   :  { %v10087_v28 = vsub.f32 %v10081_v9, %v10084_v43  ;;  %v10091_v40 = vmul.f32 1.442695, %v10088_v61 }
0x3561   :  { %v10089_v30 = vmul.f32 1.442695, %v10087_v28 }
0x3563   :  { %11106 = vpow2.f32 %v10089_v30 }
0x3564   :  { %11108 = vpow2.f32 %v10091_v40 }
0x3570   :  { %v11107_v62 = vpop.eup %11106 }
0x3571   :  { %10093 = vadd.xlane.f32.xlu1 %v11107_v62  ;;  %v11109_v35 = vpop.eup %11108 }
0x3575   :  { %10095 = vadd.xlane.f32.xlu1 %v11109_v35 }
0x3576   :  { %11141 = shalt.err (!%p11138_p4)
}
0x3577   :  { %s11161_s0 = smov 2  }
0x3578   :  { %10178 = dma.vmem_to_hbm [thread:$0]  %s10173_s9, 256, %s13121_s25, [#allocation8], %s11156_s26, %s11156_s26, %s11161_s0  }
0x35fa   :  { %v10094_v6 = vpop.xlane.xlu1 %10093 }
0x35fb   :  { %11110 = vlog2.f32 %v10094_v6 }
0x35fe   :  { %v10096_v13 = vpop.xlane.xlu1 %10095 }
0x35ff   :  { %11112 = vlog2.f32 %v10096_v13 }
0x3608   :  { %v11111_v14 = vpop.eup %11110 }
0x3609   :  { %v10098_v1 = vmul.f32 0.6931472, %v11111_v14 }
0x360b   :  { %v10101_v25 = vadd.f32 %v10098_v1, %v10084_v43 }
0x360c   :  { %v11113_v37 = vpop.eup %11112 }
0x360d   :  { %v10103_v57 = vsub.f32 %v10081_v9, %v10101_v25  ;;  %v10100_v38 = vmul.f32 0.6931472, %v11113_v37 }
0x360f   :  { %v10107_v36 = vcombine.high %v10103_v57, %v10103_v57  ;;  %v10114_v63 = vrot.slane %v10103_v57, %v11351_v22  ;;  %10287 = vst.sshfl [vmem:[%s13120_s24] sm:$0x3 pattern:$0x76325410] %v10103_v57  ;;  %v10102_v10 = vadd.f32 %v10100_v38, %v10086_v52 }
0x3611   :  { %v10121_v12 = vrot.slane %v10107_v36, %v11351_v22  ;;  %v10122_v21 = vcombine.high %v10114_v63, %v10114_v63  ;;  %10288 = vst.sshfl [vmem:[%s13120_s24 + $0x4] sm:$0x3 pattern:$0x76325410] %v10107_v36  ;;  %v10104_v2 = vsub.f32 %v10082_v41, %v10102_v10 }
0x3613   :  { %v10123_v26 = vcombine.high %v10121_v12, %v10121_v12  ;;  %10150 = vst [vmem:[%s13120_s24 + $0x2] sm:$0x3] %v10122_v21  ;;  %v10124_v3 = vcombine.high %v10104_v2, %v10104_v2  ;;  %v10131_v33 = vrot.slane %v10104_v2, %v11351_v22  ;;  %10289 = vst.sshfl [vmem:[%s13120_s24 + $0x8] sm:$0x3 pattern:$0x76325410] %v10104_v2 }
0x3615   :  { %10152 = vst [vmem:[%s13120_s24 + $0x6] sm:$0x3] %v10123_v26  ;;  %v10138_v20 = vrot.slane %v10124_v3, %v11351_v22  ;;  %v10139_v45 = vcombine.high %v10131_v33, %v10131_v33  ;;  %10290 = vst.sshfl [vmem:[%s13120_s24 + $0xc] sm:$0x3 pattern:$0x76325410] %v10124_v3 }
0x3617   :  { %v10140_v42 = vcombine.high %v10138_v20, %v10138_v20  ;;  %10154 = vst [vmem:[%s13120_s24 + $0xa] sm:$0x3] %v10139_v45 }
0x3619   :  { %10156 = vst [vmem:[%s13120_s24 + $0xe] sm:$0x3] %v10140_v42 }
0x361a   :  { %11150 = dma.done.wait [#allocation8], 256  }
0x361b   :  { %11151 = vsyncadd [#allocation8], 4294967040 }
0x361c   :  { %10184 = vsyncpa [#allocation8], 1 }

</bundles_post_ra>
